<compile_context>
chip_gen: v7x
topology: tpu7x:2x2x1
jax: 0.10.0
libtpu: 0.0.40
codegen_flags: <defaults>
</compile_context>

<pallas_src>
import jax
import jax.numpy as jnp
from jax import lax
from jax.experimental import pallas as pl
from jax.experimental.pallas import tpu as pltpu

EPS = 1e-5


def barlow_twins_kernel(x1_ref, x2_ref, wbg_ref, w1_ref, g1_ref, b1_ref,
                        w2_ref, g2_ref, b2_ref, w3_ref, loss_ref):
    bsz = x1_ref.shape[0]

    def mm(a, w_ref):
        # bf16 MXU operands, f32 accumulation (no-op cast if input already bf16).
        return jnp.dot(a.astype(jnp.bfloat16), w_ref[...],
                       preferred_element_type=jnp.float32)

    # Backbone stand-in: GAP is folded into wb_gap (K = C*H*W), run per view,
    # then stack only the small [B, D] outputs along the sublane axis.
    h1 = mm(x1_ref[...], wbg_ref)                         # [B, D] f32
    h2 = mm(x2_ref[...], wbg_ref)                         # [B, D] f32
    h = jnp.concatenate([h1, h2], axis=0)                 # [2B, D]

    def bn_per_view(y):
        # Training-mode BatchNorm1d; stats independent per view; two-pass var.
        def norm(v):
            m = jnp.mean(v, axis=0, keepdims=True)
            d = v - m
            var = jnp.mean(d * d, axis=0, keepdims=True)
            return d * lax.rsqrt(var + EPS)
        # B is a multiple of 8, so the slices / concat stay tile-aligned.
        return jnp.concatenate([norm(y[:bsz]), norm(y[bsz:])], axis=0)

    # projector = MoCoV3.make_head(3, D, 4D, 4D, last_bn=False):
    #   Linear -> BN -> ReLU -> Linear -> BN -> ReLU -> Linear
    # One stacked pass for both views per layer.
    y = mm(h, w1_ref)
    y = jnp.maximum(bn_per_view(y) * g1_ref[...] + b1_ref[...], 0.0)
    y = mm(y, w2_ref)
    y = jnp.maximum(bn_per_view(y) * g2_ref[...] + b2_ref[...], 0.0)
    z = mm(y, w3_ref)

    # self.bn = BatchNorm1d(hidden, affine=False), per view, then the f32
    # cross-correlation c = bn(z1).T @ bn(z2) / B (contract the batch axis).
    zn = bn_per_view(z)
    c = lax.dot_general(zn[:bsz], zn[bsz:], (((0,), (0,)), ((), ())),
                        preferred_element_type=jnp.float32) / bsz

    # Loss epilogue: single masked full reduction.
    #   loss = (1/n) * sum_i (c_ii - 1)^2 + (1/(n*(n-1))) * sum_{i!=j} c_ij^2
    n = c.shape[0]
    rr = lax.broadcasted_iota(jnp.int32, c.shape, 0)
    cc = lax.broadcasted_iota(jnp.int32, c.shape, 1)
    diag = rr == cc
    per_elem = jnp.where(diag,
                         (1.0 / n) * (c - 1.0) * (c - 1.0),
                         (1.0 / (n * (n - 1))) * (c * c))
    loss = jnp.sum(per_elem)
    # Kept as a (1,1) VMEM output (SMEM scalar store of a vector-reduced value
    # is a negligible win and riskier to lower).
    loss_ref[...] = jnp.broadcast_to(loss, (1, 1))


def prepare_kernel_params(params, hw):
    """One-time weight prep (at init, not per-step): fold the global-average-
    pool into the backbone weight and cast matmul weights to bf16."""
    wb_gap = jnp.repeat(params["wb"] / hw, hw, axis=0)    # [C*HW, D]
    return {
        "wb_gap": wb_gap.astype(jnp.bfloat16),
        "w1": params["w1"].astype(jnp.bfloat16),
        "w2": params["w2"].astype(jnp.bfloat16),
        "w3": params["w3"].astype(jnp.bfloat16),
        "g1": params["g1"], "b1": params["b1"],
        "g2": params["g2"], "b2": params["b2"],
    }


def barlow_twins_forward(x1, x2, kparams):
    # TODO(synk): real MetaFormer backbone (norm_out replaced by Identity) is
    # external to this module; stand-in = GAP + bias-free linear, fused into
    # the wb_gap weight.
    b = x1.shape[0]
    # Contiguous NCHW -> [B, C*H*W] is a free (bitcast) reshape, no HBM copy.
    x1f = x1.reshape(b, -1)
    x2f = x2.reshape(b, -1)

    vmem = pl.BlockSpec(memory_space=pltpu.MemorySpace.VMEM)
    out = pl.pallas_call(
        barlow_twins_kernel,
        out_shape=jax.ShapeDtypeStruct((1, 1), jnp.float32),
        in_specs=[vmem] * 10,
        out_specs=vmem,
    )(x1f, x2f, kparams["wb_gap"],
      kparams["w1"], kparams["g1"], kparams["b1"],
      kparams["w2"], kparams["g2"], kparams["b2"],
      kparams["w3"])
    return out[0, 0]


def _batchnorm_ref(y, gamma=None, beta=None):
    m = jnp.mean(y, axis=0, keepdims=True)
    v = jnp.mean((y - m) ** 2, axis=0, keepdims=True)
    yn = (y - m) * lax.rsqrt(v + EPS)
    if gamma is not None:
        yn = yn * gamma + beta
    return yn


def barlow_twins_reference(x1, x2, params):
    # Pure-JAX f32 reference for validation (un-folded GAP + unstacked views).
    f1 = jnp.mean(x1, axis=(2, 3))
    f2 = jnp.mean(x2, axis=(2, 3))

    def project(f):
        h = f @ params["wb"]
        y = h @ params["w1"]
        y = jnp.maximum(_batchnorm_ref(y, params["g1"], params["b1"]), 0.0)
        y = y @ params["w2"]
        y = jnp.maximum(_batchnorm_ref(y, params["g2"], params["b2"]), 0.0)
        return y @ params["w3"]

    z1n = _batchnorm_ref(project(f1))
    z2n = _batchnorm_ref(project(f2))
    c = z1n.T @ z2n / x1.shape[0]
    n = c.shape[0]
    on_diag = jnp.sum((jnp.diagonal(c) - 1.0) ** 2)
    off_diag = jnp.sum(c ** 2) - jnp.sum(jnp.diagonal(c) ** 2)
    return (1.0 / n) * on_diag + (1.0 / (n * (n - 1))) * off_diag


if __name__ == "__main__":
    # Batch chosen so the stacked projector pass has M = 2B = 128 rows, the
    # backbone contraction has K = C*H*W = 2048, and the cross-correlation
    # contraction has K = 64 (all MXU-friendly).
    B, C, H, W = 64, 8, 16, 16        # image: [B, C, H, W] (NCHW)
    D = 32                             # mlp_in_dim
    HD = 4 * D                         # mlp_hidden_dim (expansion=4) = 128

    key = jax.random.PRNGKey(0)
    ks = jax.random.split(key, 6)
    params = {
        "wb": jax.random.normal(ks[0], (C, D), jnp.float32) / jnp.sqrt(C),
        "w1": jax.random.normal(ks[1], (D, HD), jnp.float32) / jnp.sqrt(D),
        "g1": jnp.ones((1, HD), jnp.float32),
        "b1": jnp.zeros((1, HD), jnp.float32),
        "w2": jax.random.normal(ks[2], (HD, HD), jnp.float32) / jnp.sqrt(HD),
        "g2": jnp.ones((1, HD), jnp.float32),
        "b2": jnp.zeros((1, HD), jnp.float32),
        "w3": jax.random.normal(ks[3], (HD, HD), jnp.float32) / jnp.sqrt(HD),
    }
    x1 = jax.random.normal(ks[4], (B, C, H, W), jnp.float32)
    x2 = jax.random.normal(ks[5], (B, C, H, W), jnp.float32)

    kparams = prepare_kernel_params(params, H * W)   # one-time weight prep

    loss = barlow_twins_forward(x1, x2, kparams)
    loss = jax.block_until_ready(loss)

    ref = jax.block_until_ready(barlow_twins_reference(x1, x2, params))
    assert jnp.isfinite(loss)
    # f32 correlation / BN; only the projector matmuls use bf16 operands, so a
    # 2% relative tolerance vs. the f32 reference is a meaningful guardrail.
    assert abs(float(loss) - float(ref)) <= 0.02 * max(1.0, abs(float(ref))), (
        float(loss), float(ref))
    print("KERNEL_OK")
</pallas_src>

<mosaic_0001>
module attributes {stable_mosaic.version = 11 : i64} {
  func.func @barlow_twins_kernel(%arg0: memref<64x2048xf32, #tpu.memory_space<vmem>>, %arg1: memref<64x2048xf32, #tpu.memory_space<vmem>>, %arg2: memref<2048x32xbf16, #tpu.memory_space<vmem>>, %arg3: memref<32x128xbf16, #tpu.memory_space<vmem>>, %arg4: memref<1x128xf32, #tpu.memory_space<vmem>>, %arg5: memref<1x128xf32, #tpu.memory_space<vmem>>, %arg6: memref<128x128xbf16, #tpu.memory_space<vmem>>, %arg7: memref<1x128xf32, #tpu.memory_space<vmem>>, %arg8: memref<1x128xf32, #tpu.memory_space<vmem>>, %arg9: memref<128x128xbf16, #tpu.memory_space<vmem>>, %arg10: memref<1x1xf32, #tpu.memory_space<vmem>>) attributes {dimension_semantics = [], scalar_prefetch = 0 : i64, scratch_operands = 0 : i64, tpu.core_type = #tpu.core_type<tc>} {
    %c0 = arith.constant 0 : index
    %c0_0 = arith.constant 0 : index
    %0 = vector.load %arg0[%c0, %c0_0] : memref<64x2048xf32, #tpu.memory_space<vmem>>, vector<64x2048xf32>
    %1 = arith.truncf %0 : vector<64x2048xf32> to vector<64x2048xbf16>
    %c0_1 = arith.constant 0 : index
    %c0_2 = arith.constant 0 : index
    %2 = vector.load %arg2[%c0_1, %c0_2] : memref<2048x32xbf16, #tpu.memory_space<vmem>>, vector<2048x32xbf16>
    %cst = arith.constant dense<0.000000e+00> : vector<64x32xf32>
    %3 = tpu.matmul %1, %2, %cst {dimension_numbers = #tpu.dot_dimension_numbers<[1], [0], [0], [1], [0, 0, 1, 1], [], []>} : vector<64x2048xbf16>, vector<2048x32xbf16>, vector<64x32xf32> -> vector<64x32xf32>
    %c0_3 = arith.constant 0 : index
    %c0_4 = arith.constant 0 : index
    %4 = vector.load %arg1[%c0_3, %c0_4] : memref<64x2048xf32, #tpu.memory_space<vmem>>, vector<64x2048xf32>
    %5 = arith.truncf %4 : vector<64x2048xf32> to vector<64x2048xbf16>
    %c0_5 = arith.constant 0 : index
    %c0_6 = arith.constant 0 : index
    %6 = vector.load %arg2[%c0_5, %c0_6] : memref<2048x32xbf16, #tpu.memory_space<vmem>>, vector<2048x32xbf16>
    %cst_7 = arith.constant dense<0.000000e+00> : vector<64x32xf32>
    %7 = tpu.matmul %5, %6, %cst_7 {dimension_numbers = #tpu.dot_dimension_numbers<[1], [0], [0], [1], [0, 0, 1, 1], [], []>} : vector<64x2048xbf16>, vector<2048x32xbf16>, vector<64x32xf32> -> vector<64x32xf32>
    %8 = tpu.concatenate %3, %7 in 0 : vector<64x32xf32>, vector<64x32xf32> -> vector<128x32xf32>
    %9 = arith.truncf %8 : vector<128x32xf32> to vector<128x32xbf16>
    %c0_8 = arith.constant 0 : index
    %c0_9 = arith.constant 0 : index
    %10 = vector.load %arg3[%c0_8, %c0_9] : memref<32x128xbf16, #tpu.memory_space<vmem>>, vector<32x128xbf16>
    %cst_10 = arith.constant dense<0.000000e+00> : vector<128x128xf32>
    %11 = tpu.matmul %9, %10, %cst_10 {dimension_numbers = #tpu.dot_dimension_numbers<[1], [0], [0], [1], [0, 0, 1, 1], [], []>} : vector<128x32xbf16>, vector<32x128xbf16>, vector<128x128xf32> -> vector<128x128xf32>
    %12 = vector.extract_strided_slice %11 {offsets = [0, 0], sizes = [64, 128], strides = [1, 1]} : vector<128x128xf32> to vector<64x128xf32>
    %cst_11 = arith.constant dense<0.000000e+00> : vector<128xf32>
    %13 = vector.multi_reduction <add>, %12, %cst_11 [0] : vector<64x128xf32> to vector<128xf32>
    %14 = vector.shape_cast %13 : vector<128xf32> to vector<1x128xf32>
    %cst_12 = arith.constant 6.400000e+01 : f32
    %15 = vector.broadcast %cst_12 : f32 to vector<1x128xf32>
    %16 = arith.divf %14, %15 : vector<1x128xf32>
    %17 = vector.broadcast %16 : vector<1x128xf32> to vector<64x128xf32>
    %18 = arith.subf %12, %17 : vector<64x128xf32>
    %19 = arith.mulf %18, %18 : vector<64x128xf32>
    %cst_13 = arith.constant dense<0.000000e+00> : vector<128xf32>
    %20 = vector.multi_reduction <add>, %19, %cst_13 [0] : vector<64x128xf32> to vector<128xf32>
    %21 = vector.shape_cast %20 : vector<128xf32> to vector<1x128xf32>
    %cst_14 = arith.constant 6.400000e+01 : f32
    %22 = vector.broadcast %cst_14 : f32 to vector<1x128xf32>
    %23 = arith.divf %21, %22 : vector<1x128xf32>
    %cst_15 = arith.constant 9.99999974E-6 : f32
    %24 = vector.broadcast %cst_15 : f32 to vector<1x128xf32>
    %25 = arith.addf %23, %24 : vector<1x128xf32>
    %26 = math.rsqrt %25 : vector<1x128xf32>
    %27 = vector.broadcast %26 : vector<1x128xf32> to vector<64x128xf32>
    %28 = arith.mulf %18, %27 : vector<64x128xf32>
    %29 = vector.extract_strided_slice %11 {offsets = [64, 0], sizes = [64, 128], strides = [1, 1]} : vector<128x128xf32> to vector<64x128xf32>
    %cst_16 = arith.constant dense<0.000000e+00> : vector<128xf32>
    %30 = vector.multi_reduction <add>, %29, %cst_16 [0] : vector<64x128xf32> to vector<128xf32>
    %31 = vector.shape_cast %30 : vector<128xf32> to vector<1x128xf32>
    %cst_17 = arith.constant 6.400000e+01 : f32
    %32 = vector.broadcast %cst_17 : f32 to vector<1x128xf32>
    %33 = arith.divf %31, %32 : vector<1x128xf32>
    %34 = vector.broadcast %33 : vector<1x128xf32> to vector<64x128xf32>
    %35 = arith.subf %29, %34 : vector<64x128xf32>
    %36 = arith.mulf %35, %35 : vector<64x128xf32>
    %cst_18 = arith.constant dense<0.000000e+00> : vector<128xf32>
    %37 = vector.multi_reduction <add>, %36, %cst_18 [0] : vector<64x128xf32> to vector<128xf32>
    %38 = vector.shape_cast %37 : vector<128xf32> to vector<1x128xf32>
    %cst_19 = arith.constant 6.400000e+01 : f32
    %39 = vector.broadcast %cst_19 : f32 to vector<1x128xf32>
    %40 = arith.divf %38, %39 : vector<1x128xf32>
    %cst_20 = arith.constant 9.99999974E-6 : f32
    %41 = vector.broadcast %cst_20 : f32 to vector<1x128xf32>
    %42 = arith.addf %40, %41 : vector<1x128xf32>
    %43 = math.rsqrt %42 : vector<1x128xf32>
    %44 = vector.broadcast %43 : vector<1x128xf32> to vector<64x128xf32>
    %45 = arith.mulf %35, %44 : vector<64x128xf32>
    %46 = tpu.concatenate %28, %45 in 0 : vector<64x128xf32>, vector<64x128xf32> -> vector<128x128xf32>
    %c0_21 = arith.constant 0 : index
    %c0_22 = arith.constant 0 : index
    %47 = vector.load %arg4[%c0_21, %c0_22] : memref<1x128xf32, #tpu.memory_space<vmem>>, vector<1x128xf32>
    %48 = vector.broadcast %47 : vector<1x128xf32> to vector<128x128xf32>
    %49 = arith.mulf %46, %48 : vector<128x128xf32>
    %c0_23 = arith.constant 0 : index
    %c0_24 = arith.constant 0 : index
    %50 = vector.load %arg5[%c0_23, %c0_24] : memref<1x128xf32, #tpu.memory_space<vmem>>, vector<1x128xf32>
    %51 = vector.broadcast %50 : vector<1x128xf32> to vector<128x128xf32>
    %52 = arith.addf %49, %51 : vector<128x128xf32>
    %cst_25 = arith.constant 0.000000e+00 : f32
    %53 = vector.broadcast %cst_25 : f32 to vector<128x128xf32>
    %54 = arith.maximumf %52, %53 : vector<128x128xf32>
    %55 = arith.truncf %54 : vector<128x128xf32> to vector<128x128xbf16>
    %c0_26 = arith.constant 0 : index
    %c0_27 = arith.constant 0 : index
    %56 = vector.load %arg6[%c0_26, %c0_27] : memref<128x128xbf16, #tpu.memory_space<vmem>>, vector<128x128xbf16>
    %cst_28 = arith.constant dense<0.000000e+00> : vector<128x128xf32>
    %57 = tpu.matmul %55, %56, %cst_28 {dimension_numbers = #tpu.dot_dimension_numbers<[1], [0], [0], [1], [0, 0, 1, 1], [], []>} : vector<128x128xbf16>, vector<128x128xbf16>, vector<128x128xf32> -> vector<128x128xf32>
    %58 = vector.extract_strided_slice %57 {offsets = [0, 0], sizes = [64, 128], strides = [1, 1]} : vector<128x128xf32> to vector<64x128xf32>
    %cst_29 = arith.constant dense<0.000000e+00> : vector<128xf32>
    %59 = vector.multi_reduction <add>, %58, %cst_29 [0] : vector<64x128xf32> to vector<128xf32>
    %60 = vector.shape_cast %59 : vector<128xf32> to vector<1x128xf32>
    %cst_30 = arith.constant 6.400000e+01 : f32
    %61 = vector.broadcast %cst_30 : f32 to vector<1x128xf32>
    %62 = arith.divf %60, %61 : vector<1x128xf32>
    %63 = vector.broadcast %62 : vector<1x128xf32> to vector<64x128xf32>
    %64 = arith.subf %58, %63 : vector<64x128xf32>
    %65 = arith.mulf %64, %64 : vector<64x128xf32>
    %cst_31 = arith.constant dense<0.000000e+00> : vector<128xf32>
    %66 = vector.multi_reduction <add>, %65, %cst_31 [0] : vector<64x128xf32> to vector<128xf32>
    %67 = vector.shape_cast %66 : vector<128xf32> to vector<1x128xf32>
    %cst_32 = arith.constant 6.400000e+01 : f32
    %68 = vector.broadcast %cst_32 : f32 to vector<1x128xf32>
    %69 = arith.divf %67, %68 : vector<1x128xf32>
    %cst_33 = arith.constant 9.99999974E-6 : f32
    %70 = vector.broadcast %cst_33 : f32 to vector<1x128xf32>
    %71 = arith.addf %69, %70 : vector<1x128xf32>
    %72 = math.rsqrt %71 : vector<1x128xf32>
    %73 = vector.broadcast %72 : vector<1x128xf32> to vector<64x128xf32>
    %74 = arith.mulf %64, %73 : vector<64x128xf32>
    %75 = vector.extract_strided_slice %57 {offsets = [64, 0], sizes = [64, 128], strides = [1, 1]} : vector<128x128xf32> to vector<64x128xf32>
    %cst_34 = arith.constant dense<0.000000e+00> : vector<128xf32>
    %76 = vector.multi_reduction <add>, %75, %cst_34 [0] : vector<64x128xf32> to vector<128xf32>
    %77 = vector.shape_cast %76 : vector<128xf32> to vector<1x128xf32>
    %cst_35 = arith.constant 6.400000e+01 : f32
    %78 = vector.broadcast %cst_35 : f32 to vector<1x128xf32>
    %79 = arith.divf %77, %78 : vector<1x128xf32>
    %80 = vector.broadcast %79 : vector<1x128xf32> to vector<64x128xf32>
    %81 = arith.subf %75, %80 : vector<64x128xf32>
    %82 = arith.mulf %81, %81 : vector<64x128xf32>
    %cst_36 = arith.constant dense<0.000000e+00> : vector<128xf32>
    %83 = vector.multi_reduction <add>, %82, %cst_36 [0] : vector<64x128xf32> to vector<128xf32>
    %84 = vector.shape_cast %83 : vector<128xf32> to vector<1x128xf32>
    %cst_37 = arith.constant 6.400000e+01 : f32
    %85 = vector.broadcast %cst_37 : f32 to vector<1x128xf32>
    %86 = arith.divf %84, %85 : vector<1x128xf32>
    %cst_38 = arith.constant 9.99999974E-6 : f32
    %87 = vector.broadcast %cst_38 : f32 to vector<1x128xf32>
    %88 = arith.addf %86, %87 : vector<1x128xf32>
    %89 = math.rsqrt %88 : vector<1x128xf32>
    %90 = vector.broadcast %89 : vector<1x128xf32> to vector<64x128xf32>
    %91 = arith.mulf %81, %90 : vector<64x128xf32>
    %92 = tpu.concatenate %74, %91 in 0 : vector<64x128xf32>, vector<64x128xf32> -> vector<128x128xf32>
    %c0_39 = arith.constant 0 : index
    %c0_40 = arith.constant 0 : index
    %93 = vector.load %arg7[%c0_39, %c0_40] : memref<1x128xf32, #tpu.memory_space<vmem>>, vector<1x128xf32>
    %94 = vector.broadcast %93 : vector<1x128xf32> to vector<128x128xf32>
    %95 = arith.mulf %92, %94 : vector<128x128xf32>
    %c0_41 = arith.constant 0 : index
    %c0_42 = arith.constant 0 : index
    %96 = vector.load %arg8[%c0_41, %c0_42] : memref<1x128xf32, #tpu.memory_space<vmem>>, vector<1x128xf32>
    %97 = vector.broadcast %96 : vector<1x128xf32> to vector<128x128xf32>
    %98 = arith.addf %95, %97 : vector<128x128xf32>
    %cst_43 = arith.constant 0.000000e+00 : f32
    %99 = vector.broadcast %cst_43 : f32 to vector<128x128xf32>
    %100 = arith.maximumf %98, %99 : vector<128x128xf32>
    %101 = arith.truncf %100 : vector<128x128xf32> to vector<128x128xbf16>
    %c0_44 = arith.constant 0 : index
    %c0_45 = arith.constant 0 : index
    %102 = vector.load %arg9[%c0_44, %c0_45] : memref<128x128xbf16, #tpu.memory_space<vmem>>, vector<128x128xbf16>
    %cst_46 = arith.constant dense<0.000000e+00> : vector<128x128xf32>
    %103 = tpu.matmul %101, %102, %cst_46 {dimension_numbers = #tpu.dot_dimension_numbers<[1], [0], [0], [1], [0, 0, 1, 1], [], []>} : vector<128x128xbf16>, vector<128x128xbf16>, vector<128x128xf32> -> vector<128x128xf32>
    %104 = vector.extract_strided_slice %103 {offsets = [0, 0], sizes = [64, 128], strides = [1, 1]} : vector<128x128xf32> to vector<64x128xf32>
    %cst_47 = arith.constant dense<0.000000e+00> : vector<128xf32>
    %105 = vector.multi_reduction <add>, %104, %cst_47 [0] : vector<64x128xf32> to vector<128xf32>
    %106 = vector.shape_cast %105 : vector<128xf32> to vector<1x128xf32>
    %cst_48 = arith.constant 6.400000e+01 : f32
    %107 = vector.broadcast %cst_48 : f32 to vector<1x128xf32>
    %108 = arith.divf %106, %107 : vector<1x128xf32>
    %109 = vector.broadcast %108 : vector<1x128xf32> to vector<64x128xf32>
    %110 = arith.subf %104, %109 : vector<64x128xf32>
    %111 = arith.mulf %110, %110 : vector<64x128xf32>
    %cst_49 = arith.constant dense<0.000000e+00> : vector<128xf32>
    %112 = vector.multi_reduction <add>, %111, %cst_49 [0] : vector<64x128xf32> to vector<128xf32>
    %113 = vector.shape_cast %112 : vector<128xf32> to vector<1x128xf32>
    %cst_50 = arith.constant 6.400000e+01 : f32
    %114 = vector.broadcast %cst_50 : f32 to vector<1x128xf32>
    %115 = arith.divf %113, %114 : vector<1x128xf32>
    %cst_51 = arith.constant 9.99999974E-6 : f32
    %116 = vector.broadcast %cst_51 : f32 to vector<1x128xf32>
    %117 = arith.addf %115, %116 : vector<1x128xf32>
    %118 = math.rsqrt %117 : vector<1x128xf32>
    %119 = vector.broadcast %118 : vector<1x128xf32> to vector<64x128xf32>
    %120 = arith.mulf %110, %119 : vector<64x128xf32>
    %121 = vector.extract_strided_slice %103 {offsets = [64, 0], sizes = [64, 128], strides = [1, 1]} : vector<128x128xf32> to vector<64x128xf32>
    %cst_52 = arith.constant dense<0.000000e+00> : vector<128xf32>
    %122 = vector.multi_reduction <add>, %121, %cst_52 [0] : vector<64x128xf32> to vector<128xf32>
    %123 = vector.shape_cast %122 : vector<128xf32> to vector<1x128xf32>
    %cst_53 = arith.constant 6.400000e+01 : f32
    %124 = vector.broadcast %cst_53 : f32 to vector<1x128xf32>
    %125 = arith.divf %123, %124 : vector<1x128xf32>
    %126 = vector.broadcast %125 : vector<1x128xf32> to vector<64x128xf32>
    %127 = arith.subf %121, %126 : vector<64x128xf32>
    %128 = arith.mulf %127, %127 : vector<64x128xf32>
    %cst_54 = arith.constant dense<0.000000e+00> : vector<128xf32>
    %129 = vector.multi_reduction <add>, %128, %cst_54 [0] : vector<64x128xf32> to vector<128xf32>
    %130 = vector.shape_cast %129 : vector<128xf32> to vector<1x128xf32>
    %cst_55 = arith.constant 6.400000e+01 : f32
    %131 = vector.broadcast %cst_55 : f32 to vector<1x128xf32>
    %132 = arith.divf %130, %131 : vector<1x128xf32>
    %cst_56 = arith.constant 9.99999974E-6 : f32
    %133 = vector.broadcast %cst_56 : f32 to vector<1x128xf32>
    %134 = arith.addf %132, %133 : vector<1x128xf32>
    %135 = math.rsqrt %134 : vector<1x128xf32>
    %136 = vector.broadcast %135 : vector<1x128xf32> to vector<64x128xf32>
    %137 = arith.mulf %127, %136 : vector<64x128xf32>
    %138 = tpu.concatenate %120, %137 in 0 : vector<64x128xf32>, vector<64x128xf32> -> vector<128x128xf32>
    %139 = vector.extract_strided_slice %138 {offsets = [0, 0], sizes = [64, 128], strides = [1, 1]} : vector<128x128xf32> to vector<64x128xf32>
    %140 = vector.extract_strided_slice %138 {offsets = [64, 0], sizes = [64, 128], strides = [1, 1]} : vector<128x128xf32> to vector<64x128xf32>
    %cst_57 = arith.constant dense<0.000000e+00> : vector<128x128xf32>
    %141 = tpu.matmul %139, %140, %cst_57 {dimension_numbers = #tpu.dot_dimension_numbers<[0], [0], [1], [1], [0, 1, 1, 1], [], []>} : vector<64x128xf32>, vector<64x128xf32>, vector<128x128xf32> -> vector<128x128xf32>
    %cst_58 = arith.constant 6.400000e+01 : f32
    %142 = vector.broadcast %cst_58 : f32 to vector<128x128xf32>
    %143 = arith.divf %141, %142 : vector<128x128xf32>
    %144 = tpu.iota {dimensions = array<i32: 0>} : vector<128x128xi32>
    %145 = tpu.iota {dimensions = array<i32: 1>} : vector<128x128xi32>
    %146 = arith.cmpi eq, %144, %145 : vector<128x128xi32>
    %cst_59 = arith.constant 1.000000e+00 : f32
    %147 = vector.broadcast %cst_59 : f32 to vector<128x128xf32>
    %148 = arith.subf %143, %147 : vector<128x128xf32>
    %cst_60 = arith.constant 7.812500e-03 : f32
    %149 = vector.broadcast %cst_60 : f32 to vector<128x128xf32>
    %150 = arith.mulf %149, %148 : vector<128x128xf32>
    %cst_61 = arith.constant 1.000000e+00 : f32
    %151 = vector.broadcast %cst_61 : f32 to vector<128x128xf32>
    %152 = arith.subf %143, %151 : vector<128x128xf32>
    %153 = arith.mulf %150, %152 : vector<128x128xf32>
    %154 = arith.mulf %143, %143 : vector<128x128xf32>
    %cst_62 = arith.constant 6.15157478E-5 : f32
    %155 = vector.broadcast %cst_62 : f32 to vector<128x128xf32>
    %156 = arith.mulf %155, %154 : vector<128x128xf32>
    %157 = arith.select %146, %153, %156 : vector<128x128xi1>, vector<128x128xf32>
    %158 = vector.shape_cast %157 : vector<128x128xf32> to vector<1x128x128xf32>
    %cst_63 = arith.constant dense<0.000000e+00> : vector<1xf32>
    %159 = vector.multi_reduction <add>, %158, %cst_63 [1, 2] : vector<1x128x128xf32> to vector<1xf32>
    %160 = vector.shape_cast %159 : vector<1xf32> to vector<1x1x1xf32>
    %161 = vector.extract %160[0, 0, 0] : f32 from vector<1x1x1xf32>
    %162 = vector.broadcast %161 : f32 to vector<1x1xf32>
    %c0_64 = arith.constant 0 : index
    %c0_65 = arith.constant 0 : index
    %163 = vector.load %arg10[%c0_64, %c0_65] : memref<1x1xf32, #tpu.memory_space<vmem>>, vector<1x1xf32>
    tpu.vector_store %arg10[%c0_64, %c0_65], %162 {strides = array<i32>} : memref<1x1xf32, #tpu.memory_space<vmem>>, vector<1x1xf32>,
    return
  }
}

</mosaic_0001>

<bundles_post_ra>
// kernel: tpu_custom_call.1
= control target key start
LH: loop header
LB: loop body
LE: loop exit
PB: predicated region body
PF: predicated region fallthrough
CT: control target
= control target key end

     0   :  { %15 = vsyncpa [#allocation3], 0  ;;  %s6759_s0 = inlined_call_operand.vmem [shape: f32[64,2048], index: 0, kind: input, shape index: {}]   ;;  %s6760_s1 = inlined_call_operand.hbm [shape: f32[64,2048], index: 1, kind: input, shape index: {}]   ;;  %s6761_s2 = inlined_call_operand.vmem [shape: bf16[2048,32], index: 2, kind: input, shape index: {}]   ;;  %s6762_s3 = inlined_call_operand.vmem [shape: bf16[32,128], index: 3, kind: input, shape index: {}]   ;;  %s6763_s4 = inlined_call_operand.vmem [shape: f32[1,128], index: 4, kind: input, shape index: {}]   ;;  %s6764_s5 = inlined_call_operand.vmem [shape: f32[1,128], index: 5, kind: input, shape index: {}]   ;;  %s6765_s6 = inlined_call_operand.vmem [shape: bf16[128,128], index: 6, kind: input, shape index: {}]   ;;  %s6766_s7 = inlined_call_operand.vmem [shape: f32[1,128], index: 7, kind: input, shape index: {}]   ;;  %s6767_s8 = inlined_call_operand.vmem [shape: f32[1,128], index: 8, kind: input, shape index: {}]   ;;  %s6768_s9 = inlined_call_operand.vmem [shape: bf16[128,128], index: 9, kind: input, shape index: {}]   ;;  %s6769_s10 = inlined_call_operand.hbm [shape: f32[1,1], index: 10, kind: output, shape index: {}]  }
   0x1   :  { %16 = vsyncpa [#allocation4], 0  ;;  %s5209_s13 = smov [#allocation2]   ;;  %s5161_s17 = scalar_lea.hbm %s6760_s1, 16384 }
   0x2   :  { %s24_s14 = sshll.u32 %s5209_s13, 4  ;;  %p5162_p0 = scmp.ne.s32.totalorder %s6760_s1, %s5161_s17  ;;  %s25_s14 = int_to_ptr.vmem [resolvable:$true] %s24_s14 }
   0x3   :  { %p5165_p1 = scmp.lt.u32.totalorder %s5161_s17, %s6760_s1 }
   0x5   :  { %p5167_p2 = pnand %p5165_p1, %p5162_p0 }
   0x7   :  { %5170 = shalt.err (!%p5167_p2)
}
   0x8   :  { %s5171_s22 = scalar_lea.vmem %s25_s14, 16384  ;;  %p5176_p4 = scmp.lt.s32.totalorder %s25_s14, %s25_s14 }
   0x9   :  { %p5172_p3 = scmp.ne.s32.totalorder %s25_s14, %s5171_s22  ;;  %p5177_p5 = scmp.lt.s32.totalorder %s5171_s22, %s5171_s22 }
   0xb   :  { %p5178_p6 = por %p5177_p5, %p5176_p4 }
   0xd   :  { %p5179_p7 = pnand %p5178_p6, %p5172_p3 }
   0xf   :  { %5182 = shalt.err (!%p5179_p7)
}
  0x10   :  { %s5210_s23 = smov 2048   ;;  %s5211_s24 = smov 128  }
  0x11   :  { %30 = dma.hbm_to_vmem [thread:$0]  %s6760_s1, 16384, %s25_s14, [#allocation3], %s5210_s23, %s5210_s23, %s5211_s24  }
  0x12   :  { %5205 = dma.done.wait [#allocation3], 16384  }
  0x13   :  { %5206 = vsyncadd [#allocation3], 4294950912  ;;  %v4890_v0 = vld [vmem:[%s6761_s2 + $0x40] sm:$0xff]   ;;  %v4894_v4 = vld [vmem:[%s6761_s2 + $0x48] sm:$0xff]   ;;  %vm2523_vm0 = vcmask 261120   ;;  %vm3464_vm1 = vcmask 523264  }
  0x14   :  { %v4891_v1 = vld [vmem:[%s6761_s2 + $0xc0] sm:$0xff]   ;;  %4037 = vmatprep.subr.bf16.mxu0 %v4890_v0  ;;  %v4895_v5 = vld [vmem:[%s6761_s2 + $0xc8] sm:$0xff]   ;;  %v4898_v8 = vld [vmem:[%s6761_s2 + $0x50] sm:$0xff]  }
  0x15   :  { %v4892_v2 = vld [vmem:[%s6761_s2] sm:$0xff]   ;;  %4077 = vmatprep.subr.bf16.mxu1 %v4891_v1  ;;  %v4896_v6 = vld [vmem:[%s6761_s2 + $0x8] sm:$0xff]   ;;  %v4899_v9 = vld [vmem:[%s6761_s2 + $0xd0] sm:$0xff]  }
  0x16   :  { %v4893_v3 = vld [vmem:[%s6761_s2 + $0x80] sm:$0xff]   ;;  %4038 = vmatpush3.bf16.msra.mxu0 %v4892_v2  ;;  %v4897_v7 = vld [vmem:[%s6761_s2 + $0x88] sm:$0xff]   ;;  %v4900_v10 = vld [vmem:[%s6761_s2 + $0x10] sm:$0xff]  }
  0x17   :  { %4078 = vmatpush3.bf16.msra.mxu1 %v4893_v3  ;;  %4039 = vmatprep.subr.bf16.mxu0 %v4894_v4  ;;  %v4901_v11 = vld [vmem:[%s6761_s2 + $0x90] sm:$0xff]   ;;  %v4902_v12 = vld [vmem:[%s6761_s2 + $0x58] sm:$0xff]   ;;  %v4906_v16 = vld [vmem:[%s6761_s2 + $0x60] sm:$0xff]  }
  0x18   :  { %4079 = vmatprep.subr.bf16.mxu1 %v4895_v5  ;;  %v4903_v13 = vld [vmem:[%s6761_s2 + $0xd8] sm:$0xff]   ;;  %v4907_v17 = vld [vmem:[%s6761_s2 + $0xe0] sm:$0xff]   ;;  %v4910_v20 = vld [vmem:[%s6761_s2 + $0x68] sm:$0xff]  }
  0x19   :  { %v4904_v14 = vld [vmem:[%s6761_s2 + $0x18] sm:$0xff]   ;;  %v4908_v18 = vld [vmem:[%s6761_s2 + $0x20] sm:$0xff]   ;;  %v4911_v21 = vld [vmem:[%s6761_s2 + $0xe8] sm:$0xff]  }
  0x1a   :  { %4040 = vmatpush3.bf16.msra.mxu0 %v4896_v6  ;;  %v4905_v15 = vld [vmem:[%s6761_s2 + $0x98] sm:$0xff]   ;;  %v4909_v19 = vld [vmem:[%s6761_s2 + $0xa0] sm:$0xff]   ;;  %v4912_v22 = vld [vmem:[%s6761_s2 + $0x28] sm:$0xff]  }
  0x1b   :  { %4080 = vmatpush3.bf16.msra.mxu1 %v4897_v7  ;;  %4041 = vmatprep.subr.bf16.mxu0 %v4898_v8  ;;  %v4913_v23 = vld [vmem:[%s6761_s2 + $0xa8] sm:$0xff]   ;;  %v4914_v24 = vld [vmem:[%s6761_s2 + $0x70] sm:$0xff]   ;;  %v4918_v28 = vld [vmem:[%s6761_s2 + $0x78] sm:$0xff]  }
  0x1c   :  { %4081 = vmatprep.subr.bf16.mxu1 %v4899_v9  ;;  %v4915_v25 = vld [vmem:[%s6761_s2 + $0xf0] sm:$0xff]   ;;  %v4919_v29 = vld [vmem:[%s6761_s2 + $0xf8] sm:$0xff]   ;;  %v52_v32 = vld [vmem:[%s6759_s0 + $0x8] sm:$0xff] }
  0x1d   :  { %v4916_v26 = vld [vmem:[%s6761_s2 + $0x30] sm:$0xff]   ;;  %v4920_v30 = vld [vmem:[%s6761_s2 + $0x38] sm:$0xff]   ;;  %v68_v33 = vld [vmem:[%s6759_s0 + $0x88] sm:$0xff] }
  0x1e   :  { %4042 = vmatpush3.bf16.msra.mxu0 %v4900_v10  ;;  %v4917_v27 = vld [vmem:[%s6761_s2 + $0xb0] sm:$0xff]   ;;  %v4921_v31 = vld [vmem:[%s6761_s2 + $0xb8] sm:$0xff]   ;;  %v180_v35 = vpack.c.bf16 %v68_v33, %v52_v32  ;;  %v51_v37 = vld [vmem:[%s6759_s0] sm:$0xff] }
  0x1f   :  { %4082 = vmatpush3.bf16.msra.mxu1 %v4901_v11  ;;  %4043 = vmatprep.subr.bf16.mxu0 %v4902_v12  ;;  %v54_v34 = vld [vmem:[%s6759_s0 + $0x18] sm:$0xff]  ;;  %v67_v38 = vld [vmem:[%s6759_s0 + $0x80] sm:$0xff]  ;;  %v53_v41 = vld [vmem:[%s6759_s0 + $0x10] sm:$0xff] }
  0x20   :  { %4083 = vmatprep.subr.bf16.mxu1 %v4903_v13  ;;  %v70_v36 = vld [vmem:[%s6759_s0 + $0x98] sm:$0xff]  ;;  %v179_v40 = vpack.c.bf16 %v67_v38, %v51_v37  ;;  %v69_v42 = vld [vmem:[%s6759_s0 + $0x90] sm:$0xff]  ;;  %1299 = vmatprep.mubr.bf16.mxu0 %v180_v35  ;;  %v4922_v44 = vld [vmem:[%s6761_s2 + $0x140] sm:$0xff]  }
  0x21   :  { %v182_v39 = vpack.c.bf16 %v70_v36, %v54_v34  ;;  %v181_v43 = vpack.c.bf16 %v69_v42, %v53_v41  ;;  %v4923_v45 = vld [vmem:[%s6761_s2 + $0x1c0] sm:$0xff]   ;;  %v4926_v48 = vld [vmem:[%s6761_s2 + $0x148] sm:$0xff]   ;;  %v86_v54 = vld [vmem:[%s6759_s0 + $0x118] sm:$0xff] }
  0x22   :  { %4044 = vmatpush3.bf16.msra.mxu0 %v4904_v14  ;;  %v4924_v46 = vld [vmem:[%s6761_s2 + $0x100] sm:$0xff]   ;;  %v4927_v49 = vld [vmem:[%s6761_s2 + $0x1c8] sm:$0xff]   ;;  %v102_v55 = vld [vmem:[%s6759_s0 + $0x198] sm:$0xff] }
  0x23   :  { %4084 = vmatpush3.bf16.msra.mxu1 %v4905_v15  ;;  %4045 = vmatprep.subr.bf16.mxu0 %v4906_v16  ;;  %v4925_v47 = vld [vmem:[%s6761_s2 + $0x180] sm:$0xff]   ;;  %v4928_v50 = vld [vmem:[%s6761_s2 + $0x108] sm:$0xff]   ;;  %v198_v57 = vpack.c.bf16 %v102_v55, %v86_v54  ;;  %v85_v60 = vld [vmem:[%s6759_s0 + $0x110] sm:$0xff] }
  0x24   :  { %4085 = vmatprep.subr.bf16.mxu1 %v4907_v17  ;;  %1364 = vmatprep.mubr.bf16.mxu1 %v182_v39  ;;  %v4929_v51 = vld [vmem:[%s6761_s2 + $0x188] sm:$0xff]   ;;  %v83_v58 = vld [vmem:[%s6759_s0 + $0x100] sm:$0xff]  ;;  %v101_v62 = vld [vmem:[%s6759_s0 + $0x190] sm:$0xff] }
  0x25   :  { %v84_v52 = vld [vmem:[%s6759_s0 + $0x108] sm:$0xff]  ;;  %v99_v59 = vld [vmem:[%s6759_s0 + $0x180] sm:$0xff]  ;;  %v197_v63 = vpack.c.bf16 %v101_v62, %v85_v60  ;;  %v4930_v0 = vld [vmem:[%s6761_s2 + $0x150] sm:$0xff]  }
  0x26   :  { %4046 = vmatpush3.bf16.msra.mxu0 %v4908_v18  ;;  %v100_v53 = vld [vmem:[%s6759_s0 + $0x188] sm:$0xff]  ;;  %v195_v61 = vpack.c.bf16 %v99_v59, %v83_v58  ;;  %v4931_v1 = vld [vmem:[%s6761_s2 + $0x1d0] sm:$0xff]   ;;  %v4934_v4 = vld [vmem:[%s6761_s2 + $0x158] sm:$0xff]  }
  0x27   :  { %4086 = vmatpush3.bf16.msra.mxu1 %v4909_v19  ;;  %4047 = vmatprep.subr.bf16.mxu0 %v4910_v20  ;;  %v196_v56 = vpack.c.bf16 %v100_v53, %v84_v52  ;;  %v4932_v2 = vld [vmem:[%s6761_s2 + $0x110] sm:$0xff]   ;;  %v4935_v5 = vld [vmem:[%s6761_s2 + $0x1d8] sm:$0xff]   ;;  %v116_v8 = vld [vmem:[%s6759_s0 + $0x208] sm:$0xff] }
  0x28   :  { %4087 = vmatprep.subr.bf16.mxu1 %v4911_v21  ;;  %v4933_v3 = vld [vmem:[%s6761_s2 + $0x190] sm:$0xff]   ;;  %v4936_v6 = vld [vmem:[%s6761_s2 + $0x118] sm:$0xff]   ;;  %v132_v9 = vld [vmem:[%s6759_s0 + $0x288] sm:$0xff] }
  0x29   :  { %v4937_v7 = vld [vmem:[%s6761_s2 + $0x198] sm:$0xff]   ;;  %v212_v10 = vpack.c.bf16 %v132_v9, %v116_v8  ;;  %v115_v13 = vld [vmem:[%s6759_s0 + $0x200] sm:$0xff]  ;;  %v117_v16 = vld [vmem:[%s6759_s0 + $0x210] sm:$0xff] }
  0x2a   :  { %4048 = vmatpush3.bf16.msra.mxu0 %v4912_v22  ;;  %v118_v11 = vld [vmem:[%s6759_s0 + $0x218] sm:$0xff]  ;;  %v131_v15 = vld [vmem:[%s6759_s0 + $0x280] sm:$0xff]  ;;  %v133_v17 = vld [vmem:[%s6759_s0 + $0x290] sm:$0xff] }
  0x2b   :  { %4088 = vmatpush3.bf16.msra.mxu1 %v4913_v23  ;;  %4049 = vmatprep.subr.bf16.mxu0 %v4914_v24  ;;  %v134_v12 = vld [vmem:[%s6759_s0 + $0x298] sm:$0xff]  ;;  %v211_v18 = vpack.c.bf16 %v131_v15, %v115_v13  ;;  %v213_v19 = vpack.c.bf16 %v133_v17, %v117_v16  ;;  %v4938_v20 = vld [vmem:[%s6761_s2 + $0x160] sm:$0xff]   ;;  %v4942_v24 = vld [vmem:[%s6761_s2 + $0x168] sm:$0xff]  }
  0x2c   :  { %4089 = vmatprep.subr.bf16.mxu1 %v4915_v25  ;;  %v214_v14 = vpack.c.bf16 %v134_v12, %v118_v11  ;;  %v4939_v21 = vld [vmem:[%s6761_s2 + $0x1e0] sm:$0xff]   ;;  %v4943_v25 = vld [vmem:[%s6761_s2 + $0x1e8] sm:$0xff]   ;;  %v166_v32 = vld [vmem:[%s6759_s0 + $0x398] sm:$0xff] }
  0x2d   :  { %v4940_v22 = vld [vmem:[%s6761_s2 + $0x120] sm:$0xff]   ;;  %v149_v37 = vld [vmem:[%s6759_s0 + $0x310] sm:$0xff]  ;;  %v106_v8 = vld [vmem:[%s6759_s0 + $0x1b8] sm:$0xff] }
  0x2e   :  { %4050 = vmatpush3.bf16.msra.mxu0 %v4916_v26  ;;  %v4941_v23 = vld [vmem:[%s6761_s2 + $0x1a0] sm:$0xff]   ;;  %v4944_v26 = vld [vmem:[%s6761_s2 + $0x128] sm:$0xff]   ;;  %v165_v38 = vld [vmem:[%s6759_s0 + $0x390] sm:$0xff] }
  0x2f   :  { %4090 = vmatpush3.bf16.msra.mxu1 %v4917_v27  ;;  %4051 = vmatprep.subr.bf16.mxu0 %v4918_v28  ;;  %v4945_v27 = vld [vmem:[%s6761_s2 + $0x1a8] sm:$0xff]   ;;  %v147_v33 = vld [vmem:[%s6759_s0 + $0x300] sm:$0xff]  ;;  %v229_v39 = vpack.c.bf16 %v165_v38, %v149_v37  ;;  %v4947_v41 = vld [vmem:[%s6761_s2 + $0x1f0] sm:$0xff]  }
  0x30   :  { %4091 = vmatprep.subr.bf16.mxu1 %v4919_v29  ;;  %v148_v28 = vld [vmem:[%s6759_s0 + $0x308] sm:$0xff]  ;;  %v163_v34 = vld [vmem:[%s6759_s0 + $0x380] sm:$0xff]  ;;  %v4948_v42 = vld [vmem:[%s6761_s2 + $0x130] sm:$0xff]  }
  0x31   :  { %v164_v29 = vld [vmem:[%s6759_s0 + $0x388] sm:$0xff]  ;;  %v227_v36 = vpack.c.bf16 %v163_v34, %v147_v33  ;;  %v55_v54 = vld [vmem:[%s6759_s0 + $0x20] sm:$0xff]  ;;  %v73_v58 = vld [vmem:[%s6759_s0 + $0xb0] sm:$0xff] }
  0x32   :  { %4052 = vmatpush3.bf16.msra.mxu0 %v4920_v30  ;;  %v150_v30 = vld [vmem:[%s6759_s0 + $0x318] sm:$0xff]  ;;  %v71_v55 = vld [vmem:[%s6759_s0 + $0xa0] sm:$0xff]  ;;  %v89_v12 = vld [vmem:[%s6759_s0 + $0x130] sm:$0xff] }
  0x33   :  { %4092 = vmatpush3.bf16.msra.mxu1 %v4921_v31  ;;  %4117 = vmatprep.subr.bf16.mxu0 %v4922_v44  ;;  %v228_v31 = vpack.c.bf16 %v164_v29, %v148_v28  ;;  %v230_v35 = vpack.c.bf16 %v166_v32, %v150_v30  ;;  %v4950_v44 = vld [vmem:[%s6761_s2 + $0x178] sm:$0xff]   ;;  %v4954_v60 = vld [vmem:[%s6761_s2 + $0x240] sm:$0xff]   ;;  %v105_v13 = vld [vmem:[%s6759_s0 + $0x1b0] sm:$0xff] }
  0x34   :  { %4157 = vmatprep.subr.bf16.mxu1 %v4923_v45  ;;  %v4951_v45 = vld [vmem:[%s6761_s2 + $0x1f8] sm:$0xff]   ;;  %v4956_v62 = vld [vmem:[%s6761_s2 + $0x200] sm:$0xff]   ;;  %v201_v15 = vpack.c.bf16 %v105_v13, %v89_v12  ;;  %v4962_v16 = vld [vmem:[%s6761_s2 + $0x250] sm:$0xff]  }
  0x35   :  { %1300 = vmatmul.mubr.bf16.vlgmr.msra.gmra.mrb[0].mxu0 %v179_v40  ;;  %v4946_v40 = vld [vmem:[%s6761_s2 + $0x170] sm:$0xff]   ;;  %v87_v9 = vld [vmem:[%s6759_s0 + $0x120] sm:$0xff]  ;;  %v138_v28 = vld [vmem:[%s6759_s0 + $0x2b8] sm:$0xff] }
  0x36   :  { %1365 = vmatmul.mubr.bf16.vlgmr.msra.gmra.mrb[0].mxu1 %v181_v43  ;;  %4118 = vmatpush3.bf16.msra.mxu0 %v4924_v46  ;;  %v4949_v43 = vld [vmem:[%s6761_s2 + $0x1b0] sm:$0xff]   ;;  %v4952_v46 = vld [vmem:[%s6761_s2 + $0x138] sm:$0xff]   ;;  %v103_v11 = vld [vmem:[%s6759_s0 + $0x1a0] sm:$0xff] }
  0x37   :  { %4158 = vmatpush3.bf16.msra.mxu1 %v4925_v47  ;;  %4119 = vmatprep.subr.bf16.mxu0 %v4926_v48  ;;  %v4953_v47 = vld [vmem:[%s6761_s2 + $0x1b8] sm:$0xff]   ;;  %v56_v48 = vld [vmem:[%s6759_s0 + $0x28] sm:$0xff]  ;;  %v4963_v17 = vld [vmem:[%s6761_s2 + $0x2d0] sm:$0xff]  }
  0x38   :  { %4159 = vmatprep.subr.bf16.mxu1 %v4927_v49  ;;  %1307 = vmatprep.mubr.bf16.mxu0 %v196_v56  ;;  %v72_v49 = vld [vmem:[%s6759_s0 + $0xa8] sm:$0xff]  ;;  %v57_v56 = vld [vmem:[%s6759_s0 + $0x30] sm:$0xff]  ;;  %v119_v29 = vld [vmem:[%s6759_s0 + $0x220] sm:$0xff] }
  0x39   :  { %1372 = vmatprep.mubr.bf16.mxu1 %v198_v57  ;;  %v184_v52 = vpack.c.bf16 %v72_v49, %v56_v48  ;;  %v183_v57 = vpack.c.bf16 %v71_v55, %v55_v54  ;;  %v185_v59 = vpack.c.bf16 %v73_v58, %v57_v56  ;;  %v135_v30 = vld [vmem:[%s6759_s0 + $0x2a0] sm:$0xff]  ;;  %v121_v33 = vld [vmem:[%s6759_s0 + $0x230] sm:$0xff] }
  0x3a   :  { %4120 = vmatpush3.bf16.msra.mxu0 %v4928_v50  ;;  %v58_v50 = vld [vmem:[%s6759_s0 + $0x38] sm:$0xff]  ;;  %v215_v32 = vpack.c.bf16 %v135_v30, %v119_v29  ;;  %v137_v34 = vld [vmem:[%s6759_s0 + $0x2b0] sm:$0xff]  ;;  %v4971_v37 = vld [vmem:[%s6761_s2 + $0x2e0] sm:$0xff]  }
  0x3b   :  { %4160 = vmatpush3.bf16.msra.mxu1 %v4929_v51  ;;  %4121 = vmatprep.subr.bf16.mxu0 %v4930_v0  ;;  %v74_v51 = vld [vmem:[%s6759_s0 + $0xb8] sm:$0xff]  ;;  %v4958_v0 = vld [vmem:[%s6761_s2 + $0x248] sm:$0xff]   ;;  %v4972_v38 = vld [vmem:[%s6761_s2 + $0x220] sm:$0xff]  }
  0x3c   :  { %4161 = vmatprep.subr.bf16.mxu1 %v4931_v1  ;;  %v186_v53 = vpack.c.bf16 %v74_v51, %v58_v50  ;;  %v4959_v1 = vld [vmem:[%s6761_s2 + $0x2c8] sm:$0xff]   ;;  %v151_v50 = vld [vmem:[%s6759_s0 + $0x320] sm:$0xff]  ;;  %v169_v54 = vld [vmem:[%s6759_s0 + $0x3b0] sm:$0xff] }
  0x3d   :  { %1308 = vmatmul.mubr.bf16.gmra.mrb[4].mxu0 %v195_v61  ;;  %v4955_v61 = vld [vmem:[%s6761_s2 + $0x2c0] sm:$0xff]   ;;  %v4978_v56 = vld [vmem:[%s6761_s2 + $0x270] sm:$0xff]  }
  0x3e   :  { %1373 = vmatmul.mubr.bf16.gmra.mrb[4].mxu1 %v197_v63  ;;  %4122 = vmatpush3.bf16.msra.mxu0 %v4932_v2  ;;  %v4957_v63 = vld [vmem:[%s6761_s2 + $0x280] sm:$0xff]   ;;  %v4960_v2 = vld [vmem:[%s6761_s2 + $0x208] sm:$0xff]   ;;  %v4980_v58 = vld [vmem:[%s6761_s2 + $0x230] sm:$0xff]  }
  0x3f   :  { %4162 = vmatpush3.bf16.msra.mxu1 %v4933_v3  ;;  %4123 = vmatprep.subr.bf16.mxu0 %v4934_v4  ;;  %v4961_v3 = vld [vmem:[%s6761_s2 + $0x288] sm:$0xff]   ;;  %v167_v51 = vld [vmem:[%s6759_s0 + $0x3a0] sm:$0xff]  ;;  %v93_v29 = vld [vmem:[%s6759_s0 + $0x150] sm:$0xff] }
  0x40   :  { %4163 = vmatprep.subr.bf16.mxu1 %v4935_v5  ;;  %1315 = vmatprep.mubr.bf16.mxu0 %v212_v10  ;;  %v88_v4 = vld [vmem:[%s6759_s0 + $0x128] sm:$0xff]  ;;  %v4986_v12 = vld [vmem:[%s6761_s2 + $0x340] sm:$0xff]   ;;  %v109_v30 = vld [vmem:[%s6759_s0 + $0x1d0] sm:$0xff] }
  0x41   :  { %1380 = vmatprep.mubr.bf16.mxu1 %v214_v14  ;;  %v104_v5 = vld [vmem:[%s6759_s0 + $0x1a8] sm:$0xff]  ;;  %v199_v14 = vpack.c.bf16 %v103_v11, %v87_v9  ;;  %v77_v9 = vld [vmem:[%s6759_s0 + $0xd0] sm:$0xff]  ;;  %v4987_v13 = vld [vmem:[%s6761_s2 + $0x3c0] sm:$0xff]  }
  0x42   :  { %4124 = vmatpush3.bf16.msra.mxu0 %v4936_v6  ;;  %v200_v6 = vpack.c.bf16 %v104_v5, %v88_v4  ;;  %v78_v4 = vld [vmem:[%s6759_s0 + $0xd8] sm:$0xff]  ;;  %v59_v5 = vld [vmem:[%s6759_s0 + $0x40] sm:$0xff] }
  0x43   :  { %4164 = vmatpush3.bf16.msra.mxu1 %v4937_v7  ;;  %4125 = vmatprep.subr.bf16.mxu0 %v4938_v20  ;;  %v90_v7 = vld [vmem:[%s6759_s0 + $0x138] sm:$0xff] }
  0x44   :  { %4165 = vmatprep.subr.bf16.mxu1 %v4939_v21  ;;  %v202_v10 = vpack.c.bf16 %v106_v8, %v90_v7  ;;  %v4966_v20 = vld [vmem:[%s6761_s2 + $0x258] sm:$0xff]   ;;  %v75_v7 = vld [vmem:[%s6759_s0 + $0xc0] sm:$0xff]  ;;  %v61_v8 = vld [vmem:[%s6759_s0 + $0x50] sm:$0xff] }
  0x45   :  { %1316 = vmatmul.mubr.bf16.gmra.mrb[8].mxu0 %v211_v18  ;;  %v4964_v18 = vld [vmem:[%s6761_s2 + $0x210] sm:$0xff]   ;;  %v4967_v21 = vld [vmem:[%s6761_s2 + $0x2d8] sm:$0xff]   ;;  %v189_v11 = vpack.c.bf16 %v77_v9, %v61_v8 }
  0x46   :  { %1381 = vmatmul.mubr.bf16.gmra.mrb[8].mxu1 %v213_v19  ;;  %4126 = vmatpush3.bf16.msra.mxu0 %v4940_v22  ;;  %v4965_v19 = vld [vmem:[%s6761_s2 + $0x290] sm:$0xff]   ;;  %v4968_v22 = vld [vmem:[%s6761_s2 + $0x218] sm:$0xff]  }
  0x47   :  { %4166 = vmatpush3.bf16.msra.mxu1 %v4941_v23  ;;  %4127 = vmatprep.subr.bf16.mxu0 %v4942_v24  ;;  %v4969_v23 = vld [vmem:[%s6761_s2 + $0x298] sm:$0xff]   ;;  %v120_v24 = vld [vmem:[%s6759_s0 + $0x228] sm:$0xff]  ;;  %v5952_v8 = vld [vmem:[%s6761_s2 + $0x370] sm:$0xff]  }
  0x48   :  { %4167 = vmatprep.subr.bf16.mxu1 %v4943_v25  ;;  %1323 = vmatprep.mubr.bf16.mxu0 %v228_v31  ;;  %v136_v25 = vld [vmem:[%s6759_s0 + $0x2a8] sm:$0xff]  ;;  %v5957_v9 = vld [vmem:[%s6761_s2 + $0x3f0] sm:$0xff]  }
  0x49   :  { %1388 = vmatprep.mubr.bf16.mxu1 %v230_v35  ;;  %v217_v35 = vpack.c.bf16 %v137_v34, %v121_v33  ;;  %v4995_v33 = vld [vmem:[%s6761_s2 + $0x3d0] sm:$0xff]  }
  0x4a   :  { %4128 = vmatpush3.bf16.msra.mxu0 %v4944_v26  ;;  %v122_v26 = vld [vmem:[%s6759_s0 + $0x238] sm:$0xff]  ;;  %v4996_v34 = vld [vmem:[%s6761_s2 + $0x310] sm:$0xff]  }
  0x4b   :  { %4168 = vmatpush3.bf16.msra.mxu1 %v4945_v27  ;;  %4129 = vmatprep.subr.bf16.mxu0 %v4946_v40  ;;  %v216_v27 = vpack.c.bf16 %v136_v25, %v120_v24  ;;  %v218_v31 = vpack.c.bf16 %v138_v28, %v122_v26  ;;  %v4974_v40 = vld [vmem:[%s6761_s2 + $0x268] sm:$0xff]   ;;  %v110_v24 = vld [vmem:[%s6759_s0 + $0x1d8] sm:$0xff]  ;;  %v91_v25 = vld [vmem:[%s6759_s0 + $0x140] sm:$0xff] }
  0x4c   :  { %4169 = vmatprep.subr.bf16.mxu1 %v4947_v41  ;;  %v4975_v41 = vld [vmem:[%s6761_s2 + $0x2e8] sm:$0xff]   ;;  %v107_v26 = vld [vmem:[%s6759_s0 + $0x1c0] sm:$0xff] }
  0x4d   :  { %1324 = vmatmul.mubr.bf16.gmra.mrb[12].mxu0 %v227_v36  ;;  %v4970_v36 = vld [vmem:[%s6761_s2 + $0x260] sm:$0xff]   ;;  %v203_v28 = vpack.c.bf16 %v107_v26, %v91_v25  ;;  %v65_v26 = vld [vmem:[%s6759_s0 + $0x70] sm:$0xff] }
  0x4e   :  { %1389 = vmatmul.mubr.bf16.gmra.mrb[12].mxu1 %v229_v39  ;;  %4130 = vmatpush3.bf16.msra.mxu0 %v4948_v42  ;;  %v4973_v39 = vld [vmem:[%s6761_s2 + $0x2a0] sm:$0xff]   ;;  %v4976_v42 = vld [vmem:[%s6761_s2 + $0x228] sm:$0xff]  }
  0x4f   :  { %4170 = vmatpush3.bf16.msra.mxu1 %v4949_v43  ;;  %4131 = vmatprep.subr.bf16.mxu0 %v4950_v44  ;;  %v4977_v43 = vld [vmem:[%s6761_s2 + $0x2a8] sm:$0xff]  }
  0x50   :  { %4171 = vmatprep.subr.bf16.mxu1 %v4951_v45  ;;  %1429 = vmatprep.mubr.bf16.mxu0 %v184_v52  ;;  %v152_v44 = vld [vmem:[%s6759_s0 + $0x328] sm:$0xff]  ;;  %v153_v52 = vld [vmem:[%s6759_s0 + $0x330] sm:$0xff] }
  0x51   :  { %1494 = vmatprep.mubr.bf16.mxu1 %v186_v53  ;;  %v168_v45 = vld [vmem:[%s6759_s0 + $0x3a8] sm:$0xff]  ;;  %v231_v53 = vpack.c.bf16 %v167_v51, %v151_v50  ;;  %v233_v55 = vpack.c.bf16 %v169_v54, %v153_v52  ;;  %v141_v50 = vld [vmem:[%s6759_s0 + $0x2d0] sm:$0xff]  ;;  %v5883_v52 = vld [vmem:[%s6761_s2 + $0x360] sm:$0xff]  }
  0x52   :  { %4132 = vmatpush3.bf16.msra.mxu0 %v4952_v46  ;;  %v154_v46 = vld [vmem:[%s6759_s0 + $0x338] sm:$0xff]  ;;  %v232_v48 = vpack.c.bf16 %v168_v45, %v152_v44  ;;  %v5894_v54 = vld [vmem:[%s6761_s2 + $0x320] sm:$0xff]  }
  0x53   :  { %4172 = vmatpush3.bf16.msra.mxu1 %v4953_v47  ;;  %4197 = vmatprep.subr.bf16.mxu0 %v4954_v60  ;;  %v170_v47 = vld [vmem:[%s6759_s0 + $0x3b8] sm:$0xff] }
  0x54   :  { %4237 = vmatprep.subr.bf16.mxu1 %v4955_v61  ;;  %v234_v49 = vpack.c.bf16 %v170_v47, %v154_v46  ;;  %v4982_v60 = vld [vmem:[%s6761_s2 + $0x278] sm:$0xff]   ;;  %v123_v46 = vld [vmem:[%s6759_s0 + $0x240] sm:$0xff] }
  0x55   :  { %1430 = vmatmul.mubr.bf16.vlgmr.msra.gmra.mrb[16].mxu0 %v183_v57  ;;  %v4979_v57 = vld [vmem:[%s6761_s2 + $0x2f0] sm:$0xff]   ;;  %v4983_v61 = vld [vmem:[%s6761_s2 + $0x2f8] sm:$0xff]   ;;  %v139_v47 = vld [vmem:[%s6759_s0 + $0x2c0] sm:$0xff] }
  0x56   :  { %1495 = vmatmul.mubr.bf16.vlgmr.msra.gmra.mrb[16].mxu1 %v185_v59  ;;  %4198 = vmatpush3.bf16.msra.mxu0 %v4956_v62  ;;  %v4981_v59 = vld [vmem:[%s6761_s2 + $0x2b0] sm:$0xff]   ;;  %v4984_v62 = vld [vmem:[%s6761_s2 + $0x238] sm:$0xff]  }
  0x57   :  { %4238 = vmatpush3.bf16.msra.mxu1 %v4957_v63  ;;  %4199 = vmatprep.subr.bf16.mxu0 %v4958_v0  ;;  %v4985_v63 = vld [vmem:[%s6761_s2 + $0x2b8] sm:$0xff]   ;;  %v60_v0 = vld [vmem:[%s6759_s0 + $0x48] sm:$0xff] }
  0x58   :  { %4239 = vmatprep.subr.bf16.mxu1 %v4959_v1  ;;  %1437 = vmatprep.mubr.bf16.mxu0 %v200_v6  ;;  %v76_v1 = vld [vmem:[%s6759_s0 + $0xc8] sm:$0xff] }
  0x59   :  { %1502 = vmatprep.mubr.bf16.mxu1 %v202_v10  ;;  %v187_v10 = vpack.c.bf16 %v75_v7, %v59_v5  ;;  %v173_v5 = vld [vmem:[%s6759_s0 + $0x3d0] sm:$0xff] }
  0x5a   :  { %4200 = vmatpush3.bf16.msra.mxu0 %v4960_v2  ;;  %v188_v2 = vpack.c.bf16 %v76_v1, %v60_v0  ;;  %v174_v0 = vld [vmem:[%s6759_s0 + $0x3d8] sm:$0xff]  ;;  %v155_v1 = vld [vmem:[%s6759_s0 + $0x340] sm:$0xff] }
  0x5b   :  { %4240 = vmatpush3.bf16.msra.mxu1 %v4961_v3  ;;  %4201 = vmatprep.subr.bf16.mxu0 %v4962_v16  ;;  %v62_v3 = vld [vmem:[%s6759_s0 + $0x58] sm:$0xff]  ;;  %v4990_v16 = vld [vmem:[%s6761_s2 + $0x348] sm:$0xff]  }
  0x5c   :  { %4241 = vmatprep.subr.bf16.mxu1 %v4963_v17  ;;  %v190_v6 = vpack.c.bf16 %v78_v4, %v62_v3  ;;  %v4991_v17 = vld [vmem:[%s6761_s2 + $0x3c8] sm:$0xff]   ;;  %v171_v3 = vld [vmem:[%s6759_s0 + $0x3c0] sm:$0xff]  ;;  %v157_v4 = vld [vmem:[%s6759_s0 + $0x350] sm:$0xff] }
  0x5d   :  { %1438 = vmatmul.mubr.bf16.gmra.mrb[20].mxu0 %v199_v14  ;;  %v4988_v14 = vld [vmem:[%s6761_s2 + $0x300] sm:$0xff]   ;;  %v237_v7 = vpack.c.bf16 %v173_v5, %v157_v4  ;;  %v129_v4 = vld [vmem:[%s6759_s0 + $0x270] sm:$0xff] }
  0x5e   :  { %1503 = vmatmul.mubr.bf16.gmra.mrb[20].mxu1 %v201_v15  ;;  %4202 = vmatpush3.bf16.msra.mxu0 %v4964_v18  ;;  %v4989_v15 = vld [vmem:[%s6761_s2 + $0x380] sm:$0xff]   ;;  %v4992_v18 = vld [vmem:[%s6761_s2 + $0x308] sm:$0xff]   ;;  %v145_v5 = vld [vmem:[%s6759_s0 + $0x2f0] sm:$0xff] }
  0x5f   :  { %4242 = vmatpush3.bf16.msra.mxu1 %v4965_v19  ;;  %4203 = vmatprep.subr.bf16.mxu0 %v4966_v20  ;;  %v4993_v19 = vld [vmem:[%s6761_s2 + $0x388] sm:$0xff]  }
  0x60   :  { %4243 = vmatprep.subr.bf16.mxu1 %v4967_v21  ;;  %1445 = vmatprep.mubr.bf16.mxu0 %v216_v27  ;;  %v92_v20 = vld [vmem:[%s6759_s0 + $0x148] sm:$0xff] }
  0x61   :  { %1510 = vmatprep.mubr.bf16.mxu1 %v218_v31  ;;  %v108_v21 = vld [vmem:[%s6759_s0 + $0x1c8] sm:$0xff]  ;;  %v205_v31 = vpack.c.bf16 %v109_v30, %v93_v29 }
  0x62   :  { %4204 = vmatpush3.bf16.msra.mxu0 %v4968_v22  ;;  %v94_v22 = vld [vmem:[%s6759_s0 + $0x158] sm:$0xff]  ;;  %v96_v29 = vld [vmem:[%s6759_s0 + $0x168] sm:$0xff] }
  0x63   :  { %4244 = vmatpush3.bf16.msra.mxu1 %v4969_v23  ;;  %4205 = vmatprep.subr.bf16.mxu0 %v4970_v36  ;;  %v204_v23 = vpack.c.bf16 %v108_v21, %v92_v20  ;;  %v206_v27 = vpack.c.bf16 %v110_v24, %v94_v22  ;;  %v4998_v36 = vld [vmem:[%s6761_s2 + $0x358] sm:$0xff]   ;;  %v63_v21 = vld [vmem:[%s6759_s0 + $0x60] sm:$0xff] }
  0x64   :  { %4245 = vmatprep.subr.bf16.mxu1 %v4971_v37  ;;  %v4999_v37 = vld [vmem:[%s6761_s2 + $0x3d8] sm:$0xff]   ;;  %v79_v22 = vld [vmem:[%s6759_s0 + $0xe0] sm:$0xff] }
  0x65   :  { %1446 = vmatmul.mubr.bf16.gmra.mrb[24].mxu0 %v215_v32  ;;  %v4994_v32 = vld [vmem:[%s6761_s2 + $0x350] sm:$0xff]   ;;  %v82_v20 = vld [vmem:[%s6759_s0 + $0xf8] sm:$0xff]  ;;  %v191_v25 = vpack.c.bf16 %v79_v22, %v63_v21 }
  0x66   :  { %1511 = vmatmul.mubr.bf16.gmra.mrb[24].mxu1 %v217_v35  ;;  %4206 = vmatpush3.bf16.msra.mxu0 %v4972_v38  ;;  %v4997_v35 = vld [vmem:[%s6761_s2 + $0x390] sm:$0xff]   ;;  %v5000_v38 = vld [vmem:[%s6761_s2 + $0x318] sm:$0xff]  }
  0x67   :  { %4246 = vmatpush3.bf16.msra.mxu1 %v4973_v39  ;;  %4207 = vmatprep.subr.bf16.mxu0 %v4974_v40  ;;  %v5001_v39 = vld [vmem:[%s6761_s2 + $0x398] sm:$0xff]   ;;  %v124_v40 = vld [vmem:[%s6759_s0 + $0x248] sm:$0xff] }
  0x68   :  { %4247 = vmatprep.subr.bf16.mxu1 %v4975_v41  ;;  %1453 = vmatprep.mubr.bf16.mxu0 %v232_v48  ;;  %v140_v41 = vld [vmem:[%s6759_s0 + $0x2c8] sm:$0xff]  ;;  %v125_v48 = vld [vmem:[%s6759_s0 + $0x250] sm:$0xff]  ;;  %v178_v21 = vld [vmem:[%s6759_s0 + $0x3f8] sm:$0xff] }
  0x69   :  { %1518 = vmatprep.mubr.bf16.mxu1 %v234_v49  ;;  %v220_v44 = vpack.c.bf16 %v140_v41, %v124_v40  ;;  %v219_v49 = vpack.c.bf16 %v139_v47, %v123_v46  ;;  %v221_v51 = vpack.c.bf16 %v141_v50, %v125_v48  ;;  %v5052_v40 = vld [vmem:[%s6761_s2 + $0x48] sm:$0xff]   ;;  %v97_v41 = vld [vmem:[%s6759_s0 + $0x170] sm:$0xff]  ;;  %v146_v50 = vld [vmem:[%s6759_s0 + $0x2f8] sm:$0xff] }
  0x6a   :  { %4208 = vmatpush3.bf16.msra.mxu0 %v4976_v42  ;;  %v126_v42 = vld [vmem:[%s6759_s0 + $0x258] sm:$0xff]  ;;  %v144_v46 = vld [vmem:[%s6759_s0 + $0x2e8] sm:$0xff] }
  0x6b   :  { %4248 = vmatpush3.bf16.msra.mxu1 %v4977_v43  ;;  %4209 = vmatprep.subr.bf16.mxu0 %v4978_v56  ;;  %v142_v43 = vld [vmem:[%s6759_s0 + $0x2d8] sm:$0xff]  ;;  %v5906_v56 = vld [vmem:[%s6761_s2 + $0x368] sm:$0xff]  }
  0x6c   :  { %4249 = vmatprep.subr.bf16.mxu1 %v4979_v57  ;;  %v222_v45 = vpack.c.bf16 %v142_v43, %v126_v42  ;;  %v5912_v57 = vld [vmem:[%s6761_s2 + $0x3e8] sm:$0xff]   ;;  %v113_v42 = vld [vmem:[%s6759_s0 + $0x1f0] sm:$0xff]  ;;  %v5063_v22 = vld [vmem:[%s6761_s2 + $0x98] sm:$0xff]  }
  0x6d   :  { %1454 = vmatmul.mubr.bf16.gmra.mrb[28].mxu0 %v231_v53  ;;  %v5888_v53 = vld [vmem:[%s6761_s2 + $0x3e0] sm:$0xff]   ;;  %v5053_v43 = vld [vmem:[%s6761_s2 + $0xc8] sm:$0xff]   ;;  %v209_v48 = vpack.c.bf16 %v113_v42, %v97_v41  ;;  %v1806_v41 = vld [vmem:[#allocation2 + $0x98] sm:$0xff] }
  0x6e   :  { %1519 = vmatmul.mubr.bf16.gmra.mrb[28].mxu1 %v233_v55  ;;  %4210 = vmatpush3.bf16.msra.mxu0 %v4980_v58  ;;  %v5900_v55 = vld [vmem:[%s6761_s2 + $0x3a0] sm:$0xff]   ;;  %v5918_v58 = vld [vmem:[%s6761_s2 + $0x328] sm:$0xff]  }
  0x6f   :  { %4250 = vmatpush3.bf16.msra.mxu1 %v4981_v59  ;;  %4211 = vmatprep.subr.bf16.mxu0 %v4982_v60  ;;  %v5009_v59 = vld [vmem:[%s6761_s2 + $0x3a8] sm:$0xff]  }
  0x70   :  { %4251 = vmatprep.subr.bf16.mxu1 %v4983_v61  ;;  %1559 = vmatprep.mubr.bf16.mxu0 %v188_v2  ;;  %v156_v60 = vld [vmem:[%s6759_s0 + $0x348] sm:$0xff] }
  0x71   :  { %1624 = vmatprep.mubr.bf16.mxu1 %v190_v6  ;;  %v172_v61 = vld [vmem:[%s6759_s0 + $0x3c8] sm:$0xff]  ;;  %v235_v6 = vpack.c.bf16 %v171_v3, %v155_v1  ;;  %v143_v1 = vld [vmem:[%s6759_s0 + $0x2e0] sm:$0xff]  ;;  %v5060_v3 = vld [vmem:[%s6761_s2 + $0x58] sm:$0xff]  }
  0x72   :  { %4212 = vmatpush3.bf16.msra.mxu0 %v4984_v62  ;;  %v236_v62 = vpack.c.bf16 %v172_v61, %v156_v60  ;;  %v5054_v47 = vld [vmem:[%s6761_s2 + $0x8] sm:$0xff]   ;;  %v5057_v60 = vld [vmem:[%s6761_s2 + $0xd0] sm:$0xff]  }
  0x73   :  { %4252 = vmatpush3.bf16.msra.mxu1 %v4985_v63  ;;  %4277 = vmatprep.subr.bf16.mxu0 %v4986_v12  ;;  %v158_v63 = vld [vmem:[%s6759_s0 + $0x358] sm:$0xff]  ;;  %v5071_v42 = vld [vmem:[%s6761_s2 + $0xa8] sm:$0xff]  }
  0x74   :  { %4317 = vmatprep.subr.bf16.mxu1 %v4987_v13  ;;  %v238_v2 = vpack.c.bf16 %v174_v0, %v158_v63  ;;  %v5975_v12 = vld [vmem:[%s6761_s2 + $0x378] sm:$0xff]   ;;  %v5058_v63 = vld [vmem:[%s6761_s2 + $0x10] sm:$0xff]   ;;  %v127_v0 = vld [vmem:[%s6759_s0 + $0x260] sm:$0xff] }
  0x75   :  { %1560 = vmatmul.mubr.bf16.vlgmr.msra.gmra.mrb[32].mxu0 %v187_v10  ;;  %v5962_v10 = vld [vmem:[%s6761_s2 + $0x330] sm:$0xff]   ;;  %v5981_v13 = vld [vmem:[%s6761_s2 + $0x3f8] sm:$0xff]  }
  0x76   :  { %1625 = vmatmul.mubr.bf16.vlgmr.msra.gmra.mrb[32].mxu1 %v189_v11  ;;  %4278 = vmatpush3.bf16.msra.mxu0 %v4988_v14  ;;  %v5969_v11 = vld [vmem:[%s6761_s2 + $0x3b0] sm:$0xff]   ;;  %v5987_v14 = vld [vmem:[%s6761_s2 + $0x338] sm:$0xff]  }
  0x77   :  { %4318 = vmatpush3.bf16.msra.mxu1 %v4989_v15  ;;  %4279 = vmatprep.subr.bf16.mxu0 %v4990_v16  ;;  %v5993_v15 = vld [vmem:[%s6761_s2 + $0x3b8] sm:$0xff]   ;;  %v64_v16 = vld [vmem:[%s6759_s0 + $0x68] sm:$0xff] }
  0x78   :  { %4319 = vmatprep.subr.bf16.mxu1 %v4991_v17  ;;  %1567 = vmatprep.mubr.bf16.mxu0 %v204_v23  ;;  %v80_v17 = vld [vmem:[%s6759_s0 + $0xe8] sm:$0xff]  ;;  %v5048_v23 = vld [vmem:[%s6761_s2 + $0x40] sm:$0xff]  }
  0x79   :  { %1632 = vmatprep.mubr.bf16.mxu1 %v206_v27  ;;  %v81_v27 = vld [vmem:[%s6759_s0 + $0xf0] sm:$0xff] }
  0x7a   :  { %4280 = vmatpush3.bf16.msra.mxu0 %v4992_v18  ;;  %v66_v18 = vld [vmem:[%s6759_s0 + $0x78] sm:$0xff]  ;;  %v193_v30 = vpack.c.bf16 %v81_v27, %v65_v26  ;;  %v5066_v27 = vld [vmem:[%s6761_s2 + $0x20] sm:$0xff]  }
  0x7b   :  { %4320 = vmatpush3.bf16.msra.mxu1 %v4993_v19  ;;  %4281 = vmatprep.subr.bf16.mxu0 %v4994_v32  ;;  %v192_v19 = vpack.c.bf16 %v80_v17, %v64_v16  ;;  %v194_v24 = vpack.c.bf16 %v82_v20, %v66_v18  ;;  %v98_v32 = vld [vmem:[%s6759_s0 + $0x178] sm:$0xff]  ;;  %v160_v16 = vld [vmem:[%s6759_s0 + $0x368] sm:$0xff] }
  0x7c   :  { %4321 = vmatprep.subr.bf16.mxu1 %v4995_v33  ;;  %v114_v33 = vld [vmem:[%s6759_s0 + $0x1f8] sm:$0xff]  ;;  %v176_v17 = vld [vmem:[%s6759_s0 + $0x3e8] sm:$0xff] }
  0x7d   :  { %1568 = vmatmul.mubr.bf16.gmra.mrb[36].mxu0 %v203_v28  ;;  %v5049_v28 = vld [vmem:[%s6761_s2 + $0xc0] sm:$0xff]   ;;  %v5062_v18 = vld [vmem:[%s6761_s2 + $0x18] sm:$0xff]  }
  0x7e   :  { %1633 = vmatmul.mubr.bf16.gmra.mrb[36].mxu1 %v205_v31  ;;  %4282 = vmatpush3.bf16.msra.mxu0 %v4996_v34  ;;  %v112_v31 = vld [vmem:[%s6759_s0 + $0x1e8] sm:$0xff]  ;;  %v162_v20 = vld [vmem:[%s6759_s0 + $0x378] sm:$0xff] }
  0x7f   :  { %4322 = vmatpush3.bf16.msra.mxu1 %v4997_v35  ;;  %4283 = vmatprep.subr.bf16.mxu0 %v4998_v36  ;;  %v208_v34 = vpack.c.bf16 %v112_v31, %v96_v29  ;;  %v210_v35 = vpack.c.bf16 %v114_v33, %v98_v32  ;;  %v5050_v36 = vld [vmem:[%s6761_s2] sm:$0xff]   ;;  %v242_v26 = vpack.c.bf16 %v178_v21, %v162_v20  ;;  %v5068_v31 = vld [vmem:[%s6761_s2 + $0x68] sm:$0xff]   ;;  %v161_v32 = vld [vmem:[%s6759_s0 + $0x370] sm:$0xff] }
  0x80   :  { %4323 = vmatprep.subr.bf16.mxu1 %v4999_v37  ;;  %1575 = vmatprep.mubr.bf16.mxu0 %v220_v44  ;;  %v95_v37 = vld [vmem:[%s6759_s0 + $0x160] sm:$0xff]  ;;  %v177_v33 = vld [vmem:[%s6759_s0 + $0x3f0] sm:$0xff] }
  0x81   :  { %1640 = vmatprep.mubr.bf16.mxu1 %v222_v45  ;;  %v128_v45 = vld [vmem:[%s6759_s0 + $0x268] sm:$0xff]  ;;  %v175_v29 = vld [vmem:[%s6759_s0 + $0x3e0] sm:$0xff] }
  0x82   :  { %4284 = vmatpush3.bf16.msra.mxu0 %v5000_v38  ;;  %v111_v38 = vld [vmem:[%s6759_s0 + $0x1e0] sm:$0xff]  ;;  %v224_v61 = vpack.c.bf16 %v144_v46, %v128_v45 }
  0x83   :  { %4324 = vmatpush3.bf16.msra.mxu1 %v5001_v39  ;;  %4285 = vmatprep.subr.bf16.mxu0 %v5883_v52  ;;  %v5051_v39 = vld [vmem:[%s6761_s2 + $0x80] sm:$0xff]   ;;  %v207_v44 = vpack.c.bf16 %v111_v38, %v95_v37  ;;  %v1804_v37 = vld [vmem:[#allocation2 + $0x88] sm:$0xff] }
  0x84   :  { %4325 = vmatprep.subr.bf16.mxu1 %v5888_v53  ;;  %v5070_v38 = vld [vmem:[%s6761_s2 + $0x28] sm:$0xff]   ;;  %v1835_v20 = vld [vmem:[#allocation2 + $0x180] sm:$0xff] }
  0x85   :  { %1576 = vmatmul.mubr.bf16.gmra.mrb[40].mxu0 %v219_v49  ;;  %v130_v49 = vld [vmem:[%s6759_s0 + $0x278] sm:$0xff]  ;;  %v5083_v21 = vld [vmem:[%s6761_s2 + $0x180] sm:$0xff]  }
  0x86   :  { %1641 = vmatmul.mubr.bf16.gmra.mrb[40].mxu1 %v221_v51  ;;  %4286 = vmatpush3.bf16.msra.mxu0 %v5894_v54  ;;  %v5055_v51 = vld [vmem:[%s6761_s2 + $0x88] sm:$0xff]  }
  0x87   :  { %4326 = vmatpush3.bf16.msra.mxu1 %v5900_v55  ;;  %4287 = vmatprep.subr.bf16.mxu0 %v5906_v56 }
  0x88   :  { %4327 = vmatprep.subr.bf16.mxu1 %v5912_v57  ;;  %1583 = vmatprep.mubr.bf16.mxu0 %v236_v62  ;;  %v226_v62 = vpack.c.bf16 %v146_v50, %v130_v49  ;;  %v1803_v49 = vld [vmem:[#allocation2 + $0x80] sm:$0xff]  ;;  %v5075_v50 = vld [vmem:[%s6761_s2 + $0xb0] sm:$0xff]  }
  0x89   :  { %1648 = vmatprep.mubr.bf16.mxu1 %v238_v2  ;;  %v5059_v2 = vld [vmem:[%s6761_s2 + $0x90] sm:$0xff]  }
  0x8a   :  { %4288 = vmatpush3.bf16.msra.mxu0 %v5918_v58 }
  0x8b   :  { %4328 = vmatpush3.bf16.msra.mxu1 %v5009_v59  ;;  %4289 = vmatprep.subr.bf16.mxu0 %v5952_v8  ;;  %v5056_v59 = vld [vmem:[%s6761_s2 + $0x50] sm:$0xff]  }
  0x8c   :  { %4329 = vmatprep.subr.bf16.mxu1 %v5957_v9 }
  0x8d   :  { %1584 = vmatmul.mubr.bf16.gmra.mrb[44].mxu0 %v235_v6  ;;  %v5061_v6 = vld [vmem:[%s6761_s2 + $0xd8] sm:$0xff]  }
  0x8e   :  { %1649 = vmatmul.mubr.bf16.gmra.mrb[44].mxu1 %v237_v7  ;;  %4290 = vmatpush3.bf16.msra.mxu0 %v5962_v10  ;;  %v223_v7 = vpack.c.bf16 %v143_v1, %v127_v0  ;;  %v1836_v0 = vld [vmem:[#allocation2 + $0x188] sm:$0xff]  ;;  %v5078_v1 = vld [vmem:[%s6761_s2 + $0x38] sm:$0xff]  }
  0x8f   :  { %4330 = vmatpush3.bf16.msra.mxu1 %v5969_v11  ;;  %4291 = vmatprep.subr.bf16.mxu0 %v5975_v12 }
  0x90   :  { %4331 = vmatprep.subr.bf16.mxu1 %v5981_v13  ;;  %1689 = vmatprep.mubr.bf16.mxu0 %v192_v19  ;;  %v225_v19 = vpack.c.bf16 %v145_v5, %v129_v4  ;;  %v1838_v4 = vld [vmem:[#allocation2 + $0x198] sm:$0xff] }
  0x91   :  { %1754 = vmatprep.mubr.bf16.mxu1 %v194_v24  ;;  %v5065_v24 = vld [vmem:[%s6761_s2 + $0xe0] sm:$0xff]   ;;  %v5079_v5 = vld [vmem:[%s6761_s2 + $0xb8] sm:$0xff]  }
  0x92   :  { %4292 = vmatpush3.bf16.msra.mxu0 %v5987_v14 }
  0x93   :  { %4332 = vmatpush3.bf16.msra.mxu1 %v5993_v15  ;;  %4357 = vmatprep.subr.bf16.mxu0 %v5048_v23  ;;  %v5064_v23 = vld [vmem:[%s6761_s2 + $0x60] sm:$0xff]  }
  0x94   :  { %4397 = vmatprep.subr.bf16.mxu1 %v5049_v28  ;;  %v159_v28 = vld [vmem:[%s6759_s0 + $0x360] sm:$0xff] }
  0x95   :  { %1690 = vmatmul.mubr.bf16.vlgmr.msra.gmra.mrb[48].mxu0 %v191_v25  ;;  %v240_v25 = vpack.c.bf16 %v176_v17, %v160_v16 }
  0x96   :  { %1755 = vmatmul.mubr.bf16.vlgmr.msra.gmra.mrb[48].mxu1 %v193_v30  ;;  %4358 = vmatpush3.bf16.msra.mxu0 %v5050_v36  ;;  %v5067_v30 = vld [vmem:[%s6761_s2 + $0xa0] sm:$0xff]   ;;  %v1788_v36 = vld [vmem:[#allocation2 + $0x8] sm:$0xff] }
  0x97   :  { %4398 = vmatpush3.bf16.msra.mxu1 %v5051_v39  ;;  %4359 = vmatprep.subr.bf16.mxu0 %v5052_v40  ;;  %v241_v39 = vpack.c.bf16 %v177_v33, %v161_v32  ;;  %v1790_v40 = vld [vmem:[#allocation2 + $0x18] sm:$0xff]  ;;  %v1916_v45 = vpack.c.bf16 %v1804_v37, %v1788_v36  ;;  %v5087_v33 = vld [vmem:[%s6761_s2 + $0x188] sm:$0xff]  }
  0x98   :  { %4399 = vmatprep.subr.bf16.mxu1 %v5053_v43  ;;  %1697 = vmatprep.mubr.bf16.mxu0 %v208_v34  ;;  %v5069_v34 = vld [vmem:[%s6761_s2 + $0xe8] sm:$0xff]   ;;  %v5072_v43 = vld [vmem:[%s6761_s2 + $0x70] sm:$0xff]   ;;  %v1918_v46 = vpack.c.bf16 %v1806_v41, %v1790_v40  ;;  %v1870_v32 = vld [vmem:[#allocation2 + $0x298] sm:$0xff] }
  0x99   :  { %1762 = vmatprep.mubr.bf16.mxu1 %v210_v35  ;;  %v239_v35 = vpack.c.bf16 %v175_v29, %v159_v28  ;;  %v1868_v28 = vld [vmem:[#allocation2 + $0x288] sm:$0xff]  ;;  %v1867_v40 = vld [vmem:[#allocation2 + $0x280] sm:$0xff]  ;;  %v5091_v41 = vld [vmem:[%s6761_s2 + $0x190] sm:$0xff]  }
  0x9a   :  { %4360 = vmatpush3.bf16.msra.mxu0 %v5054_v47  ;;  %v5074_v47 = vld [vmem:[%s6761_s2 + $0x30] sm:$0xff]   ;;  %v5086_v29 = vld [vmem:[%s6761_s2 + $0x108] sm:$0xff]  }
  0x9b   :  { %4400 = vmatpush3.bf16.msra.mxu1 %v5055_v51  ;;  %4361 = vmatprep.subr.bf16.mxu0 %v5056_v59  ;;  %v5076_v51 = vld [vmem:[%s6761_s2 + $0x78] sm:$0xff]   ;;  %v1789_v59 = vld [vmem:[#allocation2 + $0x10] sm:$0xff] }
  0x9c   :  { %4401 = vmatprep.subr.bf16.mxu1 %v5057_v60  ;;  %v1805_v60 = vld [vmem:[#allocation2 + $0x90] sm:$0xff] }
  0x9d   :  { %1698 = vmatmul.mubr.bf16.gmra.mrb[52].mxu0 %v207_v44  ;;  %v5073_v44 = vld [vmem:[%s6761_s2 + $0xf0] sm:$0xff]  }
  0x9e   :  { %1763 = vmatmul.mubr.bf16.gmra.mrb[52].mxu1 %v209_v48  ;;  %4362 = vmatpush3.bf16.msra.mxu0 %v5058_v63  ;;  %v1787_v48 = vld [vmem:[#allocation2] sm:$0xff]  ;;  %v1820_v63 = vld [vmem:[#allocation2 + $0x108] sm:$0xff] }
  0x9f   :  { %4402 = vmatpush3.bf16.msra.mxu1 %v5059_v2  ;;  %4363 = vmatprep.subr.bf16.mxu0 %v5060_v3  ;;  %v1917_v2 = vpack.c.bf16 %v1805_v60, %v1789_v59  ;;  %v1822_v3 = vld [vmem:[#allocation2 + $0x118] sm:$0xff]  ;;  %v1932_v16 = vpack.c.bf16 %v1836_v0, %v1820_v63 }
  0xa0   :  { %4403 = vmatprep.subr.bf16.mxu1 %v5061_v6  ;;  %1705 = vmatprep.mubr.bf16.mxu0 %v224_v61  ;;  %v5077_v61 = vld [vmem:[%s6761_s2 + $0xf8] sm:$0xff]   ;;  %v5080_v6 = vld [vmem:[%s6761_s2 + $0x140] sm:$0xff]   ;;  %v1934_v17 = vpack.c.bf16 %v1838_v4, %v1822_v3  ;;  %v1885_v3 = vld [vmem:[#allocation2 + $0x310] sm:$0xff] }
  0xa1   :  { %1770 = vmatprep.mubr.bf16.mxu1 %v226_v62  ;;  %v1915_v62 = vpack.c.bf16 %v1803_v49, %v1787_v48  ;;  %v1900_v48 = vld [vmem:[#allocation2 + $0x388] sm:$0xff]  ;;  %v5094_v49 = vld [vmem:[%s6761_s2 + $0x118] sm:$0xff]   ;;  %v5098_v4 = vld [vmem:[%s6761_s2 + $0x120] sm:$0xff]  }
  0xa2   :  { %4364 = vmatpush3.bf16.msra.mxu0 %v5062_v18  ;;  %v5082_v18 = vld [vmem:[%s6761_s2 + $0x100] sm:$0xff]   ;;  %v1902_v59 = vld [vmem:[#allocation2 + $0x398] sm:$0xff] }
  0xa3   :  { %4404 = vmatpush3.bf16.msra.mxu1 %v5063_v22  ;;  %4365 = vmatprep.subr.bf16.mxu0 %v5064_v23  ;;  %v5084_v22 = vld [vmem:[%s6761_s2 + $0x148] sm:$0xff]   ;;  %v1821_v23 = vld [vmem:[#allocation2 + $0x110] sm:$0xff]  ;;  %v5095_v60 = vld [vmem:[%s6761_s2 + $0x198] sm:$0xff]  }
  0xa4   :  { %4405 = vmatprep.subr.bf16.mxu1 %v5065_v24  ;;  %v1837_v24 = vld [vmem:[#allocation2 + $0x190] sm:$0xff] }
  0xa5   :  { %1706 = vmatmul.mubr.bf16.gmra.mrb[56].mxu0 %v223_v7  ;;  %v5081_v7 = vld [vmem:[%s6761_s2 + $0x1c0] sm:$0xff]  }
  0xa6   :  { %1771 = vmatmul.mubr.bf16.gmra.mrb[56].mxu1 %v225_v19  ;;  %4366 = vmatpush3.bf16.msra.mxu0 %v5066_v27  ;;  %v1819_v19 = vld [vmem:[#allocation2 + $0x100] sm:$0xff]  ;;  %v1852_v27 = vld [vmem:[#allocation2 + $0x208] sm:$0xff] }
  0xa7   :  { %4406 = vmatpush3.bf16.msra.mxu1 %v5067_v30  ;;  %4367 = vmatprep.subr.bf16.mxu0 %v5068_v31  ;;  %v1933_v30 = vpack.c.bf16 %v1837_v24, %v1821_v23  ;;  %v1854_v31 = vld [vmem:[#allocation2 + $0x218] sm:$0xff]  ;;  %v1948_v36 = vpack.c.bf16 %v1868_v28, %v1852_v27  ;;  %v5103_v24 = vld [vmem:[%s6761_s2 + $0x1a8] sm:$0xff]   ;;  %v1791_v28 = vld [vmem:[#allocation2 + $0x20] sm:$0xff] }
  0xa8   :  { %4407 = vmatprep.subr.bf16.mxu1 %v5069_v34  ;;  %1713 = vmatprep.mubr.bf16.mxu0 %v240_v25  ;;  %v5085_v25 = vld [vmem:[%s6761_s2 + $0x1c8] sm:$0xff]   ;;  %v5088_v34 = vld [vmem:[%s6761_s2 + $0x150] sm:$0xff]   ;;  %v1950_v37 = vpack.c.bf16 %v1870_v32, %v1854_v31 }
  0xa9   :  { %1778 = vmatprep.mubr.bf16.mxu1 %v242_v26  ;;  %v1931_v26 = vpack.c.bf16 %v1835_v20, %v1819_v19  ;;  %v1794_v19 = vld [vmem:[#allocation2 + $0x38] sm:$0xff]  ;;  %v1793_v31 = vld [vmem:[#allocation2 + $0x30] sm:$0xff] }
  0xaa   :  { %4368 = vmatpush3.bf16.msra.mxu0 %v5070_v38  ;;  %v5090_v38 = vld [vmem:[%s6761_s2 + $0x110] sm:$0xff]   ;;  %v1810_v20 = vld [vmem:[#allocation2 + $0xb8] sm:$0xff] }
  0xab   :  { %4408 = vmatpush3.bf16.msra.mxu1 %v5071_v42  ;;  %4369 = vmatprep.subr.bf16.mxu0 %v5072_v43  ;;  %v5092_v42 = vld [vmem:[%s6761_s2 + $0x158] sm:$0xff]   ;;  %v1853_v43 = vld [vmem:[#allocation2 + $0x210] sm:$0xff] }
  0xac   :  { %4409 = vmatprep.subr.bf16.mxu1 %v5073_v44  ;;  %v1869_v44 = vld [vmem:[#allocation2 + $0x290] sm:$0xff] }
  0xad   :  { %1714 = vmatmul.mubr.bf16.gmra.mrb[60].mxu0 %v239_v35  ;;  %v5089_v35 = vld [vmem:[%s6761_s2 + $0x1d0] sm:$0xff]  }
  0xae   :  { %1779 = vmatmul.mubr.bf16.gmra.mrb[60].mxu1 %v241_v39  ;;  %4370 = vmatpush3.bf16.msra.mxu0 %v5074_v47  ;;  %v1851_v39 = vld [vmem:[#allocation2 + $0x200] sm:$0xff]  ;;  %v1884_v47 = vld [vmem:[#allocation2 + $0x308] sm:$0xff]  ;;  %v1809_v32 = vld [vmem:[#allocation2 + $0xb0] sm:$0xff] }
  0xaf   :  { %4410 = vmatpush3.bf16.msra.mxu1 %v5075_v50  ;;  %4371 = vmatprep.subr.bf16.mxu0 %v5076_v51  ;;  %v1949_v50 = vpack.c.bf16 %v1869_v44, %v1853_v43  ;;  %v1886_v51 = vld [vmem:[#allocation2 + $0x318] sm:$0xff]  ;;  %v1964_v63 = vpack.c.bf16 %v1900_v48, %v1884_v47 }
  0xb0   :  { %4411 = vmatprep.subr.bf16.mxu1 %v5077_v61  ;;  %2011 = vmatprep.mubr.bf16.mxu0 %v1916_v45  ;;  %v5093_v45 = vld [vmem:[%s6761_s2 + $0x1d8] sm:$0xff]   ;;  %v5096_v61 = vld [vmem:[%s6761_s2 + $0x160] sm:$0xff]   ;;  %v1966_v0 = vpack.c.bf16 %v1902_v59, %v1886_v51 }
  0xb1   :  { %2076 = vmatprep.mubr.bf16.mxu1 %v1918_v46  ;;  %v1947_v46 = vpack.c.bf16 %v1867_v40, %v1851_v39  ;;  %v5110_v40 = vld [vmem:[%s6761_s2 + $0x138] sm:$0xff]   ;;  %v1839_v51 = vld [vmem:[#allocation2 + $0x1a0] sm:$0xff] }
  0xb2   :  { %4372 = vmatpush3.bf16.msra.mxu0 %v5078_v1  ;;  %v1883_v1 = vld [vmem:[#allocation2 + $0x300] sm:$0xff]  ;;  %v1842_v43 = vld [vmem:[#allocation2 + $0x1b8] sm:$0xff] }
  0xb3   :  { %4412 = vmatpush3.bf16.msra.mxu1 %v5079_v5  ;;  %4437 = vmatprep.subr.bf16.mxu0 %v5080_v6  ;;  %v1901_v5 = vld [vmem:[#allocation2 + $0x390] sm:$0xff]  ;;  %v5099_v6 = vld [vmem:[%s6761_s2 + $0x1a0] sm:$0xff]   ;;  %v5111_v44 = vld [vmem:[%s6761_s2 + $0x1b8] sm:$0xff]  }
  0xb4   :  { %4477 = vmatprep.subr.bf16.mxu1 %v5081_v7  ;;  %v5100_v7 = vld [vmem:[%s6761_s2 + $0x168] sm:$0xff]   ;;  %v1965_v23 = vpack.c.bf16 %v1901_v5, %v1885_v3  ;;  %v5115_v59 = vld [vmem:[%s6761_s2 + $0x280] sm:$0xff]   ;;  %v1858_v5 = vld [vmem:[#allocation2 + $0x238] sm:$0xff] }
  0xb5   :  { %2012 = vmatmul.mubr.bf16.vlgmr.msra.gmra.mrb[64].mxu0 %v1915_v62  ;;  %v5097_v62 = vld [vmem:[%s6761_s2 + $0x1e0] sm:$0xff]   ;;  %v5118_v3 = vld [vmem:[%s6761_s2 + $0x208] sm:$0xff]  }
  0xb6   :  { %2077 = vmatmul.mubr.bf16.vlgmr.msra.gmra.mrb[64].mxu1 %v1917_v2  ;;  %4438 = vmatpush3.bf16.msra.mxu0 %v5082_v18  ;;  %v1899_v2 = vld [vmem:[#allocation2 + $0x380] sm:$0xff]  ;;  %v5101_v18 = vld [vmem:[%s6761_s2 + $0x1e8] sm:$0xff]  }
  0xb7   :  { %4478 = vmatpush3.bf16.msra.mxu1 %v5083_v21  ;;  %4439 = vmatprep.subr.bf16.mxu0 %v5084_v22  ;;  %v1963_v21 = vpack.c.bf16 %v1899_v2, %v1883_v1  ;;  %v5102_v22 = vld [vmem:[%s6761_s2 + $0x128] sm:$0xff]  }
  0xb8   :  { %4479 = vmatprep.subr.bf16.mxu1 %v5085_v25  ;;  %2019 = vmatprep.mubr.bf16.mxu0 %v1932_v16  ;;  %v1792_v16 = vld [vmem:[#allocation2 + $0x28] sm:$0xff]  ;;  %v5104_v25 = vld [vmem:[%s6761_s2 + $0x170] sm:$0xff]  }
  0xb9   :  { %2084 = vmatprep.mubr.bf16.mxu1 %v1934_v17  ;;  %v1808_v17 = vld [vmem:[#allocation2 + $0xa8] sm:$0xff] }
  0xba   :  { %4440 = vmatpush3.bf16.msra.mxu0 %v5086_v29  ;;  %v1920_v27 = vpack.c.bf16 %v1808_v17, %v1792_v16  ;;  %v1807_v29 = vld [vmem:[#allocation2 + $0xa0] sm:$0xff]  ;;  %v1856_v1 = vld [vmem:[#allocation2 + $0x228] sm:$0xff]  ;;  %v5120_v16 = vld [vmem:[%s6761_s2 + $0x250] sm:$0xff]  }
  0xbb   :  { %4480 = vmatpush3.bf16.msra.mxu1 %v5087_v33  ;;  %4441 = vmatprep.subr.bf16.mxu0 %v5088_v34  ;;  %v5106_v33 = vld [vmem:[%s6761_s2 + $0x130] sm:$0xff]   ;;  %v1919_v39 = vpack.c.bf16 %v1807_v29, %v1791_v28  ;;  %v1872_v2 = vld [vmem:[#allocation2 + $0x2a8] sm:$0xff] }
  0xbc   :  { %4481 = vmatprep.subr.bf16.mxu1 %v5089_v35  ;;  %v5107_v34 = vld [vmem:[%s6761_s2 + $0x1b0] sm:$0xff]   ;;  %v5108_v35 = vld [vmem:[%s6761_s2 + $0x178] sm:$0xff]   ;;  %v1888_v29 = vld [vmem:[#allocation2 + $0x328] sm:$0xff] }
  0xbd   :  { %2020 = vmatmul.mubr.bf16.gmra.mrb[68].mxu0 %v1931_v26  ;;  %v5105_v26 = vld [vmem:[%s6761_s2 + $0x1f0] sm:$0xff]  }
  0xbe   :  { %2085 = vmatmul.mubr.bf16.gmra.mrb[68].mxu1 %v1933_v30  ;;  %4442 = vmatpush3.bf16.msra.mxu0 %v5090_v38  ;;  %v1922_v30 = vpack.c.bf16 %v1810_v20, %v1794_v19  ;;  %v5109_v38 = vld [vmem:[%s6761_s2 + $0x1f8] sm:$0xff]   ;;  %v5121_v17 = vld [vmem:[%s6761_s2 + $0x2d0] sm:$0xff]  }
  0xbf   :  { %4482 = vmatpush3.bf16.msra.mxu1 %v5091_v41  ;;  %4443 = vmatprep.subr.bf16.mxu0 %v5092_v42  ;;  %v1921_v41 = vpack.c.bf16 %v1809_v32, %v1793_v31  ;;  %v1826_v42 = vld [vmem:[#allocation2 + $0x138] sm:$0xff]  ;;  %v5122_v20 = vld [vmem:[%s6761_s2 + $0x210] sm:$0xff]  }
  0xc0   :  { %4483 = vmatprep.subr.bf16.mxu1 %v5093_v45  ;;  %2027 = vmatprep.mubr.bf16.mxu0 %v1948_v36  ;;  %v1824_v36 = vld [vmem:[#allocation2 + $0x128] sm:$0xff]  ;;  %v5112_v45 = vld [vmem:[%s6761_s2 + $0x240] sm:$0xff]   ;;  %v1938_v48 = vpack.c.bf16 %v1842_v43, %v1826_v42  ;;  %v5126_v31 = vld [vmem:[%s6761_s2 + $0x218] sm:$0xff]  }
  0xc1   :  { %2092 = vmatprep.mubr.bf16.mxu1 %v1950_v37  ;;  %v1840_v37 = vld [vmem:[#allocation2 + $0x1a8] sm:$0xff]  ;;  %v1903_v42 = vld [vmem:[#allocation2 + $0x3a0] sm:$0xff] }
  0xc2   :  { %4444 = vmatpush3.bf16.msra.mxu0 %v5094_v49  ;;  %v1936_v47 = vpack.c.bf16 %v1840_v37, %v1824_v36  ;;  %v5114_v49 = vld [vmem:[%s6761_s2 + $0x200] sm:$0xff]  }
  0xc3   :  { %4484 = vmatpush3.bf16.msra.mxu1 %v5095_v60  ;;  %4445 = vmatprep.subr.bf16.mxu0 %v5096_v61  ;;  %v5116_v60 = vld [vmem:[%s6761_s2 + $0x248] sm:$0xff]   ;;  %v1825_v61 = vld [vmem:[#allocation2 + $0x130] sm:$0xff]  ;;  %v5128_v36 = vld [vmem:[%s6761_s2 + $0x260] sm:$0xff]  }
  0xc4   :  { %4485 = vmatprep.subr.bf16.mxu1 %v5097_v62  ;;  %v1841_v62 = vld [vmem:[#allocation2 + $0x1b0] sm:$0xff]  ;;  %v5129_v37 = vld [vmem:[%s6761_s2 + $0x2e0] sm:$0xff]  }
  0xc5   :  { %2028 = vmatmul.mubr.bf16.gmra.mrb[72].mxu0 %v1947_v46  ;;  %v5113_v46 = vld [vmem:[%s6761_s2 + $0x2c0] sm:$0xff]  }
  0xc6   :  { %2093 = vmatmul.mubr.bf16.gmra.mrb[72].mxu1 %v1949_v50  ;;  %4446 = vmatpush3.bf16.msra.mxu0 %v5098_v4  ;;  %v1823_v50 = vld [vmem:[#allocation2 + $0x120] sm:$0xff]  ;;  %v1937_v4 = vpack.c.bf16 %v1841_v62, %v1825_v61  ;;  %v5134_v61 = vld [vmem:[%s6761_s2 + $0x228] sm:$0xff]  }
  0xc7   :  { %4486 = vmatpush3.bf16.msra.mxu1 %v5099_v6  ;;  %4447 = vmatprep.subr.bf16.mxu0 %v5100_v7  ;;  %v1874_v6 = vld [vmem:[#allocation2 + $0x2b8] sm:$0xff]  ;;  %v5119_v7 = vld [vmem:[%s6761_s2 + $0x288] sm:$0xff]   ;;  %v5131_v43 = vld [vmem:[%s6761_s2 + $0x2a0] sm:$0xff]  }
  0xc8   :  { %4487 = vmatprep.subr.bf16.mxu1 %v5101_v18  ;;  %2035 = vmatprep.mubr.bf16.mxu0 %v1964_v63  ;;  %v5117_v63 = vld [vmem:[%s6761_s2 + $0x2c8] sm:$0xff]   ;;  %v1952_v18 = vpack.c.bf16 %v1872_v2, %v1856_v1  ;;  %v1954_v19 = vpack.c.bf16 %v1874_v6, %v1858_v5  ;;  %v5136_v5 = vld [vmem:[%s6761_s2 + $0x270] sm:$0xff]  }
  0xc9   :  { %2100 = vmatprep.mubr.bf16.mxu1 %v1966_v0  ;;  %v1935_v0 = vpack.c.bf16 %v1839_v51, %v1823_v50  ;;  %v1796_v50 = vld [vmem:[#allocation2 + $0x48] sm:$0xff] }
  0xca   :  { %4448 = vmatpush3.bf16.msra.mxu0 %v5102_v22  ;;  %v1871_v22 = vld [vmem:[#allocation2 + $0x2a0] sm:$0xff]  ;;  %v1812_v51 = vld [vmem:[#allocation2 + $0xc8] sm:$0xff] }
  0xcb   :  { %4488 = vmatpush3.bf16.msra.mxu1 %v5103_v24  ;;  %4449 = vmatprep.subr.bf16.mxu0 %v5104_v25  ;;  %v5124_v24 = vld [vmem:[%s6761_s2 + $0x258] sm:$0xff]   ;;  %v1857_v25 = vld [vmem:[#allocation2 + $0x230] sm:$0xff] }
  0xcc   :  { %4489 = vmatprep.subr.bf16.mxu1 %v5105_v26  ;;  %v1873_v26 = vld [vmem:[#allocation2 + $0x2b0] sm:$0xff] }
  0xcd   :  { %2036 = vmatmul.mubr.bf16.gmra.mrb[76].mxu0 %v1963_v21  ;;  %v1855_v21 = vld [vmem:[#allocation2 + $0x220] sm:$0xff]  ;;  %v1953_v32 = vpack.c.bf16 %v1873_v26, %v1857_v25 }
  0xce   :  { %2101 = vmatmul.mubr.bf16.gmra.mrb[76].mxu1 %v1965_v23  ;;  %4450 = vmatpush3.bf16.msra.mxu0 %v5106_v33  ;;  %v5123_v23 = vld [vmem:[%s6761_s2 + $0x290] sm:$0xff]   ;;  %v1951_v28 = vpack.c.bf16 %v1871_v22, %v1855_v21  ;;  %v1890_v33 = vld [vmem:[#allocation2 + $0x338] sm:$0xff]  ;;  %v1795_v25 = vld [vmem:[#allocation2 + $0x40] sm:$0xff] }
  0xcf   :  { %4490 = vmatpush3.bf16.msra.mxu1 %v5107_v34  ;;  %4451 = vmatprep.subr.bf16.mxu0 %v5108_v35  ;;  %v1906_v34 = vld [vmem:[#allocation2 + $0x3b8] sm:$0xff]  ;;  %v1811_v26 = vld [vmem:[#allocation2 + $0xc0] sm:$0xff] }
  0xd0   :  { %4491 = vmatprep.subr.bf16.mxu1 %v5109_v38  ;;  %2141 = vmatprep.mubr.bf16.mxu0 %v1920_v27  ;;  %v5125_v27 = vld [vmem:[%s6761_s2 + $0x2d8] sm:$0xff]  }
  0xd1   :  { %2206 = vmatprep.mubr.bf16.mxu1 %v1922_v30  ;;  %v1904_v30 = vld [vmem:[#allocation2 + $0x3a8] sm:$0xff]  ;;  %v5127_v35 = vld [vmem:[%s6761_s2 + $0x298] sm:$0xff]  }
  0xd2   :  { %4452 = vmatpush3.bf16.msra.mxu0 %v5110_v40  ;;  %v1968_v38 = vpack.c.bf16 %v1904_v30, %v1888_v29  ;;  %v5130_v40 = vld [vmem:[%s6761_s2 + $0x220] sm:$0xff]   ;;  %v1797_v29 = vld [vmem:[#allocation2 + $0x50] sm:$0xff] }
  0xd3   :  { %4492 = vmatpush3.bf16.msra.mxu1 %v5111_v44  ;;  %4517 = vmatprep.subr.bf16.mxu0 %v5112_v45  ;;  %v5132_v44 = vld [vmem:[%s6761_s2 + $0x268] sm:$0xff]   ;;  %v1889_v45 = vld [vmem:[#allocation2 + $0x330] sm:$0xff] }
  0xd4   :  { %4557 = vmatprep.subr.bf16.mxu1 %v5113_v46  ;;  %v1905_v46 = vld [vmem:[#allocation2 + $0x3b0] sm:$0xff] }
  0xd5   :  { %2142 = vmatmul.mubr.bf16.vlgmr.msra.gmra.mrb[80].mxu0 %v1919_v39  ;;  %v1970_v39 = vpack.c.bf16 %v1906_v34, %v1890_v33  ;;  %v1969_v62 = vpack.c.bf16 %v1905_v46, %v1889_v45  ;;  %v1813_v30 = vld [vmem:[#allocation2 + $0xd0] sm:$0xff]  ;;  %v1923_v33 = vpack.c.bf16 %v1811_v26, %v1795_v25  ;;  %v1828_v34 = vld [vmem:[#allocation2 + $0x148] sm:$0xff] }
  0xd6   :  { %2207 = vmatmul.mubr.bf16.vlgmr.msra.gmra.mrb[80].mxu1 %v1921_v41  ;;  %4518 = vmatpush3.bf16.msra.mxu0 %v5114_v49  ;;  %v1887_v41 = vld [vmem:[#allocation2 + $0x320] sm:$0xff]  ;;  %v5151_v26 = vld [vmem:[%s6761_s2 + $0x388] sm:$0xff]  }
  0xd7   :  { %4558 = vmatpush3.bf16.msra.mxu1 %v5115_v59  ;;  %4519 = vmatprep.subr.bf16.mxu0 %v5116_v60  ;;  %v1967_v49 = vpack.c.bf16 %v1903_v42, %v1887_v41  ;;  %v5144_v41 = vld [vmem:[%s6761_s2 + $0x340] sm:$0xff]  }
  0xd8   :  { %4559 = vmatprep.subr.bf16.mxu1 %v5117_v63  ;;  %2149 = vmatprep.mubr.bf16.mxu0 %v1936_v47  ;;  %v5133_v47 = vld [vmem:[%s6761_s2 + $0x2e8] sm:$0xff]   ;;  %v1798_v63 = vld [vmem:[#allocation2 + $0x58] sm:$0xff] }
  0xd9   :  { %2214 = vmatprep.mubr.bf16.mxu1 %v1938_v48 }
  0xda   :  { %4520 = vmatpush3.bf16.msra.mxu0 %v5118_v3 }
  0xdb   :  { %4560 = vmatpush3.bf16.msra.mxu1 %v5119_v7  ;;  %4521 = vmatprep.subr.bf16.mxu0 %v5120_v16 }
  0xdc   :  { %4561 = vmatprep.subr.bf16.mxu1 %v5121_v17  ;;  %v5137_v17 = vld [vmem:[%s6761_s2 + $0x2f0] sm:$0xff]  }
  0xdd   :  { %2150 = vmatmul.mubr.bf16.gmra.mrb[84].mxu0 %v1935_v0  ;;  %v1814_v0 = vld [vmem:[#allocation2 + $0xd8] sm:$0xff] }
  0xde   :  { %2215 = vmatmul.mubr.bf16.gmra.mrb[84].mxu1 %v1937_v4  ;;  %4522 = vmatpush3.bf16.msra.mxu0 %v5122_v20  ;;  %v5135_v4 = vld [vmem:[%s6761_s2 + $0x2a8] sm:$0xff]   ;;  %v1926_v21 = vpack.c.bf16 %v1814_v0, %v1798_v63  ;;  %v5147_v0 = vld [vmem:[%s6761_s2 + $0x380] sm:$0xff]  }
  0xdf   :  { %4562 = vmatpush3.bf16.msra.mxu1 %v5123_v23  ;;  %4523 = vmatprep.subr.bf16.mxu0 %v5124_v24  ;;  %v5138_v24 = vld [vmem:[%s6761_s2 + $0x230] sm:$0xff]  }
  0xe0   :  { %4563 = vmatprep.subr.bf16.mxu1 %v5125_v27  ;;  %2157 = vmatprep.mubr.bf16.mxu0 %v1952_v18  ;;  %v1924_v18 = vpack.c.bf16 %v1812_v51, %v1796_v50  ;;  %v5139_v27 = vld [vmem:[%s6761_s2 + $0x2b0] sm:$0xff]   ;;  %v5146_v51 = vld [vmem:[%s6761_s2 + $0x300] sm:$0xff]  }
  0xe1   :  { %2222 = vmatprep.mubr.bf16.mxu1 %v1954_v19 }
  0xe2   :  { %4524 = vmatpush3.bf16.msra.mxu0 %v5126_v31 }
  0xe3   :  { %4564 = vmatpush3.bf16.msra.mxu1 %v5127_v35  ;;  %4525 = vmatprep.subr.bf16.mxu0 %v5128_v36  ;;  %v1844_v35 = vld [vmem:[#allocation2 + $0x1c8] sm:$0xff]  ;;  %v5142_v36 = vld [vmem:[%s6761_s2 + $0x238] sm:$0xff]  }
  0xe4   :  { %4565 = vmatprep.subr.bf16.mxu1 %v5129_v37  ;;  %v1925_v37 = vpack.c.bf16 %v1813_v30, %v1797_v29 }
  0xe5   :  { %2158 = vmatmul.mubr.bf16.gmra.mrb[88].mxu0 %v1951_v28  ;;  %v5140_v28 = vld [vmem:[%s6761_s2 + $0x278] sm:$0xff]  }
  0xe6   :  { %2223 = vmatmul.mubr.bf16.gmra.mrb[88].mxu1 %v1953_v32  ;;  %4526 = vmatpush3.bf16.msra.mxu0 %v5130_v40  ;;  %v5141_v32 = vld [vmem:[%s6761_s2 + $0x2f8] sm:$0xff]  }
  0xe7   :  { %4566 = vmatpush3.bf16.msra.mxu1 %v5131_v43  ;;  %4527 = vmatprep.subr.bf16.mxu0 %v5132_v44  ;;  %v5143_v40 = vld [vmem:[%s6761_s2 + $0x2b8] sm:$0xff]   ;;  %v5145_v43 = vld [vmem:[%s6761_s2 + $0x3c0] sm:$0xff]   ;;  %v1940_v44 = vpack.c.bf16 %v1844_v35, %v1828_v34 }
  0xe8   :  { %4567 = vmatprep.subr.bf16.mxu1 %v5133_v47  ;;  %2165 = vmatprep.mubr.bf16.mxu0 %v1968_v38  ;;  %v1830_v38 = vld [vmem:[#allocation2 + $0x158] sm:$0xff]  ;;  %v1875_v34 = vld [vmem:[#allocation2 + $0x2c0] sm:$0xff] }
  0xe9   :  { %2230 = vmatprep.mubr.bf16.mxu1 %v1970_v39  ;;  %v1846_v39 = vld [vmem:[#allocation2 + $0x1d8] sm:$0xff] }
  0xea   :  { %4528 = vmatpush3.bf16.msra.mxu0 %v5134_v61  ;;  %v1942_v47 = vpack.c.bf16 %v1846_v39, %v1830_v38  ;;  %v5156_v38 = vld [vmem:[%s6761_s2 + $0x358] sm:$0xff]   ;;  %v1861_v39 = vld [vmem:[#allocation2 + $0x250] sm:$0xff] }
  0xeb   :  { %4568 = vmatpush3.bf16.msra.mxu1 %v5135_v4  ;;  %4529 = vmatprep.subr.bf16.mxu0 %v5136_v5 }
  0xec   :  { %4569 = vmatprep.subr.bf16.mxu1 %v5137_v17 }
  0xed   :  { %2166 = vmatmul.mubr.bf16.gmra.mrb[92].mxu0 %v1967_v49 }
  0xee   :  { %2231 = vmatmul.mubr.bf16.gmra.mrb[92].mxu1 %v1969_v62  ;;  %4530 = vmatpush3.bf16.msra.mxu0 %v5138_v24  ;;  %v1878_v24 = vld [vmem:[#allocation2 + $0x2d8] sm:$0xff] }
  0xef   :  { %4570 = vmatpush3.bf16.msra.mxu1 %v5139_v27  ;;  %4531 = vmatprep.subr.bf16.mxu0 %v5140_v28  ;;  %v5152_v27 = vld [vmem:[%s6761_s2 + $0x350] sm:$0xff]  }
  0xf0   :  { %4571 = vmatprep.subr.bf16.mxu1 %v5141_v32  ;;  %2271 = vmatprep.mubr.bf16.mxu0 %v1924_v18  ;;  %v1860_v18 = vld [vmem:[#allocation2 + $0x248] sm:$0xff]  ;;  %v5153_v28 = vld [vmem:[%s6761_s2 + $0x3d0] sm:$0xff]  }
  0xf1   :  { %2336 = vmatprep.mubr.bf16.mxu1 %v1926_v21  ;;  %v5154_v32 = vld [vmem:[%s6761_s2 + $0x310] sm:$0xff]  }
  0xf2   :  { %4532 = vmatpush3.bf16.msra.mxu0 %v5142_v36 }
  0xf3   :  { %4572 = vmatpush3.bf16.msra.mxu1 %v5143_v40  ;;  %4597 = vmatprep.subr.bf16.mxu0 %v5144_v41  ;;  %v1877_v40 = vld [vmem:[#allocation2 + $0x2d0] sm:$0xff] }
  0xf4   :  { %4637 = vmatprep.subr.bf16.mxu1 %v5145_v43  ;;  %v5157_v43 = vld [vmem:[%s6761_s2 + $0x3d8] sm:$0xff]  }
  0xf5   :  { %2272 = vmatmul.mubr.bf16.vlgmr.msra.gmra.mrb[96].mxu0 %v1923_v33  ;;  %v1859_v33 = vld [vmem:[#allocation2 + $0x240] sm:$0xff] }
  0xf6   :  { %2337 = vmatmul.mubr.bf16.vlgmr.msra.gmra.mrb[96].mxu1 %v1925_v37  ;;  %4598 = vmatpush3.bf16.msra.mxu0 %v5146_v51  ;;  %v5155_v37 = vld [vmem:[%s6761_s2 + $0x390] sm:$0xff]  }
  0xf7   :  { %4638 = vmatpush3.bf16.msra.mxu1 %v5147_v0  ;;  %2279 = vmatprep.mubr.bf16.mxu0 %v1940_v44 }
  0xf8   :  { %2344 = vmatprep.mubr.bf16.mxu1 %v1942_v47 }
 0x108   :  { %v4053_v48 = vpop.f32.mrb[0].mxu0 }
 0x109   :  { %v4093_v59 = vpop.f32.mrb[0].mxu1  ;;  %v4054_v60 = vpop.f32.mrb[1].mxu0 }
 0x10a   :  { %v4055_v1 = vadd.f32 %v4054_v60, %v4053_v48  ;;  %v4094_v2 = vpop.f32.mrb[1].mxu1  ;;  %v4056_v3 = vpop.f32.mrb[2].mxu0  ;;  %v1843_v60 = vld [vmem:[#allocation2 + $0x1c0] sm:$0xff] }
 0x10b   :  { %v4095_v6 = vadd.f32 %v4094_v2, %v4093_v59  ;;  %v4096_v7 = vpop.f32.mrb[2].mxu1  ;;  %v4057_v16 = vpop.f32.mrb[3].mxu0  ;;  %v1827_v59 = vld [vmem:[#allocation2 + $0x140] sm:$0xff]  ;;  %v1829_v2 = vld [vmem:[#allocation2 + $0x150] sm:$0xff] }
 0x10c   :  { %v4058_v19 = vadd.f32 %v4057_v16, %v4056_v3  ;;  %v4097_v20 = vpop.f32.mrb[3].mxu1  ;;  %v1845_v3 = vld [vmem:[#allocation2 + $0x1d0] sm:$0xff]  ;;  %v1939_v17 = vpack.c.bf16 %v1843_v60, %v1827_v59  ;;  %v5158_v60 = vld [vmem:[%s6761_s2 + $0x318] sm:$0xff]  }
 0x10d   :  { %v6363_v22 = vadd.f32 %v4095_v6, %v4055_v1  ;;  %v4098_v23 = vadd.f32 %v4097_v20, %v4096_v7  ;;  %v5148_v1 = vld [vmem:[%s6761_s2 + $0x348] sm:$0xff]   ;;  %v1941_v21 = vpack.c.bf16 %v1845_v3, %v1829_v2  ;;  %v5159_v3 = vld [vmem:[%s6761_s2 + $0x398] sm:$0xff]  }
 0x10e   :  { %4599 = vmatprep.subr.bf16.mxu0 %v5148_v1  ;;  %v5149_v6 = vld [vmem:[%s6761_s2 + $0x3c8] sm:$0xff]   ;;  %2280 = vmatmul.mubr.bf16.gmra.mrb[100].mxu0 %v1939_v17  ;;  %v1907_v17 = vld [vmem:[#allocation2 + $0x3c0] sm:$0xff] }
 0x10f   :  { %v6374_v31 = vadd.f32 %v4098_v23, %v4058_v19  ;;  %4639 = vmatprep.subr.bf16.mxu1 %v5149_v6  ;;  %v1876_v19 = vld [vmem:[#allocation2 + $0x2c8] sm:$0xff]  ;;  %v1862_v23 = vld [vmem:[#allocation2 + $0x258] sm:$0xff]  ;;  %2345 = vmatmul.mubr.bf16.gmra.mrb[100].mxu1 %v1941_v21 }
 0x110   :  { %v4059_v42 = vpop.f32.mrb[4].mxu0  ;;  %v5150_v20 = vld [vmem:[%s6761_s2 + $0x308] sm:$0xff]   ;;  %4640 = vmatpush3.bf16.msra.mxu1 %v5151_v26  ;;  %v1956_v29 = vpack.c.bf16 %v1876_v19, %v1860_v18  ;;  %v1958_v30 = vpack.c.bf16 %v1878_v24, %v1862_v23  ;;  %v1893_v18 = vld [vmem:[#allocation2 + $0x350] sm:$0xff]  ;;  %v1802_v26 = vld [vmem:[#allocation2 + $0x78] sm:$0xff] }
 0x111   :  { %v4099_v45 = vpop.f32.mrb[4].mxu1  ;;  %v4060_v46 = vpop.f32.mrb[5].mxu0  ;;  %4600 = vmatpush3.bf16.msra.mxu0 %v5150_v20  ;;  %4641 = vmatprep.subr.bf16.mxu1 %v5153_v28  ;;  %v1909_v19 = vld [vmem:[#allocation2 + $0x3d0] sm:$0xff]  ;;  %v1800_v20 = vld [vmem:[#allocation2 + $0x68] sm:$0xff] }
 0x112   :  { %v4061_v48 = vadd.f32 %v4060_v46, %v4059_v42  ;;  %v4100_v49 = vpop.f32.mrb[5].mxu1  ;;  %v4062_v50 = vpop.f32.mrb[6].mxu0  ;;  %4601 = vmatprep.subr.bf16.mxu0 %v5152_v27  ;;  %2287 = vmatprep.mubr.bf16.mxu0 %v1956_v29  ;;  %v1816_v21 = vld [vmem:[#allocation2 + $0xe8] sm:$0xff]  ;;  %v1818_v27 = vld [vmem:[#allocation2 + $0xf8] sm:$0xff] }
 0x113   :  { %v4101_v61 = vadd.f32 %v4100_v49, %v4099_v45  ;;  %v4102_v62 = vpop.f32.mrb[6].mxu1  ;;  %v4063_v63 = vpop.f32.mrb[7].mxu0  ;;  %2352 = vmatprep.mubr.bf16.mxu1 %v1958_v30  ;;  %v1892_v49 = vld [vmem:[#allocation2 + $0x348] sm:$0xff] }
 0x114   :  { %v4064_v4 = vadd.f32 %v4063_v63, %v4062_v50  ;;  %v4103_v5 = vpop.f32.mrb[7].mxu1  ;;  %4642 = vmatpush3.bf16.msra.mxu1 %v5155_v37  ;;  %v1908_v50 = vld [vmem:[#allocation2 + $0x3c8] sm:$0xff]  ;;  %v1910_v63 = vld [vmem:[#allocation2 + $0x3d8] sm:$0xff] }
 0x115   :  { %v6403_v7 = vadd.f32 %v4101_v61, %v4061_v48  ;;  %v4104_v16 = vadd.f32 %v4103_v5, %v4102_v62  ;;  %4602 = vmatpush3.bf16.msra.mxu0 %v5154_v32  ;;  %4643 = vmatprep.subr.bf16.mxu1 %v5157_v43  ;;  %v1955_v48 = vpack.c.bf16 %v1875_v34, %v1859_v33  ;;  %v1894_v62 = vld [vmem:[#allocation2 + $0x358] sm:$0xff]  ;;  %v5018_v43 = vld [vmem:[%s6762_s3] sm:$0xff]  }
 0x116   :  { %4603 = vmatprep.subr.bf16.mxu0 %v5156_v38  ;;  %v1957_v61 = vpack.c.bf16 %v1877_v40, %v1861_v39  ;;  %v1974_v6 = vpack.c.bf16 %v1910_v63, %v1894_v62  ;;  %v1928_v33 = vpack.c.bf16 %v1816_v21, %v1800_v20  ;;  %v1815_v39 = vld [vmem:[#allocation2 + $0xe0] sm:$0xff]  ;;  %v1801_v40 = vld [vmem:[#allocation2 + $0x70] sm:$0xff] }
 0x117   :  { %v6408_v25 = vadd.f32 %v4104_v16, %v4064_v4  ;;  %v1972_v4 = vpack.c.bf16 %v1908_v50, %v1892_v49  ;;  %2288 = vmatmul.mubr.bf16.gmra.mrb[104].mxu0 %v1955_v48  ;;  %v1891_v16 = vld [vmem:[#allocation2 + $0x340] sm:$0xff] }
 0x118   :  { %v4065_v35 = vpop.f32.mrb[8].mxu0  ;;  %4644 = vmatpush3.bf16.msra.mxu1 %v5159_v3  ;;  %v1880_v3 = vld [vmem:[#allocation2 + $0x2e8] sm:$0xff] }
 0x119   :  { %v4105_v36 = vpop.f32.mrb[8].mxu1  ;;  %v4066_v41 = vpop.f32.mrb[9].mxu0  ;;  %4604 = vmatpush3.bf16.msra.mxu0 %v5158_v60  ;;  %4645 = vmatprep.subr.bf16.mxu1 %v5888_v53  ;;  %v1971_v53 = vpack.c.bf16 %v1907_v17, %v1891_v16  ;;  %v1847_v60 = vld [vmem:[#allocation2 + $0x1e0] sm:$0xff]  ;;  %v1866_v17 = vld [vmem:[#allocation2 + $0x278] sm:$0xff] }
 0x11a   :  { %v4106_v42 = vpop.f32.mrb[9].mxu1  ;;  %v4067_v44 = vadd.f32 %v4066_v41, %v4065_v35  ;;  %v4068_v46 = vpop.f32.mrb[10].mxu0  ;;  %4605 = vmatprep.subr.bf16.mxu0 %v5883_v52  ;;  %2353 = vmatmul.mubr.bf16.gmra.mrb[104].mxu1 %v1957_v61  ;;  %v1930_v35 = vpack.c.bf16 %v1818_v27, %v1802_v26  ;;  %v1848_v41 = vld [vmem:[#allocation2 + $0x1e8] sm:$0xff]  ;;  %v1833_v61 = vld [vmem:[#allocation2 + $0x170] sm:$0xff]  ;;  %v1879_v26 = vld [vmem:[#allocation2 + $0x2e0] sm:$0xff] }
 0x11b   :  { %v4107_v45 = vadd.f32 %v4106_v42, %v4105_v36  ;;  %v4108_v47 = vpop.f32.mrb[10].mxu1  ;;  %v4069_v51 = vpop.f32.mrb[11].mxu0  ;;  %2295 = vmatprep.mubr.bf16.mxu0 %v1972_v4  ;;  %2360 = vmatprep.mubr.bf16.mxu1 %v1974_v6  ;;  %v1799_v36 = vld [vmem:[#allocation2 + $0x60] sm:$0xff]  ;;  %v1865_v27 = vld [vmem:[#allocation2 + $0x270] sm:$0xff] }
 0x11c   :  { %v4109_v59 = vpop.f32.mrb[11].mxu1  ;;  %v4070_v1 = vadd.f32 %v4069_v51, %v4068_v46  ;;  %4646 = vmatpush3.bf16.msra.mxu1 %v5900_v55 }
 0x11d   :  { %v6434_v0 = vadd.f32 %v4107_v45, %v4067_v44  ;;  %v4110_v2 = vadd.f32 %v4109_v59, %v4108_v47  ;;  %4606 = vmatpush3.bf16.msra.mxu0 %v5894_v54  ;;  %4647 = vmatprep.subr.bf16.mxu1 %v5912_v57  ;;  %v1973_v54 = vpack.c.bf16 %v1909_v19, %v1893_v18  ;;  %v5160_v57 = vld [vmem:[%s6761_s2 + $0x3a8] sm:$0xff]   ;;  %v1834_v44 = vld [vmem:[#allocation2 + $0x178] sm:$0xff] }
 0x11e   :  { %4607 = vmatprep.subr.bf16.mxu0 %v5906_v56  ;;  %v1927_v45 = vpack.c.bf16 %v1815_v39, %v1799_v36  ;;  %v1882_v18 = vld [vmem:[#allocation2 + $0x2f8] sm:$0xff] }
 0x11f   :  { %v6441_v5 = vadd.f32 %v4110_v2, %v4070_v1  ;;  %2296 = vmatmul.mubr.bf16.gmra.mrb[108].mxu0 %v1971_v53  ;;  %v1849_v1 = vld [vmem:[#allocation2 + $0x1f0] sm:$0xff]  ;;  %v1864_v2 = vld [vmem:[#allocation2 + $0x268] sm:$0xff] }
 0x120   :  { %v4071_v52 = vpop.f32.mrb[12].mxu0  ;;  %4648 = vmatpush3.bf16.msra.mxu1 %v5160_v57  ;;  %2401 = vmatprep.mubr.bf16.mxu0 %v1928_v33  ;;  %v1945_v21 = vpack.c.bf16 %v1849_v1, %v1833_v61  ;;  %v1896_v57 = vld [vmem:[#allocation2 + $0x368] sm:$0xff]  ;;  %v1914_v33 = vld [vmem:[#allocation2 + $0x3f8] sm:$0xff] }
 0x121   :  { %v4111_v23 = vpop.f32.mrb[12].mxu1  ;;  %v4072_v24 = vpop.f32.mrb[13].mxu0  ;;  %4608 = vmatpush3.bf16.msra.mxu0 %v5918_v58  ;;  %4649 = vmatprep.subr.bf16.mxu1 %v5957_v9  ;;  %v1832_v9 = vld [vmem:[#allocation2 + $0x168] sm:$0xff] }
 0x122   :  { %v4073_v55 = vadd.f32 %v4072_v24, %v4071_v52  ;;  %v4112_v28 = vpop.f32.mrb[13].mxu1  ;;  %v4074_v56 = vpop.f32.mrb[14].mxu0  ;;  %4609 = vmatprep.subr.bf16.mxu0 %v5952_v8  ;;  %2361 = vmatmul.mubr.bf16.gmra.mrb[108].mxu1 %v1973_v54  ;;  %v1817_v8 = vld [vmem:[#allocation2 + $0xf0] sm:$0xff]  ;;  %v1944_v46 = vpack.c.bf16 %v1848_v41, %v1832_v9  ;;  %v1962_v24 = vpack.c.bf16 %v1882_v18, %v1866_v17 }
 0x123   :  { %v4113_v29 = vadd.f32 %v4112_v28, %v4111_v23  ;;  %v4114_v30 = vpop.f32.mrb[14].mxu1  ;;  %v4075_v32 = vpop.f32.mrb[15].mxu0  ;;  %2466 = vmatprep.mubr.bf16.mxu1 %v1930_v35  ;;  %v1960_v23 = vpack.c.bf16 %v1880_v3, %v1864_v2 }
 0x124   :  { %v4076_v58 = vadd.f32 %v4075_v32, %v4074_v56  ;;  %v4115_v34 = vpop.f32.mrb[15].mxu1  ;;  %4650 = vmatpush3.bf16.msra.mxu1 %v5969_v11  ;;  %v1929_v11 = vpack.c.bf16 %v1817_v8, %v1801_v40  ;;  %v1898_v32 = vld [vmem:[#allocation2 + $0x378] sm:$0xff] }
 0x125   :  { %v6453_v37 = vadd.f32 %v4113_v29, %v4073_v55  ;;  %v4116_v38 = vadd.f32 %v4115_v34, %v4114_v30  ;;  %4610 = vmatpush3.bf16.msra.mxu0 %v5962_v10  ;;  %4651 = vmatprep.subr.bf16.mxu1 %v5981_v13  ;;  %v1850_v10 = vld [vmem:[#allocation2 + $0x1f8] sm:$0xff]  ;;  %v5019_v13 = vld [vmem:[%s6762_s3 + $0x8] sm:$0xff]   ;;  %v1881_v55 = vld [vmem:[#allocation2 + $0x2f0] sm:$0xff] }
 0x126   :  { %4611 = vmatprep.subr.bf16.mxu0 %v5975_v12  ;;  %v1946_v12 = vpack.c.bf16 %v1850_v10, %v1834_v44  ;;  %v1912_v29 = vld [vmem:[#allocation2 + $0x3e8] sm:$0xff]  ;;  %v1961_v39 = vpack.c.bf16 %v1881_v55, %v1865_v27  ;;  %v1978_v10 = vpack.c.bf16 %v1914_v33, %v1898_v32 }
 0x127   :  { %v6458_v42 = vadd.f32 %v4116_v38, %v4076_v58  ;;  %v1976_v9 = vpack.c.bf16 %v1912_v29, %v1896_v57 }
 0x128   :  { %4652 = vmatpush3.bf16.msra.mxu1 %v5993_v15  ;;  %v4133_v47 = vpop.f32.mrb[16].mxu0 }
 0x129   :  { %4612 = vmatpush3.bf16.msra.mxu0 %v5987_v14  ;;  %v4173_v48 = vpop.f32.mrb[16].mxu1  ;;  %v4134_v49 = vpop.f32.mrb[17].mxu0  ;;  %v1831_v14 = vld [vmem:[#allocation2 + $0x160] sm:$0xff] }
 0x12a   :  { %4743 = vmatprep.subr.bf16.mxu0 %v5018_v43  ;;  %v4135_v50 = vadd.f32 %v4134_v49, %v4133_v47  ;;  %v4174_v51 = vpop.f32.mrb[17].mxu1  ;;  %v4136_v59 = vpop.f32.mrb[18].mxu0  ;;  %v1943_v52 = vpack.c.bf16 %v1847_v60, %v1831_v14  ;;  %v1913_v49 = vld [vmem:[#allocation2 + $0x3f0] sm:$0xff] }
 0x12b   :  { %2467 = vmatmul.mubr.bf16.vlgmr.msra.gmra.mrb[112].mxu1 %v1929_v11  ;;  %v4175_v62 = vadd.f32 %v4174_v51, %v4173_v48  ;;  %v4176_v15 = vpop.f32.mrb[18].mxu1  ;;  %v4137_v63 = vpop.f32.mrb[19].mxu0  ;;  %v1897_v48 = vld [vmem:[#allocation2 + $0x370] sm:$0xff] }
 0x12c   :  { %2402 = vmatmul.mubr.bf16.vlgmr.msra.gmra.mrb[112].mxu0 %v1927_v45  ;;  %2474 = vmatprep.mubr.bf16.mxu1 %v1946_v12  ;;  %v1432_v4 = vadd.f32 %v4135_v50, %v6363_v22  ;;  %v4138_v6 = vadd.f32 %v4137_v63, %v4136_v59  ;;  %v4177_v16 = vpop.f32.mrb[19].mxu1  ;;  %v1863_v22 = vld [vmem:[#allocation2 + $0x260] sm:$0xff]  ;;  %v1977_v59 = vpack.c.bf16 %v1913_v49, %v1897_v48 }
 0x12d   :  { %2409 = vmatprep.mubr.bf16.mxu0 %v1944_v46  ;;  %4744 = vmatpush3.bf16.msra.mxu0 %v5018_v43  ;;  %v4178_v19 = vadd.f32 %v4177_v16, %v4176_v15  ;;  %v1959_v38 = vpack.c.bf16 %v1879_v26, %v1863_v22  ;;  %v1895_v46 = vld [vmem:[#allocation2 + $0x360] sm:$0xff] }
 0x12e   :  { %4745 = vmatprep.subr.bf16.mxu0 %v5019_v13  ;;  %v6470_v53 = vadd.f32 %v4175_v62, %v1432_v4  ;;  %v1435_v20 = vadd.f32 %v4138_v6, %v6374_v31  ;;  %v1911_v12 = vld [vmem:[#allocation2 + $0x3e0] sm:$0xff] }
 0x12f   :  { %v1975_v50 = vpack.c.bf16 %v1911_v12, %v1895_v46 }
 0x130   :  { %v6473_v54 = vadd.f32 %v4178_v19, %v1435_v20  ;;  %v4139_v28 = vpop.f32.mrb[20].mxu0 }
 0x131   :  { %4746 = vmatpush3.bf16.msra.mxu0 %v5019_v13  ;;  %v4179_v56 = vpop.f32.mrb[20].mxu1  ;;  %v4140_v30 = vpop.f32.mrb[21].mxu0 }
 0x132   :  { %v4180_v31 = vpop.f32.mrb[21].mxu1  ;;  %v4141_v58 = vadd.f32 %v4140_v30, %v4139_v28  ;;  %v4142_v35 = vpop.f32.mrb[22].mxu0 }
 0x133   :  { %2475 = vmatmul.mubr.bf16.gmra.mrb[116].mxu1 %v1945_v21  ;;  %v4181_v34 = vadd.f32 %v4180_v31, %v4179_v56  ;;  %v4182_v36 = vpop.f32.mrb[22].mxu1  ;;  %v4143_v40 = vpop.f32.mrb[23].mxu0 }
 0x134   :  { %2410 = vmatmul.mubr.bf16.gmra.mrb[116].mxu0 %v1943_v52  ;;  %2482 = vmatprep.mubr.bf16.mxu1 %v1962_v24  ;;  %v4183_v8 = vpop.f32.mrb[23].mxu1  ;;  %v1440_v41 = vadd.f32 %v4141_v58, %v6403_v7  ;;  %v4144_v43 = vadd.f32 %v4143_v40, %v4142_v35 }
 0x135   :  { %2417 = vmatprep.mubr.bf16.mxu0 %v1960_v23  ;;  %v4184_v44 = vadd.f32 %v4183_v8, %v4182_v36 }
 0x136   :  { %v6476_v45 = vadd.f32 %v4181_v34, %v1440_v41  ;;  %v1443_v11 = vadd.f32 %v4144_v43, %v6408_v25 }
 0x138   :  { %v6479_v47 = vadd.f32 %v4184_v44, %v1443_v11  ;;  %v4145_v13 = vpop.f32.mrb[24].mxu0 }
 0x139   :  { %v4185_v7 = vpop.f32.mrb[24].mxu1  ;;  %v4146_v51 = vpop.f32.mrb[25].mxu0 }
 0x13a   :  { %v4147_v14 = vadd.f32 %v4146_v51, %v4145_v13  ;;  %v4186_v60 = vpop.f32.mrb[25].mxu1  ;;  %v4148_v61 = vpop.f32.mrb[26].mxu0 }
 0x13b   :  { %2483 = vmatmul.mubr.bf16.gmra.mrb[120].mxu1 %v1961_v39  ;;  %v4187_v62 = vadd.f32 %v4186_v60, %v4185_v7  ;;  %v4188_v25 = vpop.f32.mrb[26].mxu1  ;;  %v4149_v15 = vpop.f32.mrb[27].mxu0 }
 0x13c   :  { %2418 = vmatmul.mubr.bf16.gmra.mrb[120].mxu0 %v1959_v38  ;;  %2490 = vmatprep.mubr.bf16.mxu1 %v1978_v10  ;;  %v1448_v63 = vadd.f32 %v4147_v14, %v6434_v0  ;;  %v4150_v1 = vadd.f32 %v4149_v15, %v4148_v61  ;;  %v4189_v2 = vpop.f32.mrb[27].mxu1 }
 0x13d   :  { %2425 = vmatprep.mubr.bf16.mxu0 %v1976_v9  ;;  %v4190_v3 = vadd.f32 %v4189_v2, %v4188_v25 }
 0x13e   :  { %v1513_v4 = vadd.f32 %v4187_v62, %v1448_v63  ;;  %v1451_v6 = vadd.f32 %v4150_v1, %v6441_v5 }
 0x140   :  { %v6483_v16 = vadd.f32 %v4190_v3, %v1451_v6  ;;  %v4151_v17 = vpop.f32.mrb[28].mxu0 }
 0x141   :  { %v4191_v18 = vpop.f32.mrb[28].mxu1  ;;  %v4152_v19 = vpop.f32.mrb[29].mxu0 }
 0x142   :  { %v4153_v52 = vadd.f32 %v4152_v19, %v4151_v17  ;;  %v4192_v20 = vpop.f32.mrb[29].mxu1  ;;  %v4154_v21 = vpop.f32.mrb[30].mxu0 }
 0x143   :  { %2491 = vmatmul.mubr.bf16.gmra.mrb[124].mxu1 %v1977_v59  ;;  %v4193_v23 = vadd.f32 %v4192_v20, %v4191_v18  ;;  %v4194_v24 = vpop.f32.mrb[30].mxu1  ;;  %v4155_v22 = vpop.f32.mrb[31].mxu0 }
 0x144   :  { %2426 = vmatmul.mubr.bf16.gmra.mrb[124].mxu0 %v1975_v50  ;;  %v1456_v0 = vadd.f32 %v4153_v52, %v6453_v37  ;;  %v4156_v26 = vadd.f32 %v4155_v22, %v4154_v21  ;;  %v4195_v27 = vpop.f32.mrb[31].mxu1 }
 0x145   :  { %v4196_v55 = vadd.f32 %v4195_v27, %v4194_v24 }
 0x146   :  { %v1521_v28 = vadd.f32 %v4193_v23, %v1456_v0  ;;  %v1459_v56 = vadd.f32 %v4156_v26, %v6458_v42 }
 0x148   :  { %v6487_v5 = vadd.f32 %v4196_v55, %v1459_v56  ;;  %v4213_v57 = vpop.f32.mrb[32].mxu0 }
 0x149   :  { %v4253_v29 = vpop.f32.mrb[32].mxu1  ;;  %v4214_v30 = vpop.f32.mrb[33].mxu0 }
 0x14a   :  { %v4254_v31 = vpop.f32.mrb[33].mxu1  ;;  %v4215_v32 = vadd.f32 %v4214_v30, %v4213_v57  ;;  %v4216_v58 = vpop.f32.mrb[34].mxu0 }
 0x14b   :  { %v4255_v33 = vadd.f32 %v4254_v31, %v4253_v29  ;;  %v4256_v34 = vpop.f32.mrb[34].mxu1  ;;  %v4217_v35 = vpop.f32.mrb[35].mxu0 }
 0x14c   :  { %v4257_v36 = vpop.f32.mrb[35].mxu1  ;;  %v1562_v37 = vadd.f32 %v4215_v32, %v6470_v53  ;;  %v4218_v38 = vadd.f32 %v4217_v35, %v4216_v58 }
 0x14d   :  { %v4258_v39 = vadd.f32 %v4257_v36, %v4256_v34 }
 0x14e   :  { %v1627_v40 = vadd.f32 %v4255_v33, %v1562_v37  ;;  %v1565_v8 = vadd.f32 %v4218_v38, %v6473_v54 }
 0x150   :  { %v6491_v42 = vadd.f32 %v4258_v39, %v1565_v8  ;;  %v4219_v9 = vpop.f32.mrb[36].mxu0 }
 0x151   :  { %v4259_v41 = vpop.f32.mrb[36].mxu1  ;;  %v4220_v43 = vpop.f32.mrb[37].mxu0 }
 0x152   :  { %v4221_v44 = vadd.f32 %v4220_v43, %v4219_v9  ;;  %v4260_v10 = vpop.f32.mrb[37].mxu1  ;;  %v4222_v11 = vpop.f32.mrb[38].mxu0 }
 0x153   :  { %v4261_v46 = vadd.f32 %v4260_v10, %v4259_v41  ;;  %v4262_v12 = vpop.f32.mrb[38].mxu1  ;;  %v4223_v48 = vpop.f32.mrb[39].mxu0 }
 0x154   :  { %v1570_v49 = vadd.f32 %v4221_v44, %v6476_v45  ;;  %v4224_v13 = vadd.f32 %v4223_v48, %v4222_v11  ;;  %v4263_v53 = vpop.f32.mrb[39].mxu1 }
 0x155   :  { %v4264_v50 = vadd.f32 %v4263_v53, %v4262_v12 }
 0x156   :  { %v1635_v7 = vadd.f32 %v4261_v46, %v1570_v49  ;;  %v1573_v51 = vadd.f32 %v4224_v13, %v6479_v47 }
 0x158   :  { %v6495_v54 = vadd.f32 %v4264_v50, %v1573_v51  ;;  %v4225_v59 = vpop.f32.mrb[40].mxu0 }
 0x159   :  { %v4265_v14 = vpop.f32.mrb[40].mxu1  ;;  %v4226_v60 = vpop.f32.mrb[41].mxu0 }
 0x15a   :  { %v4227_v61 = vadd.f32 %v4226_v60, %v4225_v59  ;;  %v4266_v62 = vpop.f32.mrb[41].mxu1  ;;  %v4228_v25 = vpop.f32.mrb[42].mxu0 }
 0x15b   :  { %v4267_v15 = vadd.f32 %v4266_v62, %v4265_v14  ;;  %v4268_v63 = vpop.f32.mrb[42].mxu1  ;;  %v4229_v1 = vpop.f32.mrb[43].mxu0 }
 0x15c   :  { %v1578_v2 = vadd.f32 %v4227_v61, %v1513_v4  ;;  %v4230_v3 = vadd.f32 %v4229_v1, %v4228_v25  ;;  %v4269_v45 = vpop.f32.mrb[43].mxu1 }
 0x15d   :  { %v4270_v6 = vadd.f32 %v4269_v45, %v4268_v63 }
 0x15e   :  { %v6497_v17 = vadd.f32 %v4267_v15, %v1578_v2  ;;  %v1581_v18 = vadd.f32 %v4230_v3, %v6483_v16 }
 0x160   :  { %v6500_v47 = vadd.f32 %v4270_v6, %v1581_v18  ;;  %v4231_v19 = vpop.f32.mrb[44].mxu0 }
 0x161   :  { %v4271_v52 = vpop.f32.mrb[44].mxu1  ;;  %v4232_v20 = vpop.f32.mrb[45].mxu0 }
 0x162   :  { %v4272_v21 = vpop.f32.mrb[45].mxu1  ;;  %v4233_v23 = vadd.f32 %v4232_v20, %v4231_v19  ;;  %v4234_v22 = vpop.f32.mrb[46].mxu0 }
 0x163   :  { %v4273_v24 = vadd.f32 %v4272_v21, %v4271_v52  ;;  %v4274_v0 = vpop.f32.mrb[46].mxu1  ;;  %v4235_v26 = vpop.f32.mrb[47].mxu0 }
 0x164   :  { %v4275_v27 = vpop.f32.mrb[47].mxu1  ;;  %v1586_v4 = vadd.f32 %v4233_v23, %v1521_v28  ;;  %v4236_v55 = vadd.f32 %v4235_v26, %v4234_v22 }
 0x165   :  { %v4276_v56 = vadd.f32 %v4275_v27, %v4274_v0 }
 0x166   :  { %v6502_v57 = vadd.f32 %v4273_v24, %v1586_v4  ;;  %v1589_v29 = vadd.f32 %v4236_v55, %v6487_v5 }
 0x168   :  { %v6505_v16 = vadd.f32 %v4276_v56, %v1589_v29  ;;  %v4293_v30 = vpop.f32.mrb[48].mxu0 }
 0x169   :  { %v4333_v31 = vpop.f32.mrb[48].mxu1  ;;  %v4294_v32 = vpop.f32.mrb[49].mxu0 }
 0x16a   :  { %v4295_v33 = vadd.f32 %v4294_v32, %v4293_v30  ;;  %v4334_v58 = vpop.f32.mrb[49].mxu1  ;;  %v4296_v34 = vpop.f32.mrb[50].mxu0 }
 0x16b   :  { %v4335_v35 = vadd.f32 %v4334_v58, %v4333_v31  ;;  %v4336_v36 = vpop.f32.mrb[50].mxu1  ;;  %v4297_v37 = vpop.f32.mrb[51].mxu0 }
 0x16c   :  { %v1692_v38 = vadd.f32 %v4295_v33, %v1627_v40  ;;  %v4298_v39 = vadd.f32 %v4297_v37, %v4296_v34  ;;  %v4337_v28 = vpop.f32.mrb[51].mxu1 }
 0x16d   :  { %v4338_v8 = vadd.f32 %v4337_v28, %v4336_v36 }
 0x16e   :  { %v1757_v9 = vadd.f32 %v4335_v35, %v1692_v38  ;;  %v1695_v41 = vadd.f32 %v4298_v39, %v6491_v42 }
 0x170   :  { %v1760_v43 = vadd.f32 %v4338_v8, %v1695_v41  ;;  %v4299_v5 = vpop.f32.mrb[52].mxu0 }
 0x171   :  { %v4339_v44 = vpop.f32.mrb[52].mxu1  ;;  %v4300_v10 = vpop.f32.mrb[53].mxu0 }
 0x172   :  { %v2499_v11 = vpack.c.bf16 %v1760_v43, %v1757_v9  ;;  %v4301_v46 = vadd.f32 %v4300_v10, %v4299_v5  ;;  %v4340_v12 = vpop.f32.mrb[53].mxu1  ;;  %v4302_v48 = vpop.f32.mrb[54].mxu0 }
 0x173   :  { %v4341_v49 = vadd.f32 %v4340_v12, %v4339_v44  ;;  %v4342_v13 = vpop.f32.mrb[54].mxu1  ;;  %v4303_v53 = vpop.f32.mrb[55].mxu0 }
 0x174   :  { %v1700_v50 = vadd.f32 %v4301_v46, %v1635_v7  ;;  %v4304_v40 = vadd.f32 %v4303_v53, %v4302_v48  ;;  %v4343_v51 = vpop.f32.mrb[55].mxu1  ;;  %4747 = vmatprep.mubr.msk.bf16.mxu0 %vm2523_vm0, %v2499_v11 }
 0x175   :  { %v4344_v59 = vadd.f32 %v4343_v51, %v4342_v13 }
 0x176   :  { %v1765_v14 = vadd.f32 %v4341_v49, %v1700_v50  ;;  %v1703_v42 = vadd.f32 %v4304_v40, %v6495_v54 }
 0x178   :  { %v1768_v60 = vadd.f32 %v4344_v59, %v1703_v42  ;;  %v4305_v61 = vpop.f32.mrb[56].mxu0 }
 0x179   :  { %v4345_v62 = vpop.f32.mrb[56].mxu1  ;;  %v4306_v25 = vpop.f32.mrb[57].mxu0 }
 0x17a   :  { %v2500_v15 = vpack.c.bf16 %v1768_v60, %v1765_v14  ;;  %v4307_v63 = vadd.f32 %v4306_v25, %v4305_v61  ;;  %v4346_v1 = vpop.f32.mrb[57].mxu1  ;;  %v4308_v2 = vpop.f32.mrb[58].mxu0 }
 0x17b   :  { %v4347_v3 = vadd.f32 %v4346_v1, %v4345_v62  ;;  %v4348_v45 = vpop.f32.mrb[58].mxu1  ;;  %v4309_v6 = vpop.f32.mrb[59].mxu0 }
 0x17c   :  { %v1708_v7 = vadd.f32 %v4307_v63, %v6497_v17  ;;  %v4310_v18 = vadd.f32 %v4309_v6, %v4308_v2  ;;  %v4349_v19 = vpop.f32.mrb[59].mxu1  ;;  %4748 = vmatmul.mubr.msk.bf16.vlgmr.msra.gmra.mrb[128].mxu0 %vm2523_vm0, %v2500_v15 }
 0x17d   :  { %v4350_v52 = vadd.f32 %v4349_v19, %v4348_v45 }
 0x17e   :  { %v1773_v20 = vadd.f32 %v4347_v3, %v1708_v7  ;;  %v1711_v54 = vadd.f32 %v4310_v18, %v6500_v47 }
 0x180   :  { %v1776_v21 = vadd.f32 %v4350_v52, %v1711_v54  ;;  %v4311_v23 = vpop.f32.mrb[60].mxu0 }
 0x181   :  { %v4351_v24 = vpop.f32.mrb[60].mxu1  ;;  %v4312_v22 = vpop.f32.mrb[61].mxu0 }
 0x182   :  { %v2501_v0 = vpack.c.bf16 %v1776_v21, %v1773_v20  ;;  %v4313_v26 = vadd.f32 %v4312_v22, %v4311_v23  ;;  %v4352_v27 = vpop.f32.mrb[61].mxu1  ;;  %v4314_v4 = vpop.f32.mrb[62].mxu0 }
 0x183   :  { %v4353_v55 = vadd.f32 %v4352_v27, %v4351_v24  ;;  %v4354_v56 = vpop.f32.mrb[62].mxu1  ;;  %v4315_v29 = vpop.f32.mrb[63].mxu0 }
 0x184   :  { %v1716_v17 = vadd.f32 %v4313_v26, %v6502_v57  ;;  %v4316_v30 = vadd.f32 %v4315_v29, %v4314_v4  ;;  %v4355_v31 = vpop.f32.mrb[63].mxu1  ;;  %4751 = vmatprep.mubr.msk.bf16.mxu0 %vm2523_vm0, %v2501_v0 }
 0x185   :  { %v4356_v32 = vadd.f32 %v4355_v31, %v4354_v56 }
 0x186   :  { %v1781_v33 = vadd.f32 %v4353_v55, %v1716_v17  ;;  %v1719_v47 = vadd.f32 %v4316_v30, %v6505_v16 }
 0x188   :  { %v1784_v58 = vadd.f32 %v4356_v32, %v1719_v47  ;;  %v4373_v34 = vpop.f32.mrb[64].mxu0 }
 0x189   :  { %v4413_v35 = vpop.f32.mrb[64].mxu1  ;;  %v4374_v36 = vpop.f32.mrb[65].mxu0 }
 0x18a   :  { %v2502_v37 = vpack.c.bf16 %v1784_v58, %v1781_v33  ;;  %v4375_v38 = vadd.f32 %v4374_v36, %v4373_v34  ;;  %v4414_v39 = vpop.f32.mrb[65].mxu1  ;;  %v4376_v28 = vpop.f32.mrb[66].mxu0 }
 0x18b   :  { %v4415_v8 = vadd.f32 %v4414_v39, %v4413_v35  ;;  %v4416_v9 = vpop.f32.mrb[66].mxu1  ;;  %v4377_v41 = vpop.f32.mrb[67].mxu0 }
 0x18c   :  { %v4378_v57 = vadd.f32 %v4377_v41, %v4376_v28  ;;  %v4417_v43 = vpop.f32.mrb[67].mxu1  ;;  %4752 = vmatmul.mubr.msk.bf16.gmra.mrb[132].mxu0 %vm2523_vm0, %v2502_v37 }
 0x18d   :  { %v2079_v5 = vadd.f32 %v4415_v8, %v4375_v38  ;;  %v4418_v44 = vadd.f32 %v4417_v43, %v4416_v9 }
 0x18f   :  { %v2082_v10 = vadd.f32 %v4418_v44, %v4378_v57 }
 0x190   :  { %v4379_v11 = vpop.f32.mrb[68].mxu0 }
 0x191   :  { %v4419_v16 = vpop.f32.mrb[68].mxu1  ;;  %v4380_v46 = vpop.f32.mrb[69].mxu0 }
 0x192   :  { %v4381_v12 = vadd.f32 %v4380_v46, %v4379_v11  ;;  %v4420_v48 = vpop.f32.mrb[69].mxu1  ;;  %v4382_v49 = vpop.f32.mrb[70].mxu0 }
 0x193   :  { %v4421_v13 = vadd.f32 %v4420_v48, %v4419_v16  ;;  %v4422_v53 = vpop.f32.mrb[70].mxu1  ;;  %v4383_v50 = vpop.f32.mrb[71].mxu0 }
 0x194   :  { %v4384_v40 = vadd.f32 %v4383_v50, %v4382_v49  ;;  %v4423_v51 = vpop.f32.mrb[71].mxu1 }
 0x195   :  { %v2087_v59 = vadd.f32 %v4421_v13, %v4381_v12  ;;  %v4424_v14 = vadd.f32 %v4423_v51, %v4422_v53 }
 0x197   :  { %v2090_v42 = vadd.f32 %v4424_v14, %v4384_v40 }
 0x198   :  { %v4385_v60 = vpop.f32.mrb[72].mxu0 }
 0x199   :  { %v4425_v61 = vpop.f32.mrb[72].mxu1  ;;  %v4386_v62 = vpop.f32.mrb[73].mxu0 }
 0x19a   :  { %v4387_v25 = vadd.f32 %v4386_v62, %v4385_v60  ;;  %v4426_v15 = vpop.f32.mrb[73].mxu1  ;;  %v4388_v63 = vpop.f32.mrb[74].mxu0 }
 0x19b   :  { %v4427_v1 = vadd.f32 %v4426_v15, %v4425_v61  ;;  %v4428_v2 = vpop.f32.mrb[74].mxu1  ;;  %v4389_v3 = vpop.f32.mrb[75].mxu0 }
 0x19c   :  { %v4390_v45 = vadd.f32 %v4389_v3, %v4388_v63  ;;  %v4429_v6 = vpop.f32.mrb[75].mxu1 }
 0x19d   :  { %v2095_v7 = vadd.f32 %v4427_v1, %v4387_v25  ;;  %v4430_v18 = vadd.f32 %v4429_v6, %v4428_v2 }
 0x19f   :  { %v2098_v19 = vadd.f32 %v4430_v18, %v4390_v45 }
 0x1a0   :  { %v4391_v52 = vpop.f32.mrb[76].mxu0 }
 0x1a1   :  { %v4431_v20 = vpop.f32.mrb[76].mxu1  ;;  %v4392_v54 = vpop.f32.mrb[77].mxu0 }
 0x1a2   :  { %v4393_v21 = vadd.f32 %v4392_v54, %v4391_v52  ;;  %v4432_v23 = vpop.f32.mrb[77].mxu1  ;;  %v4394_v24 = vpop.f32.mrb[78].mxu0 }
 0x1a3   :  { %v4433_v22 = vadd.f32 %v4432_v23, %v4431_v20  ;;  %v4434_v0 = vpop.f32.mrb[78].mxu1  ;;  %v4395_v26 = vpop.f32.mrb[79].mxu0 }
 0x1a4   :  { %v4396_v27 = vadd.f32 %v4395_v26, %v4394_v24  ;;  %v4435_v4 = vpop.f32.mrb[79].mxu1 }
 0x1a5   :  { %v2103_v55 = vadd.f32 %v4433_v22, %v4393_v21  ;;  %v4436_v56 = vadd.f32 %v4435_v4, %v4434_v0 }
 0x1a7   :  { %v6517_v29 = vadd.f32 %v4436_v56, %v4396_v27 }
 0x1a8   :  { %v4453_v17 = vpop.f32.mrb[80].mxu0 }
 0x1a9   :  { %v4493_v30 = vpop.f32.mrb[80].mxu1  ;;  %v4454_v31 = vpop.f32.mrb[81].mxu0 }
 0x1aa   :  { %v4455_v32 = vadd.f32 %v4454_v31, %v4453_v17  ;;  %v4494_v33 = vpop.f32.mrb[81].mxu1  ;;  %v4456_v47 = vpop.f32.mrb[82].mxu0 }
 0x1ab   :  { %v4495_v58 = vadd.f32 %v4494_v33, %v4493_v30  ;;  %v4496_v34 = vpop.f32.mrb[82].mxu1  ;;  %v4457_v35 = vpop.f32.mrb[83].mxu0 }
 0x1ac   :  { %v2144_v36 = vadd.f32 %v4455_v32, %v2079_v5  ;;  %v4458_v37 = vadd.f32 %v4457_v35, %v4456_v47  ;;  %v4497_v38 = vpop.f32.mrb[83].mxu1 }
 0x1ad   :  { %v4498_v39 = vadd.f32 %v4497_v38, %v4496_v34 }
 0x1ae   :  { %v2209_v28 = vadd.f32 %v4495_v58, %v2144_v36  ;;  %v2147_v8 = vadd.f32 %v4458_v37, %v2082_v10 }
 0x1b0   :  { %v6519_v9 = vadd.f32 %v4498_v39, %v2147_v8  ;;  %v4459_v41 = vpop.f32.mrb[84].mxu0 }
 0x1b1   :  { %v4499_v57 = vpop.f32.mrb[84].mxu1  ;;  %v4460_v43 = vpop.f32.mrb[85].mxu0 }
 0x1b2   :  { %v4461_v44 = vadd.f32 %v4460_v43, %v4459_v41  ;;  %v4500_v11 = vpop.f32.mrb[85].mxu1  ;;  %v4462_v16 = vpop.f32.mrb[86].mxu0 }
 0x1b3   :  { %v4501_v46 = vadd.f32 %v4500_v11, %v4499_v57  ;;  %v4502_v12 = vpop.f32.mrb[86].mxu1  ;;  %v4463_v48 = vpop.f32.mrb[87].mxu0 }
 0x1b4   :  { %v2152_v49 = vadd.f32 %v4461_v44, %v2087_v59  ;;  %v4464_v13 = vadd.f32 %v4463_v48, %v4462_v16  ;;  %v4503_v53 = vpop.f32.mrb[87].mxu1 }
 0x1b5   :  { %v4504_v5 = vadd.f32 %v4503_v53, %v4502_v12 }
 0x1b6   :  { %v2217_v50 = vadd.f32 %v4501_v46, %v2152_v49  ;;  %v2155_v40 = vadd.f32 %v4464_v13, %v2090_v42 }
 0x1b8   :  { %v6521_v51 = vadd.f32 %v4504_v5, %v2155_v40  ;;  %v4465_v10 = vpop.f32.mrb[88].mxu0 }
 0x1b9   :  { %v4505_v14 = vpop.f32.mrb[88].mxu1  ;;  %v4466_v60 = vpop.f32.mrb[89].mxu0 }
 0x1ba   :  { %v4467_v61 = vadd.f32 %v4466_v60, %v4465_v10  ;;  %v4506_v62 = vpop.f32.mrb[89].mxu1  ;;  %v4468_v25 = vpop.f32.mrb[90].mxu0 }
 0x1bb   :  { %v4507_v15 = vadd.f32 %v4506_v62, %v4505_v14  ;;  %v4508_v63 = vpop.f32.mrb[90].mxu1  ;;  %v4469_v1 = vpop.f32.mrb[91].mxu0 }
 0x1bc   :  { %v2160_v2 = vadd.f32 %v4467_v61, %v2095_v7  ;;  %v4470_v3 = vadd.f32 %v4469_v1, %v4468_v25  ;;  %v4509_v45 = vpop.f32.mrb[91].mxu1 }
 0x1bd   :  { %v4510_v59 = vadd.f32 %v4509_v45, %v4508_v63 }
 0x1be   :  { %v2225_v6 = vadd.f32 %v4507_v15, %v2160_v2  ;;  %v2163_v18 = vadd.f32 %v4470_v3, %v2098_v19 }
 0x1c0   :  { %v6523_v52 = vadd.f32 %v4510_v59, %v2163_v18  ;;  %v4471_v42 = vpop.f32.mrb[92].mxu0 }
 0x1c1   :  { %v4511_v20 = vpop.f32.mrb[92].mxu1  ;;  %v4472_v54 = vpop.f32.mrb[93].mxu0 }
 0x1c2   :  { %v4473_v21 = vadd.f32 %v4472_v54, %v4471_v42  ;;  %v4512_v23 = vpop.f32.mrb[93].mxu1  ;;  %v4474_v24 = vpop.f32.mrb[94].mxu0 }
 0x1c3   :  { %v4513_v22 = vadd.f32 %v4512_v23, %v4511_v20  ;;  %v4514_v0 = vpop.f32.mrb[94].mxu1  ;;  %v4475_v26 = vpop.f32.mrb[95].mxu0 }
 0x1c4   :  { %v2168_v27 = vadd.f32 %v4473_v21, %v2103_v55  ;;  %v4476_v4 = vadd.f32 %v4475_v26, %v4474_v24  ;;  %v4515_v56 = vpop.f32.mrb[95].mxu1 }
 0x1c5   :  { %v4516_v7 = vadd.f32 %v4515_v56, %v4514_v0 }
 0x1c6   :  { %v2233_v17 = vadd.f32 %v4513_v22, %v2168_v27  ;;  %v2171_v30 = vadd.f32 %v4476_v4, %v6517_v29 }
 0x1c8   :  { %v6526_v31 = vadd.f32 %v4516_v7, %v2171_v30  ;;  %v4533_v19 = vpop.f32.mrb[96].mxu0 }
 0x1c9   :  { %v4573_v32 = vpop.f32.mrb[96].mxu1  ;;  %v4534_v33 = vpop.f32.mrb[97].mxu0 }
 0x1ca   :  { %v4535_v47 = vadd.f32 %v4534_v33, %v4533_v19  ;;  %v4574_v58 = vpop.f32.mrb[97].mxu1  ;;  %v4536_v34 = vpop.f32.mrb[98].mxu0 }
 0x1cb   :  { %v4575_v35 = vadd.f32 %v4574_v58, %v4573_v32  ;;  %v4576_v36 = vpop.f32.mrb[98].mxu1  ;;  %v4537_v37 = vpop.f32.mrb[99].mxu0 }
 0x1cc   :  { %v2274_v38 = vadd.f32 %v4535_v47, %v2209_v28  ;;  %v4538_v39 = vadd.f32 %v4537_v37, %v4536_v34  ;;  %v4577_v55 = vpop.f32.mrb[99].mxu1 }
 0x1cd   :  { %v4578_v8 = vadd.f32 %v4577_v55, %v4576_v36 }
 0x1ce   :  { %v2339_v41 = vadd.f32 %v4575_v35, %v2274_v38  ;;  %v2277_v57 = vadd.f32 %v4538_v39, %v6519_v9 }
 0x1d0   :  { %v6529_v43 = vadd.f32 %v4578_v8, %v2277_v57 }
 0x1e1   :  { %v4539_v29 = vpop.f32.mrb[100].mxu0 }
 0x1e2   :  { %v4579_v44 = vpop.f32.mrb[100].mxu1  ;;  %v4540_v11 = vpop.f32.mrb[101].mxu0 }
 0x1e3   :  { %v4541_v16 = vadd.f32 %v4540_v11, %v4539_v29  ;;  %v4580_v46 = vpop.f32.mrb[101].mxu1  ;;  %v4542_v12 = vpop.f32.mrb[102].mxu0 }
 0x1e4   :  { %v4581_v48 = vadd.f32 %v4580_v46, %v4579_v44  ;;  %v4582_v49 = vpop.f32.mrb[102].mxu1  ;;  %v4543_v13 = vpop.f32.mrb[103].mxu0 }
 0x1e5   :  { %v2282_v53 = vadd.f32 %v4541_v16, %v2217_v50  ;;  %v4544_v5 = vadd.f32 %v4543_v13, %v4542_v12  ;;  %v4583_v28 = vpop.f32.mrb[103].mxu1 }
 0x1e6   :  { %v4584_v40 = vadd.f32 %v4583_v28, %v4582_v49 }
 0x1e7   :  { %v2347_v10 = vadd.f32 %v4581_v48, %v2282_v53  ;;  %v2285_v14 = vadd.f32 %v4544_v5, %v6521_v51 }
 0x1e9   :  { %v6532_v60 = vadd.f32 %v4584_v40, %v2285_v14 }
 0x1ea   :  { %v4545_v9 = vpop.f32.mrb[104].mxu0 }
 0x1eb   :  { %v4546_v62 = vpop.f32.mrb[105].mxu0 }
 0x1ec   :  { %v4547_v25 = vadd.f32 %v4546_v62, %v4545_v9  ;;  %v4548_v63 = vpop.f32.mrb[106].mxu0 }
 0x1ed   :  { %v4585_v61 = vpop.f32.mrb[104].mxu1  ;;  %v4549_v3 = vpop.f32.mrb[107].mxu0 }
 0x1ee   :  { %v4586_v15 = vpop.f32.mrb[105].mxu1  ;;  %v2290_v45 = vadd.f32 %v4547_v25, %v2225_v6  ;;  %v4550_v59 = vadd.f32 %v4549_v3, %v4548_v63 }
 0x1ef   :  { %v4587_v1 = vadd.f32 %v4586_v15, %v4585_v61  ;;  %v4588_v2 = vpop.f32.mrb[106].mxu1 }
 0x1f0   :  { %v4589_v50 = vpop.f32.mrb[107].mxu1  ;;  %v2293_v20 = vadd.f32 %v4550_v59, %v6523_v52 }
 0x1f1   :  { %v4590_v18 = vadd.f32 %v4589_v50, %v4588_v2  ;;  %v6534_v42 = vadd.f32 %v4587_v1, %v2290_v45 }
 0x1f2   :  { %v4551_v54 = vpop.f32.mrb[108].mxu0 }
 0x1f3   :  { %v6537_v51 = vadd.f32 %v4590_v18, %v2293_v20  ;;  %v4552_v23 = vpop.f32.mrb[109].mxu0 }
 0x1f4   :  { %v4553_v24 = vadd.f32 %v4552_v23, %v4551_v54  ;;  %v4554_v0 = vpop.f32.mrb[110].mxu0 }
 0x1f5   :  { %v4591_v21 = vpop.f32.mrb[108].mxu1  ;;  %v4555_v4 = vpop.f32.mrb[111].mxu0 }
 0x1f6   :  { %v4592_v22 = vpop.f32.mrb[109].mxu1  ;;  %v2298_v56 = vadd.f32 %v4553_v24, %v2233_v17  ;;  %v4556_v6 = vadd.f32 %v4555_v4, %v4554_v0 }
 0x1f7   :  { %v4593_v26 = vadd.f32 %v4592_v22, %v4591_v21  ;;  %v4594_v27 = vpop.f32.mrb[110].mxu1 }
 0x1f8   :  { %v4595_v7 = vpop.f32.mrb[111].mxu1  ;;  %v2301_v32 = vadd.f32 %v4556_v6, %v6526_v31 }
 0x1f9   :  { %v4596_v30 = vadd.f32 %v4595_v7, %v4594_v27  ;;  %v6539_v19 = vadd.f32 %v4593_v26, %v2298_v56 }
 0x1fb   :  { %v6542_v52 = vadd.f32 %v4596_v30, %v2301_v32 }
 0x1fe   :  { %v4653_v47 = vpop.f32.mrb[112].mxu1 }
 0x1ff   :  { %v4613_v33 = vpop.f32.mrb[112].mxu0  ;;  %v4654_v35 = vpop.f32.mrb[113].mxu1 }
 0x200   :  { %v4614_v58 = vpop.f32.mrb[113].mxu0  ;;  %v4655_v37 = vadd.f32 %v4654_v35, %v4653_v47  ;;  %v4656_v38 = vpop.f32.mrb[114].mxu1 }
 0x201   :  { %v4615_v34 = vadd.f32 %v4614_v58, %v4613_v33  ;;  %v4616_v36 = vpop.f32.mrb[114].mxu0  ;;  %v4657_v8 = vpop.f32.mrb[115].mxu1 }
 0x202   :  { %v4617_v39 = vpop.f32.mrb[115].mxu0  ;;  %v4658_v57 = vadd.f32 %v4657_v8, %v4656_v38  ;;  %v5023_v38 = vld [vmem:[%s6765_s6 + $0x18] sm:$0xff]  }
 0x203   :  { %v2404_v55 = vadd.f32 %v4615_v34, %v2339_v41  ;;  %v4618_v17 = vadd.f32 %v4617_v39, %v4616_v36  ;;  %v5024_v39 = vld [vmem:[%s6765_s6 + $0x20] sm:$0xff]   ;;  %v5027_v8 = vld [vmem:[%s6765_s6 + $0x38] sm:$0xff]  }
 0x205   :  { %v2469_v29 = vadd.f32 %v4655_v37, %v2404_v55  ;;  %v2407_v44 = vadd.f32 %v4618_v17, %v6529_v43  ;;  %v5020_v37 = vld [vmem:[%s6765_s6] sm:$0xff]   ;;  %v5025_v55 = vld [vmem:[%s6765_s6 + $0x28] sm:$0xff]   ;;  %v5026_v17 = vld [vmem:[%s6765_s6 + $0x30] sm:$0xff]  }
 0x206   :  { %v4659_v16 = vpop.f32.mrb[116].mxu1  ;;  %4763 = vmatprep.subr.bf16.mxu1 %v5020_v37 }
 0x207   :  { %v2472_v11 = vadd.f32 %v4658_v57, %v2407_v44  ;;  %v4619_v31 = vpop.f32.mrb[116].mxu0  ;;  %v4660_v49 = vpop.f32.mrb[117].mxu1  ;;  %4764 = vmatpush3.bf16.msra.mxu1 %v5020_v37 }
 0x208   :  { %v4620_v46 = vpop.f32.mrb[117].mxu0  ;;  %v4661_v53 = vadd.f32 %v4660_v49, %v4659_v16  ;;  %v4662_v5 = vpop.f32.mrb[118].mxu1 }
 0x209   :  { %v2503_v12 = vpack.c.bf16 %v2472_v11, %v2469_v29  ;;  %v4621_v48 = vadd.f32 %v4620_v46, %v4619_v31  ;;  %v4622_v13 = vpop.f32.mrb[118].mxu0  ;;  %v4663_v41 = vpop.f32.mrb[119].mxu1 }
 0x20a   :  { %v4623_v28 = vpop.f32.mrb[119].mxu0  ;;  %v4664_v9 = vadd.f32 %v4663_v41, %v4662_v5 }
 0x20b   :  { %v2412_v40 = vadd.f32 %v4621_v48, %v2347_v10  ;;  %v4624_v14 = vadd.f32 %v4623_v28, %v4622_v13  ;;  %4755 = vmatprep.mubr.msk.bf16.mxu0 %vm2523_vm0, %v2503_v12 }
 0x20d   :  { %v2477_v61 = vadd.f32 %v4661_v53, %v2412_v40  ;;  %v2415_v43 = vadd.f32 %v4624_v14, %v6532_v60 }
 0x20e   :  { %v4665_v15 = vpop.f32.mrb[120].mxu1 }
 0x20f   :  { %v2480_v62 = vadd.f32 %v4664_v9, %v2415_v43  ;;  %v4625_v25 = vpop.f32.mrb[120].mxu0  ;;  %v4666_v3 = vpop.f32.mrb[121].mxu1 }
 0x210   :  { %v4626_v63 = vpop.f32.mrb[121].mxu0  ;;  %v4667_v59 = vadd.f32 %v4666_v3, %v4665_v15  ;;  %v4668_v50 = vpop.f32.mrb[122].mxu1 }
 0x211   :  { %v2504_v1 = vpack.c.bf16 %v2480_v62, %v2477_v61  ;;  %v4627_v2 = vadd.f32 %v4626_v63, %v4625_v25  ;;  %v4628_v45 = vpop.f32.mrb[122].mxu0  ;;  %v4669_v54 = vpop.f32.mrb[123].mxu1 }
 0x212   :  { %v4629_v18 = vpop.f32.mrb[123].mxu0  ;;  %v4670_v21 = vadd.f32 %v4669_v54, %v4668_v50 }
 0x213   :  { %v2420_v10 = vadd.f32 %v4627_v2, %v6534_v42  ;;  %v4630_v20 = vadd.f32 %v4629_v18, %v4628_v45  ;;  %4756 = vmatmul.mubr.msk.bf16.gmra.mrb[136].mxu0 %vm2523_vm0, %v2504_v1 }
 0x215   :  { %v2485_v23 = vadd.f32 %v4667_v59, %v2420_v10  ;;  %v2423_v60 = vadd.f32 %v4630_v20, %v6537_v51 }
 0x216   :  { %v4671_v0 = vpop.f32.mrb[124].mxu1 }
 0x217   :  { %v2488_v24 = vadd.f32 %v4670_v21, %v2423_v60  ;;  %v4631_v22 = vpop.f32.mrb[124].mxu0  ;;  %v4672_v56 = vpop.f32.mrb[125].mxu1 }
 0x218   :  { %v4632_v26 = vpop.f32.mrb[125].mxu0  ;;  %v4673_v7 = vadd.f32 %v4672_v56, %v4671_v0  ;;  %v4674_v30 = vpop.f32.mrb[126].mxu1 }
 0x219   :  { %v2505_v27 = vpack.c.bf16 %v2488_v24, %v2485_v23  ;;  %v4633_v4 = vadd.f32 %v4632_v26, %v4631_v22  ;;  %v4634_v6 = vpop.f32.mrb[126].mxu0  ;;  %v4675_v47 = vpop.f32.mrb[127].mxu1 }
 0x21a   :  { %v4635_v32 = vpop.f32.mrb[127].mxu0  ;;  %v4676_v58 = vadd.f32 %v4675_v47, %v4674_v30 }
 0x21b   :  { %v2428_v42 = vadd.f32 %v4633_v4, %v6539_v19  ;;  %v4636_v33 = vadd.f32 %v4635_v32, %v4634_v6  ;;  %4759 = vmatprep.mubr.msk.bf16.mxu0 %vm2523_vm0, %v2505_v27  ;;  %v5021_v19 = vld [vmem:[%s6765_s6 + $0x8] sm:$0xff]  }
 0x21c   :  { %4765 = vmatprep.subr.bf16.mxu1 %v5021_v19 }
 0x21d   :  { %v2493_v34 = vadd.f32 %v4673_v7, %v2428_v42  ;;  %v2431_v51 = vadd.f32 %v4636_v33, %v6542_v52  ;;  %4766 = vmatpush3.bf16.msra.mxu1 %v5021_v19  ;;  %v5022_v52 = vld [vmem:[%s6765_s6 + $0x10] sm:$0xff]  }
 0x21e   :  { %4767 = vmatprep.subr.bf16.mxu1 %v5022_v52 }
 0x21f   :  { %v2496_v35 = vadd.f32 %v4676_v58, %v2431_v51 }
 0x221   :  { %v2506_v36 = vpack.c.bf16 %v2496_v35, %v2493_v34  ;;  %4768 = vmatpush3.bf16.msra.mxu1 %v5022_v52  ;;  %v6581_v35 = vld [vmem:[%s6763_s4] ss:$0 sm:$0xff] }
 0x222   :  { %4769 = vmatprep.subr.bf16.mxu1 %v5023_v38 }
 0x223   :  { %4760 = vmatmul.mubr.msk.bf16.gmra.mrb[140].mxu0 %vm2523_vm0, %v2506_v36 }
 0x225   :  { %4770 = vmatpush3.bf16.msra.mxu1 %v5023_v38 }
 0x226   :  { %4771 = vmatprep.subr.bf16.mxu1 %v5024_v39 }
 0x229   :  { %4772 = vmatpush3.bf16.msra.mxu1 %v5024_v39  ;;  %v6586_v39 = vld [vmem:[%s6764_s5] ss:$0 sm:$0xff] }
 0x22a   :  { %4773 = vmatprep.subr.bf16.mxu1 %v5025_v55 }
 0x22d   :  { %4774 = vmatpush3.bf16.msra.mxu1 %v5025_v55 }
 0x22e   :  { %4775 = vmatprep.subr.bf16.mxu1 %v5026_v17 }
 0x231   :  { %4776 = vmatpush3.bf16.msra.mxu1 %v5026_v17 }
 0x232   :  { %4777 = vmatprep.subr.bf16.mxu1 %v5027_v8 }
 0x235   :  { %4778 = vmatpush3.bf16.msra.mxu1 %v5027_v8 }
 0x24f   :  { %v4749_v57 = vpop.f32.mrb[128].mxu0 }
 0x250   :  { %v2582_v29 = vpop.f32.mrb[129].mxu0 }
 0x251   :  { %v4750_v44 = vpop.f32.mrb[130].mxu0 }
 0x252   :  { %v2585_v11 = vpop.f32.mrb[131].mxu0 }
 0x253   :  { %v2645_v31 = vadd.f32 %v2585_v11, %v2582_v29 }
 0x255   :  { %v2646_v16 = vadd.f32 %v4749_v57, %v2645_v31 }
 0x257   :  { %v2647_v46 = vadd.f32 %v4750_v44, %v2646_v16 }
 0x25f   :  { %v4753_v12 = vpop.f32.mrb[132].mxu0 }
 0x260   :  { %v2598_v48 = vpop.f32.mrb[133].mxu0 }
 0x261   :  { %v2648_v49 = vadd.f32 %v2647_v46, %v2598_v48  ;;  %v4754_v13 = vpop.f32.mrb[134].mxu0 }
 0x262   :  { %v2601_v53 = vpop.f32.mrb[135].mxu0 }
 0x263   :  { %v2649_v5 = vadd.f32 %v2648_v49, %v2601_v53 }
 0x265   :  { %v2650_v28 = vadd.f32 %v4753_v12, %v2649_v5 }
 0x267   :  { %v2651_v40 = vadd.f32 %v4754_v13, %v2650_v28 }
 0x269   :  { %v2652_v14 = vrot.slane %v2651_v40, 4 }
 0x26b   :  { %v2653_v41 = vadd.f32 %v2652_v14, %v2651_v40 }
 0x26d   :  { %v2654_v9 = vrot.slane %v2653_v41, 2 }
 0x26f   :  { %v2655_v61 = vadd.f32 %v2654_v9, %v2653_v41 }
 0x271   :  { %v2656_v43 = vrot.slane %v2655_v61, 1 }
 0x273   :  { %v2657_v62 = vadd.f32 %v2656_v43, %v2655_v61 }
 0x275   :  { %v2659_v25 = vmul.f32 0.015625, %v2657_v62 }
 0x277   :  { %v2660_v15 = vsub.f32 %v2582_v29, %v2659_v25  ;;  %v2661_v63 = vsub.f32 %v2585_v11, %v2659_v25  ;;  %v2662_v1 = vsub.f32 %v4749_v57, %v2659_v25  ;;  %v2663_v2 = vsub.f32 %v4750_v44, %v2659_v25 }
 0x278   :  { %v2664_v3 = vsub.f32 %v2598_v48, %v2659_v25  ;;  %v2665_v45 = vsub.f32 %v2601_v53, %v2659_v25  ;;  %v2666_v59 = vsub.f32 %v4753_v12, %v2659_v25  ;;  %v2667_v50 = vsub.f32 %v4754_v13, %v2659_v25 }
 0x279   :  { %v2668_v18 = vmul.f32 %v2660_v15, %v2660_v15  ;;  %v2669_v10 = vmul.f32 %v2661_v63, %v2661_v63  ;;  %v2670_v20 = vmul.f32 %v2662_v1, %v2662_v1  ;;  %v2671_v21 = vmul.f32 %v2663_v2, %v2663_v2 }
 0x27a   :  { %v2672_v60 = vmul.f32 %v2664_v3, %v2664_v3  ;;  %v2673_v22 = vmul.f32 %v2665_v45, %v2665_v45  ;;  %v2674_v26 = vmul.f32 %v2666_v59, %v2666_v59  ;;  %v2675_v4 = vmul.f32 %v2667_v50, %v2667_v50 }
 0x27b   :  { %v2676_v54 = vadd.f32 %v2669_v10, %v2668_v18 }
 0x27d   :  { %v2677_v23 = vadd.f32 %v2676_v54, %v2670_v20 }
 0x27f   :  { %v2678_v24 = vadd.f32 %v2677_v23, %v2671_v21 }
 0x281   :  { %v2679_v0 = vadd.f32 %v2678_v24, %v2672_v60 }
 0x283   :  { %v2680_v27 = vadd.f32 %v2679_v0, %v2673_v22 }
 0x285   :  { %v2681_v56 = vadd.f32 %v2680_v27, %v2674_v26 }
 0x287   :  { %v2682_v6 = vadd.f32 %v2681_v56, %v2675_v4 }
 0x289   :  { %v2683_v7 = vrot.slane %v2682_v6, 4 }
 0x28b   :  { %v2684_v30 = vadd.f32 %v2683_v7, %v2682_v6 }
 0x28d   :  { %v2685_v32 = vrot.slane %v2684_v30, 2 }
 0x28f   :  { %v2686_v42 = vadd.f32 %v2685_v32, %v2684_v30 }
 0x291   :  { %v2687_v33 = vrot.slane %v2686_v42, 1 }
 0x293   :  { %v2688_v47 = vadd.f32 %v2687_v33, %v2686_v42 }
 0x295   :  { %v2689_v58 = vmul.f32 0.015625, %v2688_v47 }
 0x297   :  { %v2690_v34 = vadd.f32 1e-05, %v2689_v58 }
 0x299   :  { %5036 = vrsqrt.f32 %v2690_v34 }
 0x2a3   :  { %v5037_v51 = vpop.eup %5036 }
 0x2a4   :  { %v2694_v36 = vmul.f32 %v5037_v51, %v2662_v1  ;;  %v2695_v37 = vmul.f32 %v5037_v51, %v2663_v2  ;;  %v2697_v19 = vmul.f32 %v5037_v51, %v2665_v45  ;;  %v2692_v52 = vmul.f32 %v5037_v51, %v2660_v15 }
 0x2a5   :  { %v2693_v38 = vmul.f32 %v5037_v51, %v2661_v63  ;;  %v2696_v55 = vmul.f32 %v5037_v51, %v2664_v3  ;;  %v2698_v17 = vmul.f32 %v5037_v51, %v2666_v59  ;;  %v2699_v8 = vmul.f32 %v5037_v51, %v2667_v50 }
 0x2a6   :  { %v2766_v57 = vmul.f32 %v6581_v35, %v2697_v19  ;;  %v2761_v29 = vmul.f32 %v6581_v35, %v2692_v52  ;;  %v2763_v44 = vmul.f32 %v6581_v35, %v2694_v36  ;;  %v2764_v11 = vmul.f32 %v6581_v35, %v2695_v37 }
 0x2a7   :  { %v2762_v31 = vmul.f32 %v6581_v35, %v2693_v38  ;;  %v2765_v16 = vmul.f32 %v6581_v35, %v2696_v55  ;;  %v2767_v46 = vmul.f32 %v6581_v35, %v2698_v17  ;;  %v2768_v12 = vmul.f32 %v6581_v35, %v2699_v8 }
 0x2a8   :  { %v2784_v48 = vadd.f32 %v6586_v39, %v2761_v29  ;;  %v2786_v49 = vadd.f32 %v6586_v39, %v2763_v44  ;;  %v2787_v13 = vadd.f32 %v6586_v39, %v2764_v11  ;;  %v2789_v53 = vadd.f32 %v6586_v39, %v2766_v57 }
 0x2a9   :  { %v2785_v5 = vadd.f32 %v6586_v39, %v2762_v31  ;;  %v2788_v28 = vadd.f32 %v6586_v39, %v2765_v16  ;;  %v2790_v40 = vadd.f32 %v6586_v39, %v2767_v46  ;;  %v2791_v14 = vadd.f32 %v6586_v39, %v2768_v12 }
 0x2aa   :  { %v2800_v41 = vmax.f32 %v2784_v48, 0.0  ;;  %v2802_v9 = vmax.f32 %v2786_v49, 0.0  ;;  %v2803_v61 = vmax.f32 %v2787_v13, 0.0  ;;  %v2805_v43 = vmax.f32 %v2789_v53, 0.0 }
 0x2ab   :  { %v2801_v62 = vmax.f32 %v2785_v5, 0.0  ;;  %v2804_v25 = vmax.f32 %v2788_v28, 0.0  ;;  %v2806_v15 = vmax.f32 %v2790_v40, 0.0  ;;  %v2807_v63 = vmax.f32 %v2791_v14, 0.0 }
 0x2ac   :  { %v2817_v1 = vpack.c.bf16 %v2803_v61, %v2802_v9 }
 0x2ad   :  { %v2816_v2 = vpack.c.bf16 %v2801_v62, %v2800_v41  ;;  %v2818_v3 = vpack.c.bf16 %v2805_v43, %v2804_v25  ;;  %v2819_v45 = vpack.c.bf16 %v2807_v63, %v2806_v15 }
 0x2af   :  { %4779 = vmatprep.mubr.bf16.mxu1 %v2816_v2 }
 0x2b0   :  { %4780 = vmatmul.mubr.bf16.vlgmr.msra.gmra.mrb[128].mxu1 %v2817_v1 }
 0x2b1   :  { %4783 = vmatprep.mubr.bf16.mxu1 %v2818_v3 }
 0x2b8   :  { %4784 = vmatmul.mubr.bf16.gmra.mrb[132].mxu1 %v2819_v45 }
 0x2e6   :  { %v4757_v59 = vpop.f32.mrb[136].mxu0 }
 0x2e7   :  { %v2614_v50 = vpop.f32.mrb[137].mxu0 }
 0x2e8   :  { %v4758_v18 = vpop.f32.mrb[138].mxu0 }
 0x2e9   :  { %v2617_v10 = vpop.f32.mrb[139].mxu0 }
 0x2ea   :  { %v2700_v20 = vadd.f32 %v2617_v10, %v2614_v50 }
 0x2ec   :  { %v2701_v54 = vadd.f32 %v4757_v59, %v2700_v20 }
 0x2ee   :  { %v2702_v21 = vadd.f32 %v4758_v18, %v2701_v54 }
 0x2f6   :  { %v4761_v23 = vpop.f32.mrb[140].mxu0 }
 0x2f7   :  { %v2630_v60 = vpop.f32.mrb[141].mxu0 }
 0x2f8   :  { %v2703_v24 = vadd.f32 %v2702_v21, %v2630_v60  ;;  %v4762_v22 = vpop.f32.mrb[142].mxu0 }
 0x2f9   :  { %v2633_v0 = vpop.f32.mrb[143].mxu0 }
 0x2fa   :  { %v2704_v26 = vadd.f32 %v2703_v24, %v2633_v0 }
 0x2fc   :  { %v2705_v27 = vadd.f32 %v4761_v23, %v2704_v26 }
 0x2fe   :  { %v2706_v4 = vadd.f32 %v4762_v22, %v2705_v27 }
 0x300   :  { %v2707_v56 = vrot.slane %v2706_v4, 4 }
 0x302   :  { %v2708_v6 = vadd.f32 %v2707_v56, %v2706_v4 }
 0x304   :  { %v2709_v7 = vrot.slane %v2708_v6, 2 }
 0x306   :  { %v2710_v30 = vadd.f32 %v2709_v7, %v2708_v6 }
 0x308   :  { %v2711_v32 = vrot.slane %v2710_v30, 1 }
 0x30a   :  { %v2712_v42 = vadd.f32 %v2711_v32, %v2710_v30 }
 0x30c   :  { %v2713_v33 = vmul.f32 0.015625, %v2712_v42 }
 0x30e   :  { %v2714_v47 = vsub.f32 %v2614_v50, %v2713_v33  ;;  %v2715_v58 = vsub.f32 %v2617_v10, %v2713_v33  ;;  %v2716_v34 = vsub.f32 %v4757_v59, %v2713_v33  ;;  %v2717_v51 = vsub.f32 %v4758_v18, %v2713_v33 }
 0x30f   :  { %v2718_v36 = vsub.f32 %v2630_v60, %v2713_v33  ;;  %v2719_v37 = vsub.f32 %v2633_v0, %v2713_v33  ;;  %v2720_v19 = vsub.f32 %v4761_v23, %v2713_v33  ;;  %v2721_v52 = vsub.f32 %v4762_v22, %v2713_v33 }
 0x310   :  { %v2722_v38 = vmul.f32 %v2714_v47, %v2714_v47  ;;  %v2723_v55 = vmul.f32 %v2715_v58, %v2715_v58  ;;  %v2724_v17 = vmul.f32 %v2716_v34, %v2716_v34  ;;  %v2725_v57 = vmul.f32 %v2717_v51, %v2717_v51 }
 0x311   :  { %v2726_v44 = vmul.f32 %v2718_v36, %v2718_v36  ;;  %v2727_v31 = vmul.f32 %v2719_v37, %v2719_v37  ;;  %v2728_v46 = vmul.f32 %v2720_v19, %v2720_v19  ;;  %v2729_v48 = vmul.f32 %v2721_v52, %v2721_v52 }
 0x312   :  { %v2730_v8 = vadd.f32 %v2723_v55, %v2722_v38  ;;  %v5032_v38 = vld [vmem:[%s6768_s9 + $0x20] sm:$0xff]   ;;  %v5033_v55 = vld [vmem:[%s6768_s9 + $0x28] sm:$0xff]  }
 0x314   :  { %v2731_v29 = vadd.f32 %v2730_v8, %v2724_v17  ;;  %v5034_v17 = vld [vmem:[%s6768_s9 + $0x30] sm:$0xff]   ;;  %v5035_v8 = vld [vmem:[%s6768_s9 + $0x38] sm:$0xff]  }
 0x316   :  { %v2732_v11 = vadd.f32 %v2731_v29, %v2725_v57 }
 0x318   :  { %v2733_v16 = vadd.f32 %v2732_v11, %v2726_v44 }
 0x31a   :  { %v2734_v12 = vadd.f32 %v2733_v16, %v2727_v31 }
 0x31c   :  { %v2735_v49 = vadd.f32 %v2734_v12, %v2728_v46 }
 0x31e   :  { %v2736_v13 = vadd.f32 %v2735_v49, %v2729_v48 }
 0x320   :  { %v2737_v53 = vrot.slane %v2736_v13, 4 }
 0x322   :  { %v2738_v5 = vadd.f32 %v2737_v53, %v2736_v13 }
 0x324   :  { %v2739_v28 = vrot.slane %v2738_v5, 2 }
 0x326   :  { %v2740_v40 = vadd.f32 %v2739_v28, %v2738_v5 }
 0x328   :  { %v2741_v14 = vrot.slane %v2740_v40, 1 }
 0x32a   :  { %v2742_v41 = vadd.f32 %v2741_v14, %v2740_v40 }
 0x32c   :  { %v2743_v9 = vmul.f32 0.015625, %v2742_v41 }
 0x32e   :  { %v2744_v61 = vadd.f32 1e-05, %v2743_v9 }
 0x330   :  { %5038 = vrsqrt.f32 %v2744_v61 }
 0x33a   :  { %v5039_v43 = vpop.eup %5038 }
 0x33b   :  { %v2751_v62 = vmul.f32 %v5039_v43, %v2719_v37  ;;  %v2746_v25 = vmul.f32 %v5039_v43, %v2714_v47  ;;  %v2747_v15 = vmul.f32 %v5039_v43, %v2715_v58  ;;  %v2748_v63 = vmul.f32 %v5039_v43, %v2716_v34  ;;  %v5029_v37 = vld [vmem:[%s6768_s9 + $0x8] sm:$0xff]  }
 0x33c   :  { %v2749_v1 = vmul.f32 %v5039_v43, %v2717_v51  ;;  %v2750_v2 = vmul.f32 %v5039_v43, %v2718_v36  ;;  %v2752_v3 = vmul.f32 %v5039_v43, %v2720_v19  ;;  %v2753_v45 = vmul.f32 %v5039_v43, %v2721_v52  ;;  %v5030_v19 = vld [vmem:[%s6768_s9 + $0x10] sm:$0xff]   ;;  %v5031_v52 = vld [vmem:[%s6768_s9 + $0x18] sm:$0xff]  }
 0x33d   :  { %v2774_v59 = vmul.f32 %v6581_v35, %v2751_v62  ;;  %v2769_v50 = vmul.f32 %v6581_v35, %v2746_v25  ;;  %v2770_v18 = vmul.f32 %v6581_v35, %v2747_v15  ;;  %v2771_v10 = vmul.f32 %v6581_v35, %v2748_v63 }
 0x33e   :  { %v2772_v20 = vmul.f32 %v6581_v35, %v2749_v1  ;;  %v2773_v54 = vmul.f32 %v6581_v35, %v2750_v2  ;;  %v2775_v21 = vmul.f32 %v6581_v35, %v2752_v3  ;;  %v2776_v23 = vmul.f32 %v6581_v35, %v2753_v45 }
 0x33f   :  { %v2792_v60 = vadd.f32 %v6586_v39, %v2769_v50  ;;  %v2793_v24 = vadd.f32 %v6586_v39, %v2770_v18  ;;  %v2794_v22 = vadd.f32 %v6586_v39, %v2771_v10  ;;  %v2797_v0 = vadd.f32 %v6586_v39, %v2774_v59 }
 0x340   :  { %v2795_v26 = vadd.f32 %v6586_v39, %v2772_v20  ;;  %v2796_v27 = vadd.f32 %v6586_v39, %v2773_v54  ;;  %v2798_v4 = vadd.f32 %v6586_v39, %v2775_v21  ;;  %v2799_v56 = vadd.f32 %v6586_v39, %v2776_v23  ;;  %v5028_v39 = vld [vmem:[%s6768_s9] sm:$0xff]  }
 0x341   :  { %v2808_v6 = vmax.f32 %v2792_v60, 0.0  ;;  %v2809_v7 = vmax.f32 %v2793_v24, 0.0  ;;  %v2810_v30 = vmax.f32 %v2794_v22, 0.0  ;;  %v2813_v35 = vmax.f32 %v2797_v0, 0.0  ;;  %4795 = vmatprep.subr.bf16.mxu0 %v5028_v39 }
 0x342   :  { %v2811_v32 = vmax.f32 %v2795_v26, 0.0  ;;  %v2812_v42 = vmax.f32 %v2796_v27, 0.0  ;;  %v2814_v33 = vmax.f32 %v2798_v4, 0.0  ;;  %v2815_v47 = vmax.f32 %v2799_v56, 0.0  ;;  %4796 = vmatpush3.bf16.msra.mxu0 %v5028_v39 }
 0x343   :  { %v2820_v58 = vpack.c.bf16 %v2809_v7, %v2808_v6  ;;  %4797 = vmatprep.subr.bf16.mxu0 %v5029_v37 }
 0x344   :  { %v2821_v34 = vpack.c.bf16 %v2811_v32, %v2810_v30  ;;  %v2822_v51 = vpack.c.bf16 %v2813_v35, %v2812_v42  ;;  %v2823_v36 = vpack.c.bf16 %v2815_v47, %v2814_v33 }
 0x345   :  { %4787 = vmatprep.mubr.bf16.mxu1 %v2820_v58 }
 0x346   :  { %4788 = vmatmul.mubr.bf16.gmra.mrb[136].mxu1 %v2821_v34  ;;  %4798 = vmatpush3.bf16.msra.mxu0 %v5029_v37 }
 0x347   :  { %4791 = vmatprep.mubr.bf16.mxu1 %v2822_v51  ;;  %4799 = vmatprep.subr.bf16.mxu0 %v5030_v19  ;;  %v6647_v51 = vld [vmem:[%s6766_s7] ss:$0 sm:$0xff]  ;;  %s5212_s7 = smov [#allocation5]  }
 0x34a   :  { %4800 = vmatpush3.bf16.msra.mxu0 %v5030_v19 }
 0x34b   :  { %4801 = vmatprep.subr.bf16.mxu0 %v5031_v52 }
 0x34e   :  { %4792 = vmatmul.mubr.bf16.gmra.mrb[140].mxu1 %v2823_v36  ;;  %4802 = vmatpush3.bf16.msra.mxu0 %v5031_v52 }
 0x34f   :  { %4803 = vmatprep.subr.bf16.mxu0 %v5032_v38 }
 0x352   :  { %4804 = vmatpush3.bf16.msra.mxu0 %v5032_v38  ;;  %v6652_v38 = vld [vmem:[%s6767_s8] ss:$0 sm:$0xff]  ;;  %s3838_s8 = sshll.u32 %s5212_s7, 4  ;;  %s3839_s8 = int_to_ptr.vmem [resolvable:$true] %s3838_s8 }
 0x353   :  { %4805 = vmatprep.subr.bf16.mxu0 %v5033_v55  ;;  %s5183_s14 = scalar_lea.vmem %s3839_s8, 16  ;;  %s5187_s16 = scalar_lea.vmem %s3839_s8, 32 }
 0x354   :  { %p5184_p8 = scmp.ne.s32.totalorder %s3839_s8, %s5183_s14  ;;  %p5188_p9 = scmp.lt.s32.totalorder %s3839_s8, %s3839_s8 }
 0x355   :  { %p5189_p10 = scmp.lt.s32.totalorder %s5187_s16, %s5183_s14 }
 0x356   :  { %4806 = vmatpush3.bf16.msra.mxu0 %v5033_v55 }
 0x357   :  { %4807 = vmatprep.subr.bf16.mxu0 %v5034_v17  ;;  %p5190_p11 = por %p5189_p10, %p5188_p9 }
 0x359   :  { %p5191_p12 = pnand %p5190_p11, %p5184_p8 }
 0x35a   :  { %4808 = vmatpush3.bf16.msra.mxu0 %v5034_v17 }
 0x35b   :  { %4809 = vmatprep.subr.bf16.mxu0 %v5035_v8 }
 0x35e   :  { %4810 = vmatpush3.bf16.msra.mxu0 %v5035_v8 }
 0x383   :  { %v4781_v57 = vpop.f32.mrb[128].mxu1 }
 0x384   :  { %v2922_v29 = vpop.f32.mrb[129].mxu1 }
 0x385   :  { %v4782_v44 = vpop.f32.mrb[130].mxu1 }
 0x386   :  { %v2925_v11 = vpop.f32.mrb[131].mxu1 }
 0x387   :  { %v2985_v31 = vadd.f32 %v2925_v11, %v2922_v29 }
 0x389   :  { %v2986_v16 = vadd.f32 %v4781_v57, %v2985_v31 }
 0x38b   :  { %v4785_v46 = vpop.f32.mrb[132].mxu1  ;;  %v2987_v12 = vadd.f32 %v4782_v44, %v2986_v16 }
 0x38c   :  { %v2938_v48 = vpop.f32.mrb[133].mxu1 }
 0x38d   :  { %v2988_v49 = vadd.f32 %v2987_v12, %v2938_v48  ;;  %v4786_v13 = vpop.f32.mrb[134].mxu1 }
 0x38e   :  { %v2941_v53 = vpop.f32.mrb[135].mxu1 }
 0x38f   :  { %v2989_v5 = vadd.f32 %v2988_v49, %v2941_v53 }
 0x391   :  { %v2990_v28 = vadd.f32 %v4785_v46, %v2989_v5 }
 0x393   :  { %v2991_v40 = vadd.f32 %v4786_v13, %v2990_v28 }
 0x395   :  { %v2992_v14 = vrot.slane %v2991_v40, 4 }
 0x397   :  { %v2993_v41 = vadd.f32 %v2992_v14, %v2991_v40 }
 0x399   :  { %v2994_v9 = vrot.slane %v2993_v41, 2 }
 0x39b   :  { %v2995_v61 = vadd.f32 %v2994_v9, %v2993_v41 }
 0x39d   :  { %v2996_v43 = vrot.slane %v2995_v61, 1 }
 0x39f   :  { %v2997_v62 = vadd.f32 %v2996_v43, %v2995_v61 }
 0x3a1   :  { %v2998_v25 = vmul.f32 0.015625, %v2997_v62 }
 0x3a3   :  { %v2999_v15 = vsub.f32 %v2922_v29, %v2998_v25  ;;  %v3000_v63 = vsub.f32 %v2925_v11, %v2998_v25  ;;  %v3001_v1 = vsub.f32 %v4781_v57, %v2998_v25  ;;  %v3002_v2 = vsub.f32 %v4782_v44, %v2998_v25 }
 0x3a4   :  { %v3003_v3 = vsub.f32 %v2938_v48, %v2998_v25  ;;  %v3004_v45 = vsub.f32 %v2941_v53, %v2998_v25  ;;  %v3005_v59 = vsub.f32 %v4785_v46, %v2998_v25  ;;  %v3006_v50 = vsub.f32 %v4786_v13, %v2998_v25 }
 0x3a5   :  { %v3007_v18 = vmul.f32 %v2999_v15, %v2999_v15  ;;  %v3008_v10 = vmul.f32 %v3000_v63, %v3000_v63  ;;  %v3009_v20 = vmul.f32 %v3001_v1, %v3001_v1  ;;  %v3010_v21 = vmul.f32 %v3002_v2, %v3002_v2 }
 0x3a6   :  { %v3011_v60 = vmul.f32 %v3003_v3, %v3003_v3  ;;  %v3012_v22 = vmul.f32 %v3004_v45, %v3004_v45  ;;  %v3013_v26 = vmul.f32 %v3005_v59, %v3005_v59  ;;  %v3014_v4 = vmul.f32 %v3006_v50, %v3006_v50 }
 0x3a7   :  { %v3015_v54 = vadd.f32 %v3008_v10, %v3007_v18 }
 0x3a9   :  { %v3016_v23 = vadd.f32 %v3015_v54, %v3009_v20 }
 0x3ab   :  { %v3017_v24 = vadd.f32 %v3016_v23, %v3010_v21 }
 0x3ad   :  { %v3018_v0 = vadd.f32 %v3017_v24, %v3011_v60 }
 0x3af   :  { %v3019_v27 = vadd.f32 %v3018_v0, %v3012_v22 }
 0x3b1   :  { %v3020_v56 = vadd.f32 %v3019_v27, %v3013_v26 }
 0x3b3   :  { %v3021_v6 = vadd.f32 %v3020_v56, %v3014_v4 }
 0x3b5   :  { %v3022_v7 = vrot.slane %v3021_v6, 4 }
 0x3b7   :  { %v3023_v30 = vadd.f32 %v3022_v7, %v3021_v6 }
 0x3b9   :  { %v3024_v35 = vrot.slane %v3023_v30, 2 }
 0x3bb   :  { %v3025_v32 = vadd.f32 %v3024_v35, %v3023_v30 }
 0x3bd   :  { %v3026_v42 = vrot.slane %v3025_v32, 1 }
 0x3bf   :  { %v3027_v33 = vadd.f32 %v3026_v42, %v3025_v32 }
 0x3c1   :  { %v3028_v47 = vmul.f32 0.015625, %v3027_v33 }
 0x3c3   :  { %v3029_v58 = vadd.f32 1e-05, %v3028_v47 }
 0x3c5   :  { %5040 = vrsqrt.f32 %v3029_v58 }
 0x3cf   :  { %v5041_v34 = vpop.eup %5040 }
 0x3d0   :  { %v3033_v36 = vmul.f32 %v5041_v34, %v3001_v1  ;;  %v3034_v39 = vmul.f32 %v5041_v34, %v3002_v2  ;;  %v3036_v37 = vmul.f32 %v5041_v34, %v3004_v45  ;;  %v3031_v19 = vmul.f32 %v5041_v34, %v2999_v15 }
 0x3d1   :  { %v3032_v52 = vmul.f32 %v5041_v34, %v3000_v63  ;;  %v3035_v55 = vmul.f32 %v5041_v34, %v3003_v3  ;;  %v3037_v17 = vmul.f32 %v5041_v34, %v3005_v59  ;;  %v3038_v8 = vmul.f32 %v5041_v34, %v3006_v50 }
 0x3d2   :  { %v3105_v57 = vmul.f32 %v6647_v51, %v3036_v37  ;;  %v3100_v29 = vmul.f32 %v6647_v51, %v3031_v19  ;;  %v3102_v44 = vmul.f32 %v6647_v51, %v3033_v36  ;;  %v3103_v11 = vmul.f32 %v6647_v51, %v3034_v39 }
 0x3d3   :  { %v3101_v31 = vmul.f32 %v6647_v51, %v3032_v52  ;;  %v3104_v16 = vmul.f32 %v6647_v51, %v3035_v55  ;;  %v3106_v46 = vmul.f32 %v6647_v51, %v3037_v17  ;;  %v3107_v12 = vmul.f32 %v6647_v51, %v3038_v8 }
 0x3d4   :  { %v3123_v48 = vadd.f32 %v6652_v38, %v3100_v29  ;;  %v3125_v49 = vadd.f32 %v6652_v38, %v3102_v44  ;;  %v3126_v13 = vadd.f32 %v6652_v38, %v3103_v11  ;;  %v3128_v53 = vadd.f32 %v6652_v38, %v3105_v57 }
 0x3d5   :  { %v3124_v5 = vadd.f32 %v6652_v38, %v3101_v31  ;;  %v3127_v28 = vadd.f32 %v6652_v38, %v3104_v16  ;;  %v3129_v40 = vadd.f32 %v6652_v38, %v3106_v46  ;;  %v3130_v14 = vadd.f32 %v6652_v38, %v3107_v12 }
 0x3d6   :  { %v3139_v41 = vmax.f32 %v3123_v48, 0.0  ;;  %v3141_v9 = vmax.f32 %v3125_v49, 0.0  ;;  %v3142_v61 = vmax.f32 %v3126_v13, 0.0  ;;  %v3144_v43 = vmax.f32 %v3128_v53, 0.0 }
 0x3d7   :  { %v3140_v62 = vmax.f32 %v3124_v5, 0.0  ;;  %v3143_v25 = vmax.f32 %v3127_v28, 0.0  ;;  %v3145_v15 = vmax.f32 %v3129_v40, 0.0  ;;  %v3146_v63 = vmax.f32 %v3130_v14, 0.0 }
 0x3d8   :  { %v3156_v1 = vpack.c.bf16 %v3142_v61, %v3141_v9 }
 0x3d9   :  { %v3155_v2 = vpack.c.bf16 %v3140_v62, %v3139_v41  ;;  %v3157_v3 = vpack.c.bf16 %v3144_v43, %v3143_v25  ;;  %v3158_v45 = vpack.c.bf16 %v3146_v63, %v3145_v15 }
 0x3db   :  { %4811 = vmatprep.mubr.bf16.mxu0 %v3155_v2 }
 0x3dc   :  { %4812 = vmatmul.mubr.bf16.vlgmr.msra.gmra.mrb[144].mxu0 %v3156_v1 }
 0x3dd   :  { %4815 = vmatprep.mubr.bf16.mxu0 %v3157_v3 }
 0x3e4   :  { %4816 = vmatmul.mubr.bf16.gmra.mrb[148].mxu0 %v3158_v45 }
 0x419   :  { %v4789_v59 = vpop.f32.mrb[136].mxu1 }
 0x41a   :  { %v2954_v50 = vpop.f32.mrb[137].mxu1 }
 0x41b   :  { %v4790_v18 = vpop.f32.mrb[138].mxu1 }
 0x41c   :  { %v2957_v10 = vpop.f32.mrb[139].mxu1 }
 0x41d   :  { %v3039_v20 = vadd.f32 %v2957_v10, %v2954_v50 }
 0x41f   :  { %v3040_v54 = vadd.f32 %v4789_v59, %v3039_v20 }
 0x421   :  { %v4793_v21 = vpop.f32.mrb[140].mxu1  ;;  %v3041_v23 = vadd.f32 %v4790_v18, %v3040_v54 }
 0x422   :  { %v2970_v60 = vpop.f32.mrb[141].mxu1 }
 0x423   :  { %v3042_v24 = vadd.f32 %v3041_v23, %v2970_v60  ;;  %v4794_v22 = vpop.f32.mrb[142].mxu1 }
 0x424   :  { %v2973_v0 = vpop.f32.mrb[143].mxu1 }
 0x425   :  { %v3043_v26 = vadd.f32 %v3042_v24, %v2973_v0 }
 0x427   :  { %v3044_v27 = vadd.f32 %v4793_v21, %v3043_v26 }
 0x429   :  { %v3045_v4 = vadd.f32 %v4794_v22, %v3044_v27 }
 0x42b   :  { %v3046_v56 = vrot.slane %v3045_v4, 4 }
 0x42d   :  { %v3047_v6 = vadd.f32 %v3046_v56, %v3045_v4 }
 0x42f   :  { %v3048_v7 = vrot.slane %v3047_v6, 2 }
 0x431   :  { %v3049_v30 = vadd.f32 %v3048_v7, %v3047_v6 }
 0x433   :  { %v3050_v35 = vrot.slane %v3049_v30, 1 }
 0x435   :  { %v3051_v32 = vadd.f32 %v3050_v35, %v3049_v30 }
 0x437   :  { %v3052_v42 = vmul.f32 0.015625, %v3051_v32 }
 0x439   :  { %v3053_v33 = vsub.f32 %v2954_v50, %v3052_v42  ;;  %v3054_v47 = vsub.f32 %v2957_v10, %v3052_v42  ;;  %v3055_v58 = vsub.f32 %v4789_v59, %v3052_v42  ;;  %v3056_v34 = vsub.f32 %v4790_v18, %v3052_v42 }
 0x43a   :  { %v3057_v36 = vsub.f32 %v2970_v60, %v3052_v42  ;;  %v3058_v39 = vsub.f32 %v2973_v0, %v3052_v42  ;;  %v3059_v37 = vsub.f32 %v4793_v21, %v3052_v42  ;;  %v3060_v19 = vsub.f32 %v4794_v22, %v3052_v42 }
 0x43b   :  { %v3061_v52 = vmul.f32 %v3053_v33, %v3053_v33  ;;  %v3062_v55 = vmul.f32 %v3054_v47, %v3054_v47  ;;  %v3063_v17 = vmul.f32 %v3055_v58, %v3055_v58  ;;  %v3064_v57 = vmul.f32 %v3056_v34, %v3056_v34 }
 0x43c   :  { %v3065_v44 = vmul.f32 %v3057_v36, %v3057_v36  ;;  %v3066_v31 = vmul.f32 %v3058_v39, %v3058_v39  ;;  %v3067_v46 = vmul.f32 %v3059_v37, %v3059_v37  ;;  %v3068_v48 = vmul.f32 %v3060_v19, %v3060_v19 }
 0x43d   :  { %v3069_v8 = vadd.f32 %v3062_v55, %v3061_v52 }
 0x43f   :  { %v3070_v29 = vadd.f32 %v3069_v8, %v3063_v17 }
 0x441   :  { %v3071_v11 = vadd.f32 %v3070_v29, %v3064_v57 }
 0x443   :  { %v3072_v16 = vadd.f32 %v3071_v11, %v3065_v44 }
 0x445   :  { %v3073_v12 = vadd.f32 %v3072_v16, %v3066_v31 }
 0x447   :  { %v3074_v49 = vadd.f32 %v3073_v12, %v3067_v46 }
 0x449   :  { %v3075_v13 = vadd.f32 %v3074_v49, %v3068_v48 }
 0x44b   :  { %v3076_v53 = vrot.slane %v3075_v13, 4 }
 0x44d   :  { %v3077_v5 = vadd.f32 %v3076_v53, %v3075_v13 }
 0x44f   :  { %v3078_v28 = vrot.slane %v3077_v5, 2 }
 0x451   :  { %v3079_v40 = vadd.f32 %v3078_v28, %v3077_v5 }
 0x453   :  { %v3080_v14 = vrot.slane %v3079_v40, 1 }
 0x455   :  { %v3081_v41 = vadd.f32 %v3080_v14, %v3079_v40 }
 0x457   :  { %v3082_v9 = vmul.f32 0.015625, %v3081_v41 }
 0x459   :  { %v3083_v61 = vadd.f32 1e-05, %v3082_v9 }
 0x45b   :  { %5042 = vrsqrt.f32 %v3083_v61 }
 0x465   :  { %v5043_v43 = vpop.eup %5042 }
 0x466   :  { %v3090_v62 = vmul.f32 %v5043_v43, %v3058_v39  ;;  %v3085_v25 = vmul.f32 %v5043_v43, %v3053_v33  ;;  %v3086_v15 = vmul.f32 %v5043_v43, %v3054_v47  ;;  %v3087_v63 = vmul.f32 %v5043_v43, %v3055_v58 }
 0x467   :  { %v3088_v1 = vmul.f32 %v5043_v43, %v3056_v34  ;;  %v3089_v2 = vmul.f32 %v5043_v43, %v3057_v36  ;;  %v3091_v3 = vmul.f32 %v5043_v43, %v3059_v37  ;;  %v3092_v45 = vmul.f32 %v5043_v43, %v3060_v19 }
 0x468   :  { %v3113_v59 = vmul.f32 %v6647_v51, %v3090_v62  ;;  %v3108_v50 = vmul.f32 %v6647_v51, %v3085_v25  ;;  %v3109_v18 = vmul.f32 %v6647_v51, %v3086_v15  ;;  %v3110_v10 = vmul.f32 %v6647_v51, %v3087_v63 }
 0x469   :  { %v3111_v20 = vmul.f32 %v6647_v51, %v3088_v1  ;;  %v3112_v54 = vmul.f32 %v6647_v51, %v3089_v2  ;;  %v3114_v21 = vmul.f32 %v6647_v51, %v3091_v3  ;;  %v3115_v23 = vmul.f32 %v6647_v51, %v3092_v45 }
 0x46a   :  { %v3131_v60 = vadd.f32 %v6652_v38, %v3108_v50  ;;  %v3132_v24 = vadd.f32 %v6652_v38, %v3109_v18  ;;  %v3133_v22 = vadd.f32 %v6652_v38, %v3110_v10  ;;  %v3136_v0 = vadd.f32 %v6652_v38, %v3113_v59 }
 0x46b   :  { %v3134_v26 = vadd.f32 %v6652_v38, %v3111_v20  ;;  %v3135_v27 = vadd.f32 %v6652_v38, %v3112_v54  ;;  %v3137_v4 = vadd.f32 %v6652_v38, %v3114_v21  ;;  %v3138_v56 = vadd.f32 %v6652_v38, %v3115_v23 }
 0x46c   :  { %v3147_v6 = vmax.f32 %v3131_v60, 0.0  ;;  %v3148_v7 = vmax.f32 %v3132_v24, 0.0  ;;  %v3149_v30 = vmax.f32 %v3133_v22, 0.0  ;;  %v3152_v51 = vmax.f32 %v3136_v0, 0.0 }
 0x46d   :  { %v3150_v35 = vmax.f32 %v3134_v26, 0.0  ;;  %v3151_v32 = vmax.f32 %v3135_v27, 0.0  ;;  %v3153_v42 = vmax.f32 %v3137_v4, 0.0  ;;  %v3154_v33 = vmax.f32 %v3138_v56, 0.0 }
 0x46e   :  { %v3159_v47 = vpack.c.bf16 %v3148_v7, %v3147_v6 }
 0x46f   :  { %v3160_v58 = vpack.c.bf16 %v3150_v35, %v3149_v30  ;;  %v3161_v34 = vpack.c.bf16 %v3152_v51, %v3151_v32  ;;  %v3162_v36 = vpack.c.bf16 %v3154_v33, %v3153_v42 }
 0x470   :  { %4819 = vmatprep.mubr.bf16.mxu0 %v3159_v47 }
 0x471   :  { %4820 = vmatmul.mubr.bf16.gmra.mrb[152].mxu0 %v3160_v58 }
 0x472   :  { %4823 = vmatprep.mubr.bf16.mxu0 %v3161_v34 }
 0x479   :  { %4824 = vmatmul.mubr.bf16.gmra.mrb[156].mxu0 %v3162_v36 }
 0x4af   :  { %v4813_v39 = vpop.f32.mrb[144].mxu0 }
 0x4b0   :  { %v3261_v37 = vpop.f32.mrb[145].mxu0 }
 0x4b1   :  { %v4814_v19 = vpop.f32.mrb[146].mxu0 }
 0x4b2   :  { %v3264_v38 = vpop.f32.mrb[147].mxu0 }
 0x4b3   :  { %v3324_v52 = vadd.f32 %v3264_v38, %v3261_v37 }
 0x4b5   :  { %v3325_v55 = vadd.f32 %v4813_v39, %v3324_v52 }
 0x4b7   :  { %v4817_v17 = vpop.f32.mrb[148].mxu0  ;;  %v3326_v8 = vadd.f32 %v4814_v19, %v3325_v55 }
 0x4b8   :  { %v3277_v57 = vpop.f32.mrb[149].mxu0 }
 0x4b9   :  { %v3327_v29 = vadd.f32 %v3326_v8, %v3277_v57  ;;  %v4818_v44 = vpop.f32.mrb[150].mxu0 }
 0x4ba   :  { %v3280_v11 = vpop.f32.mrb[151].mxu0 }
 0x4bb   :  { %v3328_v31 = vadd.f32 %v3327_v29, %v3280_v11 }
 0x4bd   :  { %v3329_v16 = vadd.f32 %v4817_v17, %v3328_v31 }
 0x4bf   :  { %v3330_v46 = vadd.f32 %v4818_v44, %v3329_v16 }
 0x4c1   :  { %v3331_v12 = vrot.slane %v3330_v46, 4 }
 0x4c3   :  { %v3332_v48 = vadd.f32 %v3331_v12, %v3330_v46 }
 0x4c5   :  { %v3333_v49 = vrot.slane %v3332_v48, 2 }
 0x4c7   :  { %v3334_v13 = vadd.f32 %v3333_v49, %v3332_v48 }
 0x4c9   :  { %v3335_v53 = vrot.slane %v3334_v13, 1 }
 0x4cb   :  { %v3336_v5 = vadd.f32 %v3335_v53, %v3334_v13 }
 0x4cd   :  { %v3337_v28 = vmul.f32 0.015625, %v3336_v5 }
 0x4cf   :  { %v3343_v40 = vsub.f32 %v3280_v11, %v3337_v28  ;;  %v3338_v14 = vsub.f32 %v3261_v37, %v3337_v28  ;;  %v3339_v41 = vsub.f32 %v3264_v38, %v3337_v28  ;;  %v3340_v9 = vsub.f32 %v4813_v39, %v3337_v28 }
 0x4d0   :  { %v3341_v61 = vsub.f32 %v4814_v19, %v3337_v28  ;;  %v3342_v43 = vsub.f32 %v3277_v57, %v3337_v28  ;;  %v3344_v62 = vsub.f32 %v4817_v17, %v3337_v28  ;;  %v3345_v25 = vsub.f32 %v4818_v44, %v3337_v28 }
 0x4d1   :  { %v3346_v15 = vmul.f32 %v3338_v14, %v3338_v14  ;;  %v3347_v63 = vmul.f32 %v3339_v41, %v3339_v41  ;;  %v3348_v1 = vmul.f32 %v3340_v9, %v3340_v9  ;;  %v3351_v18 = vmul.f32 %v3343_v40, %v3343_v40 }
 0x4d2   :  { %v3349_v3 = vmul.f32 %v3341_v61, %v3341_v61  ;;  %v3350_v59 = vmul.f32 %v3342_v43, %v3342_v43  ;;  %v3352_v20 = vmul.f32 %v3344_v62, %v3344_v62  ;;  %v3353_v21 = vmul.f32 %v3345_v25, %v3345_v25 }
 0x4d3   :  { %v3354_v2 = vadd.f32 %v3347_v63, %v3346_v15 }
 0x4d5   :  { %v3355_v45 = vadd.f32 %v3354_v2, %v3348_v1 }
 0x4d7   :  { %v3356_v50 = vadd.f32 %v3355_v45, %v3349_v3 }
 0x4d9   :  { %v3357_v10 = vadd.f32 %v3356_v50, %v3350_v59 }
 0x4db   :  { %v3358_v54 = vadd.f32 %v3357_v10, %v3351_v18 }
 0x4dd   :  { %v3359_v23 = vadd.f32 %v3358_v54, %v3352_v20 }
 0x4df   :  { %v3360_v60 = vadd.f32 %v3359_v23, %v3353_v21 }
 0x4e1   :  { %v3361_v24 = vrot.slane %v3360_v60, 4 }
 0x4e3   :  { %v3362_v22 = vadd.f32 %v3361_v24, %v3360_v60 }
 0x4e5   :  { %v3363_v0 = vrot.slane %v3362_v22, 2 }
 0x4e7   :  { %v3364_v26 = vadd.f32 %v3363_v0, %v3362_v22 }
 0x4e9   :  { %v3365_v27 = vrot.slane %v3364_v26, 1 }
 0x4eb   :  { %v3366_v4 = vadd.f32 %v3365_v27, %v3364_v26 }
 0x4ed   :  { %v3367_v56 = vmul.f32 0.015625, %v3366_v4 }
 0x4ef   :  { %v3368_v6 = vadd.f32 1e-05, %v3367_v56 }
 0x4f1   :  { %5044 = vrsqrt.f32 %v3368_v6 }
 0x4fb   :  { %v5045_v7 = vpop.eup %5044 }
 0x4fc   :  { %v3370_v30 = vmul.f32 %v5045_v7, %v3338_v14  ;;  %v3371_v51 = vmul.f32 %v5045_v7, %v3339_v41  ;;  %v3372_v35 = vmul.f32 %v5045_v7, %v3340_v9  ;;  %v3373_v32 = vmul.f32 %v5045_v7, %v3341_v61 }
 0x4fd   :  { %v3374_v42 = vmul.f32 %v5045_v7, %v3342_v43  ;;  %v3375_v33 = vmul.f32 %v5045_v7, %v3343_v40  ;;  %v3376_v47 = vmul.f32 %v5045_v7, %v3344_v62  ;;  %v3377_v58 = vmul.f32 %v5045_v7, %v3345_v25 }
 0x4fe   :  { %3432 = vxpose.xlu0.b32.start [1/8] (short) %v3370_v30, 128 }
 0x502   :  { %3433 = vxpose.xlu0.b32.cont [2/8] (short) %v3371_v51, 128 }
 0x506   :  { %3434 = vxpose.xlu0.b32.cont [3/8] (short) %v3372_v35, 128 }
 0x50a   :  { %3435 = vxpose.xlu0.b32.cont [4/8] (short) %v3373_v32, 128 }
 0x50e   :  { %3436 = vxpose.xlu0.b32.cont [5/8] (short) %v3374_v42, 128 }
 0x512   :  { %3437 = vxpose.xlu0.b32.cont [6/8] (short) %v3375_v33, 128 }
 0x516   :  { %3438 = vxpose.xlu0.b32.cont [7/8] (short) %v3376_v47, 128 }
 0x51a   :  { %3439 = vxpose.xlu0.b32.end [8/8] (short) %v3377_v58, 128 }
 0x544   :  { %v4821_v34 = vpop.f32.mrb[152].mxu0 }
 0x545   :  { %v3293_v36 = vpop.f32.mrb[153].mxu0 }
 0x546   :  { %v4822_v39 = vpop.f32.mrb[154].mxu0 }
 0x547   :  { %v3296_v37 = vpop.f32.mrb[155].mxu0 }
 0x548   :  { %v3378_v19 = vadd.f32 %v3296_v37, %v3293_v36 }
 0x54a   :  { %v3379_v38 = vadd.f32 %v4821_v34, %v3378_v19 }
 0x54c   :  { %v4825_v52 = vpop.f32.mrb[156].mxu0  ;;  %v3380_v55 = vadd.f32 %v4822_v39, %v3379_v38 }
 0x54d   :  { %v3309_v17 = vpop.f32.mrb[157].mxu0 }
 0x54e   :  { %v3381_v8 = vadd.f32 %v3380_v55, %v3309_v17  ;;  %v4826_v57 = vpop.f32.mrb[158].mxu0 }
 0x54f   :  { %v3312_v29 = vpop.f32.mrb[159].mxu0 }
 0x550   :  { %v3382_v44 = vadd.f32 %v3381_v8, %v3312_v29 }
 0x552   :  { %v3383_v11 = vadd.f32 %v4825_v52, %v3382_v44 }
 0x554   :  { %v3384_v31 = vadd.f32 %v4826_v57, %v3383_v11 }
 0x556   :  { %v3385_v16 = vrot.slane %v3384_v31, 4 }
 0x558   :  { %v3386_v46 = vadd.f32 %v3385_v16, %v3384_v31 }
 0x55a   :  { %v3387_v12 = vrot.slane %v3386_v46, 2 }
 0x55c   :  { %v3388_v48 = vadd.f32 %v3387_v12, %v3386_v46 }
 0x55e   :  { %v3389_v49 = vrot.slane %v3388_v48, 1 }
 0x560   :  { %v3390_v13 = vadd.f32 %v3389_v49, %v3388_v48  ;;  %v3674_v48 = vlaneseq }
 0x562   :  { %v3391_v53 = vmul.f32 0.015625, %v3390_v13  ;;  %v6702_v49 = vshrl.u32 %v3674_v48, 7 }
 0x564   :  { %v3392_v5 = vsub.f32 %v3293_v36, %v3391_v53  ;;  %v3393_v28 = vsub.f32 %v3296_v37, %v3391_v53  ;;  %v3394_v40 = vsub.f32 %v4821_v34, %v3391_v53  ;;  %v3395_v14 = vsub.f32 %v4822_v39, %v3391_v53 }
 0x565   :  { %v3396_v41 = vsub.f32 %v3309_v17, %v3391_v53  ;;  %v3397_v9 = vsub.f32 %v3312_v29, %v3391_v53  ;;  %v3398_v61 = vsub.f32 %v4825_v52, %v3391_v53  ;;  %v3399_v43 = vsub.f32 %v4826_v57, %v3391_v53 }
 0x566   :  { %v3400_v62 = vmul.f32 %v3392_v5, %v3392_v5  ;;  %v3401_v25 = vmul.f32 %v3393_v28, %v3393_v28  ;;  %v3402_v15 = vmul.f32 %v3394_v40, %v3394_v40  ;;  %v3403_v1 = vmul.f32 %v3395_v14, %v3395_v14 }
 0x567   :  { %v3404_v3 = vmul.f32 %v3396_v41, %v3396_v41  ;;  %v3405_v59 = vmul.f32 %v3397_v9, %v3397_v9  ;;  %v3406_v18 = vmul.f32 %v3398_v61, %v3398_v61  ;;  %v3407_v20 = vmul.f32 %v3399_v43, %v3399_v43 }
 0x568   :  { %v3408_v63 = vadd.f32 %v3401_v25, %v3400_v62 }
 0x56a   :  { %v3409_v2 = vadd.f32 %v3408_v63, %v3402_v15 }
 0x56c   :  { %v3410_v45 = vadd.f32 %v3409_v2, %v3403_v1  ;;  %v3678_v2 = vadd.s32 24, %v6702_v49 }
 0x56e   :  { %v3411_v50 = vadd.f32 %v3410_v45, %v3404_v3  ;;  %v3677_v45 = vadd.s32 16, %v6702_v49 }
 0x570   :  { %v3412_v10 = vadd.f32 %v3411_v50, %v3405_v59 }
 0x572   :  { %v3413_v54 = vadd.f32 %v3412_v10, %v3406_v18  ;;  %v3679_v10 = vadd.s32 32, %v6702_v49 }
 0x574   :  { %v3414_v21 = vadd.f32 %v3413_v54, %v3407_v20 }
 0x576   :  { %v3415_v23 = vrot.slane %v3414_v21, 4 }
 0x578   :  { %v3416_v60 = vadd.f32 %v3415_v23, %v3414_v21 }
 0x57a   :  { %v3417_v24 = vrot.slane %v3416_v60, 2 }
 0x57c   :  { %v3418_v22 = vadd.f32 %v3417_v24, %v3416_v60 }
 0x57e   :  { %v3419_v0 = vrot.slane %v3418_v22, 1  ;;  %v3448_v39 = vpop.trf.xlu0 }
 0x57f   :  { %4843 = vmatprep.mubr.msk.f32.mxu1 %vm3464_vm1, %v3448_v39 }
 0x580   :  { %v3420_v26 = vadd.f32 %v3419_v0, %v3418_v22 }
 0x582   :  { %v3421_v27 = vmul.f32 0.015625, %v3420_v26  ;;  %v3449_v37 = vpop.trf.xlu0 }
 0x584   :  { %v3422_v4 = vadd.f32 1e-05, %v3421_v27 }
 0x586   :  { %5046 = vrsqrt.f32 %v3422_v4  ;;  %v3450_v19 = vpop.trf.xlu0 }
 0x58a   :  { %v3451_v38 = vpop.trf.xlu0 }
 0x58e   :  { %v3452_v52 = vpop.trf.xlu0 }
 0x590   :  { %v5047_v56 = vpop.eup %5046 }
 0x591   :  { %v3429_v6 = vmul.f32 %v5047_v56, %v3397_v9  ;;  %v3424_v7 = vmul.f32 %v5047_v56, %v3392_v5  ;;  %v3425_v30 = vmul.f32 %v5047_v56, %v3393_v28  ;;  %v3426_v51 = vmul.f32 %v5047_v56, %v3394_v40 }
 0x592   :  { %v3427_v35 = vmul.f32 %v5047_v56, %v3395_v14  ;;  %v3428_v32 = vmul.f32 %v5047_v56, %v3396_v41  ;;  %v3430_v42 = vmul.f32 %v5047_v56, %v3398_v61  ;;  %v3431_v33 = vmul.f32 %v5047_v56, %v3399_v43  ;;  %v3453_v55 = vpop.trf.xlu0 }
 0x593   :  { %v4867_v47 = vpack.c.bf16 %v3425_v30, %v3424_v7  ;;  %v3676_v5 = vadd.s32 8, %v6702_v49  ;;  %v6705_v28 = vand.u32 127, %v3674_v48 }
 0x594   :  { %v4871_v58 = vpack.c.bf16 %v3427_v35, %v3426_v51  ;;  %v4875_v34 = vpack.c.bf16 %v3429_v6, %v3428_v32  ;;  %v4879_v36 = vpack.c.bf16 %v3431_v33, %v3430_v42 }
 0x595   :  { %4868 = vmatprep.subr.bf16.mxu1 %v4867_v47  ;;  %vm3694_vm2 = vcmp.eq.s32.totalorder %v3676_v5, %v6705_v28  ;;  %vm3693_vm3 = vcmp.eq.s32.totalorder %v6702_v49, %v6705_v28  ;;  %vm3696_vm4 = vcmp.eq.s32.totalorder %v3678_v2, %v6705_v28  ;;  %vm3695_vm5 = vcmp.eq.s32.totalorder %v3677_v45, %v6705_v28 }
 0x596   :  { %4870 = vmatpush3.bf16.msra.mxu1 %v4867_v47  ;;  %v3454_v17 = vpop.trf.xlu0  ;;  %vm3697_vm6 = vcmp.eq.s32.totalorder %v3679_v10, %v6705_v28 }
 0x597   :  { %4872 = vmatprep.subr.bf16.mxu1 %v4871_v58 }
 0x59a   :  { %4874 = vmatpush3.bf16.msra.mxu1 %v4871_v58  ;;  %v3455_v8 = vpop.trf.xlu0  ;;  %v3680_v58 = vadd.s32 40, %v6702_v49 }
 0x59b   :  { %4876 = vmatprep.subr.bf16.mxu1 %v4875_v34 }
 0x59c   :  { %vm3698_vm7 = vcmp.eq.s32.totalorder %v3680_v58, %v6705_v28 }
 0x59e   :  { %4878 = vmatpush3.bf16.msra.mxu1 %v4875_v34  ;;  %v3456_v57 = vpop.trf.xlu0 }
 0x59f   :  { %4880 = vmatprep.subr.bf16.mxu1 %v4879_v36 }
 0x5a2   :  { %4882 = vmatpush3.bf16.msra.mxu1 %v4879_v36  ;;  %v3457_v29 = vpop.trf.xlu0 }
 0x5a5   :  { %4844 = vmatmul.mubr.msk.f32.vlgmr.msra.gmra.mrb[144].mxu1 %vm3464_vm1, %v3449_v37 }
 0x5a6   :  { %4846 = vmatprep.mubr.msk.f32.mxu1 %vm3464_vm1, %v3450_v19  ;;  %v3458_v44 = vpop.trf.xlu0 }
 0x5a9   :  { %4847 = vmatmul.mubr.msk.f32.gmra.mrb[146].mxu1 %vm3464_vm1, %v3451_v38 }
 0x5aa   :  { %4849 = vmatprep.mubr.msk.f32.mxu1 %vm3464_vm1, %v3452_v52  ;;  %v3459_v11 = vpop.trf.xlu0 }
 0x5ad   :  { %4850 = vmatmul.mubr.msk.f32.gmra.mrb[148].mxu1 %vm3464_vm1, %v3453_v55 }
 0x5ae   :  { %4852 = vmatprep.mubr.msk.f32.mxu1 %vm3464_vm1, %v3454_v17  ;;  %v3460_v31 = vpop.trf.xlu0 }
 0x5b1   :  { %4853 = vmatmul.mubr.msk.f32.gmra.mrb[150].mxu1 %vm3464_vm1, %v3455_v8 }
 0x5b2   :  { %4855 = vmatprep.mubr.msk.f32.mxu1 %vm3464_vm1, %v3456_v57  ;;  %v3461_v16 = vpop.trf.xlu0  ;;  %v3681_v57 = vadd.s32 48, %v6702_v49 }
 0x5b4   :  { %vm3699_vm8 = vcmp.eq.s32.totalorder %v3681_v57, %v6705_v28 }
 0x5b5   :  { %4856 = vmatmul.mubr.msk.f32.gmra.mrb[152].mxu1 %vm3464_vm1, %v3457_v29 }
 0x5b6   :  { %4858 = vmatprep.mubr.msk.f32.mxu1 %vm3464_vm1, %v3458_v44  ;;  %v3462_v46 = vpop.trf.xlu0 }
 0x5b9   :  { %4859 = vmatmul.mubr.msk.f32.gmra.mrb[154].mxu1 %vm3464_vm1, %v3459_v11 }
 0x5ba   :  { %4861 = vmatprep.mubr.msk.f32.mxu1 %vm3464_vm1, %v3460_v31  ;;  %v3463_v12 = vpop.trf.xlu0 }
 0x5bd   :  { %4862 = vmatmul.mubr.msk.f32.gmra.mrb[156].mxu1 %vm3464_vm1, %v3461_v16 }
 0x5be   :  { %4864 = vmatprep.mubr.msk.f32.mxu1 %vm3464_vm1, %v3462_v46 }
 0x5c1   :  { %4865 = vmatmul.mubr.msk.f32.gmra.mrb[158].mxu1 %vm3464_vm1, %v3463_v12 }
 0x678   :  { %v4845_v13 = vpop.f32.mrb[144].mxu1 }
 0x679   :  { %v3659_v53 = vmul.f32 0.015625, %v4845_v13  ;;  %v3579_v40 = vpop.f32.mrb[145].mxu1 }
 0x67a   :  { %v3658_v14 = vmul.f32 0.015625, %v3579_v40 }
 0x67b   :  { %v4022_v41 = vadd.f32 -1.0, %v3659_v53  ;;  %v3758_v9 = vmul.f32 %v3659_v53, %v3659_v53  ;;  %v3682_v53 = vadd.s32 56, %v6702_v49 }
 0x67c   :  { %v4021_v61 = vadd.f32 -1.0, %v3658_v14  ;;  %v3757_v43 = vmul.f32 %v3658_v14, %v3658_v14  ;;  %v4848_v62 = vpop.f32.mrb[146].mxu1 }
 0x67d   :  { %v3726_v25 = vmul.f32 0.0078125, %v4022_v41  ;;  %v3661_v15 = vmul.f32 0.015625, %v4848_v62  ;;  %v3589_v63 = vpop.f32.mrb[147].mxu1  ;;  %v3774_v50 = vmul.f32 6.151575e-05, %v3758_v9  ;;  %vm3700_vm9 = vcmp.eq.s32.totalorder %v3682_v53, %v6705_v28 }
 0x67e   :  { %v3725_v1 = vmul.f32 0.0078125, %v4021_v61  ;;  %v3660_v3 = vmul.f32 0.015625, %v3589_v63  ;;  %v3773_v54 = vmul.f32 6.151575e-05, %v3757_v43 }
 0x67f   :  { %v3742_v59 = vmul.f32 %v4022_v41, %v3726_v25  ;;  %v4024_v18 = vadd.f32 -1.0, %v3661_v15  ;;  %v3760_v0 = vmul.f32 %v3661_v15, %v3661_v15 }
 0x680   :  { %v3741_v20 = vmul.f32 %v4021_v61, %v3725_v1  ;;  %v4023_v21 = vadd.f32 -1.0, %v3660_v3  ;;  %v3759_v23 = vmul.f32 %v3660_v3, %v3660_v3  ;;  %v4851_v60 = vpop.f32.mrb[148].mxu1 }
 0x681   :  { %v3790_v24 = vsel %vm3694_vm2, %v3742_v59, %v3774_v50  ;;  %v3728_v22 = vmul.f32 0.0078125, %v4024_v18  ;;  %v3663_v26 = vmul.f32 0.015625, %v4851_v60  ;;  %v3599_v27 = vpop.f32.mrb[149].mxu1  ;;  %v3776_v47 = vmul.f32 6.151575e-05, %v3760_v0 }
 0x682   :  { %v3789_v4 = vsel %vm3693_vm3, %v3741_v20, %v3773_v54  ;;  %v3727_v56 = vmul.f32 0.0078125, %v4023_v21  ;;  %v3662_v6 = vmul.f32 0.015625, %v3599_v27  ;;  %v3775_v32 = vmul.f32 6.151575e-05, %v3759_v23 }
 0x683   :  { %v3805_v7 = vadd.f32 %v3790_v24, %v3789_v4  ;;  %v3744_v30 = vmul.f32 %v4024_v18, %v3728_v22  ;;  %v4026_v51 = vadd.f32 -1.0, %v3663_v26  ;;  %v3762_v37 = vmul.f32 %v3663_v26, %v3663_v26 }
 0x684   :  { %v3743_v35 = vmul.f32 %v4023_v21, %v3727_v56  ;;  %v4025_v42 = vadd.f32 -1.0, %v3662_v6  ;;  %v3761_v33 = vmul.f32 %v3662_v6, %v3662_v6  ;;  %v4854_v36 = vpop.f32.mrb[150].mxu1  ;;  %v3683_v18 = vadd.s32 64, %v6702_v49 }
 0x685   :  { %v3730_v34 = vmul.f32 0.0078125, %v4026_v51  ;;  %v3665_v38 = vmul.f32 0.015625, %v4854_v36  ;;  %v3609_v52 = vpop.f32.mrb[151].mxu1  ;;  %v3792_v55 = vsel %vm3696_vm4, %v3744_v30, %v3776_v47  ;;  %v3778_v48 = vmul.f32 6.151575e-05, %v3762_v37 }
 0x686   :  { %v3791_v39 = vsel %vm3695_vm5, %v3743_v35, %v3775_v32  ;;  %v3729_v19 = vmul.f32 0.0078125, %v4025_v42  ;;  %v3664_v8 = vmul.f32 0.015625, %v3609_v52  ;;  %v3777_v11 = vmul.f32 6.151575e-05, %v3761_v33 }
 0x687   :  { %v3806_v17 = vadd.f32 %v3805_v7, %v3791_v39  ;;  %v3746_v29 = vmul.f32 %v4026_v51, %v3730_v34  ;;  %v4028_v31 = vadd.f32 -1.0, %v3665_v38  ;;  %v3764_v14 = vmul.f32 %v3665_v38, %v3665_v38 }
 0x688   :  { %v3745_v44 = vmul.f32 %v4025_v42, %v3729_v19  ;;  %v4027_v46 = vadd.f32 -1.0, %v3664_v8  ;;  %v3763_v12 = vmul.f32 %v3664_v8, %v3664_v8  ;;  %v4857_v15 = vpop.f32.mrb[152].mxu1  ;;  %v3684_v21 = vadd.s32 72, %v6702_v49 }
 0x689   :  { %v3807_v16 = vadd.f32 %v3806_v17, %v3792_v55  ;;  %v3732_v5 = vmul.f32 0.0078125, %v4028_v31  ;;  %v3794_v9 = vsel %vm3698_vm7, %v3746_v29, %v3778_v48  ;;  %v3667_v63 = vmul.f32 0.015625, %v4857_v15  ;;  %v3619_v1 = vpop.f32.mrb[153].mxu1 }
 0x68a   :  { %v3793_v13 = vsel %vm3697_vm6, %v3745_v44, %v3777_v11  ;;  %v3731_v41 = vmul.f32 0.0078125, %v4027_v46  ;;  %v3779_v62 = vmul.f32 6.151575e-05, %v3763_v12  ;;  %v3780_v2 = vmul.f32 6.151575e-05, %v3764_v14 }
 0x68b   :  { %v3808_v40 = vadd.f32 %v3807_v16, %v3793_v13  ;;  %v3748_v61 = vmul.f32 %v4028_v31, %v3732_v5  ;;  %v3666_v45 = vmul.f32 0.015625, %v3619_v1  ;;  %v4030_v50 = vadd.f32 -1.0, %v3667_v63 }
 0x68c   :  { %v3747_v43 = vmul.f32 %v4027_v46, %v3731_v41  ;;  %v3766_v24 = vmul.f32 %v3667_v63, %v3667_v63  ;;  %vm3701_vm10 = vcmp.eq.s32.totalorder %v3683_v18, %v6705_v28  ;;  %v4860_v4 = vpop.f32.mrb[154].mxu1  ;;  %vm3702_vm11 = vcmp.eq.s32.totalorder %v3684_v21, %v6705_v28 }
 0x68d   :  { %v3809_v25 = vadd.f32 %v3808_v40, %v3794_v9  ;;  %v3796_v10 = vsel %vm3700_vm9, %v3748_v61, %v3780_v2  ;;  %v4029_v20 = vadd.f32 -1.0, %v3666_v45  ;;  %v3765_v54 = vmul.f32 %v3666_v45, %v3666_v45  ;;  %v3629_v6 = vpop.f32.mrb[155].mxu1 }
 0x68e   :  { %v3795_v3 = vsel %vm3699_vm8, %v3747_v43, %v3779_v62  ;;  %v3734_v23 = vmul.f32 0.0078125, %v4030_v50  ;;  %v3669_v56 = vmul.f32 0.015625, %v4860_v4  ;;  %v3782_v7 = vmul.f32 6.151575e-05, %v3766_v24 }
 0x68f   :  { %v3810_v59 = vadd.f32 %v3809_v25, %v3795_v3  ;;  %v3733_v22 = vmul.f32 0.0078125, %v4029_v20  ;;  %v3781_v27 = vmul.f32 6.151575e-05, %v3765_v54  ;;  %v3668_v51 = vmul.f32 0.015625, %v3629_v6 }
 0x690   :  { %v3750_v0 = vmul.f32 %v4030_v50, %v3734_v23  ;;  %v4032_v32 = vadd.f32 -1.0, %v3669_v56  ;;  %v3685_v42 = vadd.s32 80, %v6702_v49  ;;  %v3686_v34 = vadd.s32 88, %v6702_v49  ;;  %v4863_v17 = vpop.f32.mrb[156].mxu1 }
 0x691   :  { %v3811_v60 = vadd.f32 %v3810_v59, %v3796_v10  ;;  %v3749_v26 = vmul.f32 %v4029_v20, %v3733_v22  ;;  %v4031_v47 = vadd.f32 -1.0, %v3668_v51  ;;  %v3767_v58 = vmul.f32 %v3668_v51, %v3668_v51  ;;  %v3639_v57 = vpop.f32.mrb[157].mxu1 }
 0x692   :  { %v3798_v33 = vsel %vm3702_vm11, %v3750_v0, %v3782_v7  ;;  %v3736_v36 = vmul.f32 0.0078125, %v4032_v32  ;;  %v3768_v37 = vmul.f32 %v3669_v56, %v3669_v56  ;;  %vm3703_vm12 = vcmp.eq.s32.totalorder %v3685_v42, %v6705_v28 }
 0x693   :  { %v3797_v30 = vsel %vm3701_vm10, %v3749_v26, %v3781_v27  ;;  %v3735_v19 = vmul.f32 0.0078125, %v4031_v47  ;;  %v3783_v55 = vmul.f32 6.151575e-05, %v3767_v58  ;;  %vm3704_vm13 = vcmp.eq.s32.totalorder %v3686_v34, %v6705_v28 }
 0x694   :  { %v3812_v35 = vadd.f32 %v3811_v60, %v3797_v30  ;;  %v3752_v38 = vmul.f32 %v4032_v32, %v3736_v36  ;;  %v3671_v8 = vmul.f32 0.015625, %v4863_v17  ;;  %v3784_v29 = vmul.f32 6.151575e-05, %v3768_v37  ;;  %v4866_v62 = vpop.f32.mrb[158].mxu1 }
 0x695   :  { %v3751_v52 = vmul.f32 %v4031_v47, %v3735_v19  ;;  %v3670_v11 = vmul.f32 0.015625, %v3639_v57  ;;  %v3687_v46 = vadd.s32 96, %v6702_v49  ;;  %v3688_v5 = vadd.s32 104, %v6702_v49  ;;  %v3649_v15 = vpop.f32.mrb[159].mxu1 }
 0x696   :  { %v3813_v39 = vadd.f32 %v3812_v35, %v3798_v33  ;;  %v4034_v16 = vadd.f32 -1.0, %v3671_v8  ;;  %v3800_v12 = vsel %vm3704_vm13, %v3752_v38, %v3784_v29  ;;  %v3770_v14 = vmul.f32 %v3671_v8, %v3671_v8 }
 0x697   :  { %v3799_v44 = vsel %vm3703_vm12, %v3751_v52, %v3783_v55  ;;  %v4033_v48 = vadd.f32 -1.0, %v3670_v11  ;;  %v3769_v13 = vmul.f32 %v3670_v11, %v3670_v11  ;;  %vm3705_vm14 = vcmp.eq.s32.totalorder %v3687_v46, %v6705_v28 }
 0x698   :  { %v3814_v31 = vadd.f32 %v3813_v39, %v3799_v44  ;;  %v3738_v53 = vmul.f32 0.0078125, %v4034_v16  ;;  %v3673_v25 = vmul.f32 0.015625, %v4866_v62  ;;  %vm3706_vm15 = vcmp.eq.s32.totalorder %v3688_v5, %v6705_v28 }
 0x699   :  { %v3737_v41 = vmul.f32 0.0078125, %v4033_v48  ;;  %v3785_v43 = vmul.f32 6.151575e-05, %v3769_v13  ;;  %v3786_v63 = vmul.f32 6.151575e-05, %v3770_v14  ;;  %v3672_v1 = vmul.f32 0.015625, %v3649_v15 }
 0x69a   :  { %v3815_v40 = vadd.f32 %v3814_v31, %v3800_v12  ;;  %v3754_v9 = vmul.f32 %v4034_v16, %v3738_v53  ;;  %v4036_v3 = vadd.f32 -1.0, %v3673_v25  ;;  %v3689_v45 = vadd.s32 112, %v6702_v49 }
 0x69b   :  { %v3753_v61 = vmul.f32 %v4033_v48, %v3737_v41  ;;  %v4035_v50 = vadd.f32 -1.0, %v3672_v1  ;;  %v3771_v18 = vmul.f32 %v3672_v1, %v3672_v1  ;;  %v3690_v54 = vadd.s32 120, %v6702_v49 }
 0x69c   :  { %v3802_v10 = vsel %vm3706_vm15, %v3754_v9, %v3786_v63  ;;  %v3740_v20 = vmul.f32 0.0078125, %v4036_v3  ;;  %v3772_v23 = vmul.f32 %v3673_v25, %v3673_v25  ;;  %vm3707_vm0 = vcmp.eq.s32.totalorder %v3689_v45, %v6705_v28 }
 0x69d   :  { %v3801_v2 = vsel %vm3705_vm14, %v3753_v61, %v3785_v43  ;;  %v3739_v60 = vmul.f32 0.0078125, %v4035_v50  ;;  %v3787_v0 = vmul.f32 6.151575e-05, %v3771_v18  ;;  %vm3708_vm1 = vcmp.eq.s32.totalorder %v3690_v54, %v6705_v28 }
 0x69e   :  { %v3816_v59 = vadd.f32 %v3815_v40, %v3801_v2  ;;  %v3756_v24 = vmul.f32 %v4036_v3, %v3740_v20  ;;  %v3788_v26 = vmul.f32 6.151575e-05, %v3772_v23  ;;  %vm3830_vm2 = vcmask 0  }
 0x69f   :  { %v3755_v22 = vmul.f32 %v4035_v50, %v3739_v60 }
 0x6a0   :  { %v3817_v21 = vadd.f32 %v3816_v59, %v3802_v10  ;;  %v3804_v56 = vsel %vm3708_vm1, %v3756_v24, %v3788_v26 }
 0x6a1   :  { %v3803_v27 = vsel %vm3707_vm0, %v3755_v22, %v3787_v0 }
 0x6a2   :  { %v3818_v4 = vadd.f32 %v3817_v21, %v3803_v27 }
 0x6a4   :  { %v3819_v6 = vadd.f32 %v3818_v4, %v3804_v56 }
 0x6a6   :  { %3820 = vadd.xlane.f32.xlu1 %v3819_v6 }
 0x733   :  { %v3821_v7 = vpop.xlane.xlu1 %3820 }
 0x734   :  { %v3822_v30 = vrot.slane %v3821_v7, 4 }
 0x736   :  { %v3823_v51 = vadd.f32 %v3822_v30, %v3821_v7 }
 0x738   :  { %v3824_v49 = vrot.slane %v3823_v51, 2 }
 0x73a   :  { %v3825_v35 = vadd.f32 %v3824_v49, %v3823_v51 }
 0x73c   :  { %v3826_v32 = vrot.slane %v3825_v35, 1 }
 0x73e   :  { %v3827_v42 = vadd.f32 %v3826_v32, %v3825_v35 }
 0x740   :  { %4883 = vpush %v3827_v42 }
 0x771   :  { %s4884_s1 = spop %4883 }
 0x772   :  { %v3829_v28 = vstv %s4884_s1 }
 0x773   :  { %3831 = vst.msk [vmem:[#allocation5] sm:$0x1] %vm3830_vm2, %v3829_v28 }
 0x774   :  { %5194 = shalt.err (!%p5191_p12)
}
 0x775   :  { %s5195_s18 = scalar_lea.hbm %s6769_s10, 16 }
 0x776   :  { %p5196_p13 = scmp.ne.s32.totalorder %s6769_s10, %s5195_s18  ;;  %p5199_p0 = scmp.lt.u32.totalorder %s5195_s18, %s6769_s10 }
 0x778   :  { %p5201_p1 = pnand %p5199_p0, %p5196_p13 }
 0x77a   :  { %5204 = shalt.err (!%p5201_p1)
}
 0x77b   :  { %3841 = dma.vmem_to_hbm [thread:$0]  %s3839_s8, 16, %s6769_s10, [#allocation4]  }
 0x77c   :  { %5207 = dma.done.wait [#allocation4], 16  }
 0x77d   :  { %5208 = vsyncadd [#allocation4], 4294967280 }
 0x77e   :  { %3845 = vsyncpa [#allocation3], 1 }
 0x77f   :  { %3846 = vsyncpa [#allocation4], 1 }

</bundles_post_ra>
